<compile_context>
chip_gen: v6e
topology: v6e:2x2x1
jax: 0.10.0
libtpu: 0.0.40
codegen_flags: <defaults>
</compile_context>

<pallas_src>
import functools

import jax
import jax.numpy as jnp
import numpy as np
from jax import lax
from jax.experimental import pallas as pl
from jax.experimental.pallas import tpu as pltpu


# ----------------------------- fused Pallas kernel ---------------------------

def _eegconv_kernel(x_ref, wpk_ref, bpk_ref, wfc_ref, p1_ref, p2_ref,     # in
                    enc_ref, prob_ref,                                    # out
                    f0_ref, f1_ref, f2_ref, im0_ref, im1_ref, im2_ref,    # scratch
                    *, N, L, Lf, K0, K1, K2, C0, C1, NCLS,
                    LM0, S0, WA, WB, WC,
                    OFF_W0, OFF_W1, OFF_WG, OFF_WP):
    """Whole EEGConv forward, batch fused along the lane axis, all in VMEM.

    x_ref   : (N, 1, L)        raw input
    wpk_ref : (C1, WPK)        packed, BN-folded conv weights (im2col layout)
    bpk_ref : (C1, 8)          packed BN shifts, PReLU alphas, fc bias
    wfc_ref : (NCLS, C1, Lf)   classifier weights (un-flattened)
    p1_ref  : (WB, W2)         AvgPool(4) + re-framing matrix (block-diagonal)
    p2_ref  : (WC, N*Lf)       AvgPool(8) + valid-column extraction matrix
    enc_ref : (C1, N*Lf)       features (rearranged to (N, C1*Lf) outside)
    prob_ref: (NCLS, N)        softmax probabilities (transposed outside)
    f0/f1/f2: zero-gapped padded "frame" slabs; im0/im1/im2: im2col stacks.
    """
    f32 = jnp.float32
    hi = lax.Precision.HIGHEST
    H0 = K0 // 2

    # ---- unpack the small packed constants (one VMEM slab) -----------------
    b0 = bpk_ref[0:C0, 0:1]            # BN0 shift            (C0, 1)
    b1 = bpk_ref[0:C1, 1:2]            # BN1 shift            (C1, 1)
    b2 = bpk_ref[0:C1, 2:3]            # BN2 shift            (C1, 1)
    a0 = bpk_ref[0:1, 3:4]             # PReLU alphas (scalar per layer)
    a1 = bpk_ref[1:2, 3:4]
    a2 = bpk_ref[2:3, 3:4]
    bfc = bpk_ref[0:NCLS, 4:5]         # fc bias              (NCLS, 1)

    def prelu(z, a):
        return jnp.maximum(z, 0.0) + a * jnp.minimum(z, 0.0)

    # ---- frame the batch into the zero-padded block0 input slab ------------
    f0_ref[...] = jnp.zeros_like(f0_ref)           # one-time zero (few vregs)
    for n in range(N):
        s = LM0 + n * S0
        f0_ref[:, s:s + L] = x_ref[n]              # (1, L) payload

    # ---- block0: Conv1d(1->8,k=21,'same') as ONE im2col matmul -------------
    for k in range(K0):
        im0_ref[k:k + 1, :] = f0_ref[:, k:k + WA]
    out0 = jnp.dot(wpk_ref[0:C0, OFF_W0:OFF_W0 + K0], im0_ref[...],
                   precision=hi, preferred_element_type=f32)      # (C0, WA)
    act0 = prelu(out0 + b0, a0)

    # copy only payload columns -> halo/gap columns of F1 stay exactly zero
    f1_ref[...] = jnp.zeros_like(f1_ref)
    for n in range(N):
        s = LM0 - H0 + n * S0
        f1_ref[:, s:s + L] = act0[:, s:s + L]

    # ---- block_depthconv: grouped conv (k=11) as ONE matmul + AvgPool(4) ---
    for k in range(K1):
        im1_ref[k * C0:(k + 1) * C0, :] = f1_ref[:, k:k + WB]
    out1 = jnp.dot(wpk_ref[:, OFF_W1:OFF_W1 + K1 * C0], im1_ref[...],
                   precision=hi, preferred_element_type=f32)      # (C1, WB)
    act1 = prelu(out1 + b1, a1)
    # AvgPool(4) + re-framing for the pointconv block in one matmul; the gap
    # columns of the new frame come out exactly zero (all-zero matrix columns).
    f2_ref[...] = jnp.dot(act1, p1_ref[...],
                          precision=hi, preferred_element_type=f32)  # (C1, W2)

    # ---- block_pointconv: grouped conv (k=17) + 1x1 conv + AvgPool(8) ------
    for k in range(K2):
        im2_ref[k * C1:(k + 1) * C1, :] = f2_ref[:, k:k + WC]
    outg = jnp.dot(wpk_ref[:, OFF_WG:OFF_WG + K2 * C1], im2_ref[...],
                   precision=hi, preferred_element_type=f32)      # (C1, WC)
    out2 = jnp.dot(wpk_ref[:, OFF_WP:OFF_WP + C1], outg,
                   precision=hi, preferred_element_type=f32)      # (C1, WC)
    act2 = prelu(out2 + b2, a2)
    y2 = jnp.dot(act2, p2_ref[...],
                 precision=hi, preferred_element_type=f32)        # (C1, N*Lf)

    enc_ref[...] = y2                               # single lane-dense store

    # ---- classifier: Linear(h->NCLS) + Softmax (tiny epilogue) -------------
    cols = []
    for n in range(N):
        y2n = y2[:, n * Lf:(n + 1) * Lf]                          # (C1, Lf)
        prod = wfc_ref[...] * y2n[None, :, :]                     # (NCLS, C1, Lf)
        lg = jnp.sum(jnp.sum(prod, axis=2), axis=1, keepdims=True) + bfc
        m = jnp.max(lg, axis=0, keepdims=True)
        e = jnp.exp(lg - m)
        cols.append(e / jnp.sum(e, axis=0, keepdims=True))        # (NCLS, 1)
    prob_ref[...] = jnp.concatenate(cols, axis=1)                 # one store


# --------------------------------- wrapper -----------------------------------

def eegconv_forward(x, p):
    """x: (N, 1, L) f32.  Returns (enc_out (N, h), probs (N, n_classes))."""
    N, c_in, L = x.shape
    assert c_in == 1 and L % 32 == 0
    C0, C1 = p["w0"].shape[0], p["w1"].shape[0]
    assert C1 == 2 * C0
    K0, K1, K2 = p["w0"].shape[-1], p["w1"].shape[-1], p["wg"].shape[-1]
    assert K0 % 2 == 1 and K1 % 2 == 1 and K2 % 2 == 1
    NCLS = p["fc_w"].shape[0]
    Lp, Lf = L // 4, L // 32
    h = C1 * Lf
    assert p["fc_w"].shape[1] == h
    f32 = jnp.float32
    H0, H1, H2 = K0 // 2, K1 // 2, K2 // 2

    # ---- frame geometry (zero-gapped batch fusion along the lane axis) -----
    LM0 = H0 + H1                     # F0 left margin (F1 inherits H1 margin)
    G0 = max(H0, H1)                  # zero gap between samples
    RM0 = H0 + H1                     # F0 right margin
    S0 = L + G0                       # per-sample stride (F0 / F1)
    W0 = LM0 + (N - 1) * S0 + L + RM0
    WA = W0 - (K0 - 1)                # width of F1 (= block0 conv output)
    WB = WA - (K1 - 1)                # width of depthconv output
    LM2 = H2                          # pointconv frame margins / gaps
    S2 = Lp + H2
    W2 = LM2 + (N - 1) * S2 + Lp + H2
    WC = W2 - (K2 - 1)                # width of grouped/pointwise conv output

    # ---- trace-time weight prep: fold BN scales, densify groups, pack ------
    w0m = (p["w0"][:, 0, :] * p["bn0_scale"][:, None]).astype(f32)       # (C0,K0)

    dm = jax.nn.one_hot(jnp.arange(C1) // (C1 // C0), C0, dtype=f32)     # (C1,C0)
    w1f = (p["w1"][:, 0, :] * p["bn1_scale"][:, None]).astype(f32)       # (C1,K1)
    w1m = (w1f[:, :, None] * dm[:, None, :]).reshape(C1, K1 * C0)        # [o,k*C0+ci]

    wg = p["wg"].astype(f32)                                             # (C1,2,K2)
    gin0 = 2 * (jnp.arange(C1) // 2)
    sel0 = jax.nn.one_hot(gin0, C1, dtype=f32)
    sel1 = jax.nn.one_hot(gin0 + 1, C1, dtype=f32)
    wgd = (wg[:, 0, :, None] * sel0[:, None, :] +
           wg[:, 1, :, None] * sel1[:, None, :])                         # (o,k,ci)
    wgm = wgd.reshape(C1, K2 * C1)                                       # [o,k*C1+ci]

    wpm = (p["wp"][:, :, 0] * p["bn2_scale"][:, None]).astype(f32)       # (C1,C1)

    OFF_W0, OFF_W1, OFF_WG, OFF_WP = 0, 128, 256, 640                    # lane-aligned
    WPK = OFF_WP + C1
    wpack = jnp.zeros((C1, WPK), f32)
    wpack = wpack.at[0:C0, OFF_W0:OFF_W0 + K0].set(w0m)
    wpack = wpack.at[:, OFF_W1:OFF_W1 + K1 * C0].set(w1m)
    wpack = wpack.at[:, OFF_WG:OFF_WG + K2 * C1].set(wgm)
    wpack = wpack.at[:, OFF_WP:OFF_WP + C1].set(wpm)

    bpack = jnp.zeros((C1, 8), f32)
    bpack = bpack.at[0:C0, 0].set(p["bn0_shift"].astype(f32))
    bpack = bpack.at[:, 1].set(p["bn1_shift"].astype(f32))
    bpack = bpack.at[:, 2].set(p["bn2_shift"].astype(f32))
    alph = jnp.stack([p["alpha0"][0], p["alpha1"][0], p["alpha2"][0]]).astype(f32)
    bpack = bpack.at[0:3, 3].set(alph)
    bpack = bpack.at[0:NCLS, 4].set(p["fc_b"].astype(f32))

    wfc3 = p["fc_w"].reshape(NCLS, C1, Lf).astype(f32)

    # AvgPool matrices: extract valid columns, average, place into next frame.
    pool1 = np.zeros((WB, W2), np.float32)
    pool2 = np.zeros((WC, N * Lf), np.float32)
    for n in range(N):
        r1 = (LM0 - H0 - H1) + n * S0
        c1 = LM2 + n * S2
        for t in range(L):
            pool1[r1 + t, c1 + t // 4] = 0.25
        r2 = (LM2 - H2) + n * S2
        for t in range(Lp):
            pool2[r2 + t, n * Lf + t // 8] = 0.125

    kernel = functools.partial(
        _eegconv_kernel, N=N, L=L, Lf=Lf, K0=K0, K1=K1, K2=K2,
        C0=C0, C1=C1, NCLS=NCLS, LM0=LM0, S0=S0, WA=WA, WB=WB, WC=WC,
        OFF_W0=OFF_W0, OFF_W1=OFF_W1, OFF_WG=OFF_WG, OFF_WP=OFF_WP)

    vmem = pltpu.MemorySpace.VMEM
    enc_t, prob_t = pl.pallas_call(
        kernel,
        out_shape=(jax.ShapeDtypeStruct((C1, N * Lf), f32),
                   jax.ShapeDtypeStruct((NCLS, N), f32)),
        in_specs=[pl.BlockSpec(memory_space=vmem)] * 6,
        out_specs=(pl.BlockSpec(memory_space=vmem),
                   pl.BlockSpec(memory_space=vmem)),
        scratch_shapes=[pltpu.VMEM((1, W0), f32),          # F0 padded input
                        pltpu.VMEM((C0, WA), f32),         # F1 padded frame
                        pltpu.VMEM((C1, W2), f32),         # F2 padded frame
                        pltpu.VMEM((K0, WA), f32),         # im2col block0
                        pltpu.VMEM((K1 * C0, WB), f32),    # im2col depthconv
                        pltpu.VMEM((K2 * C1, WC), f32)],   # im2col pointconv
        compiler_params=pltpu.CompilerParams(vmem_limit_bytes=8 * 1024 * 1024),
    )(x.astype(f32), wpack, bpack, wfc3, jnp.asarray(pool1), jnp.asarray(pool2))

    # metadata-only rearrangements outside the kernel
    enc = jnp.transpose(enc_t.reshape(C1, N, Lf), (1, 0, 2)).reshape(N, h)
    probs = prob_t.T
    return enc, probs


# --------------------------- reference (pure JAX) -----------------------------

def reference_forward(x, p):
    hi = lax.Precision.HIGHEST

    def conv_same(a, w, groups):
        k = w.shape[-1]
        pad = (k - 1) // 2
        return lax.conv_general_dilated(
            a, w, window_strides=(1,), padding=[(pad, pad)],
            dimension_numbers=("NCH", "OIH", "NCH"),
            feature_group_count=groups, precision=hi)

    def bn(a, s, b):
        return a * s.reshape(1, -1, 1) + b.reshape(1, -1, 1)

    def prelu(a, alpha):
        return jnp.where(a > 0, a, alpha * a)

    def avgpool(a, k):
        n, c, l = a.shape
        return a.reshape(n, c, l // k, k).mean(axis=-1)

    out = prelu(bn(conv_same(x, p["w0"], 1), p["bn0_scale"], p["bn0_shift"]), p["alpha0"])
    out = prelu(bn(conv_same(out, p["w1"], 8), p["bn1_scale"], p["bn1_shift"]), p["alpha1"])
    out = avgpool(out, 4)
    out = conv_same(out, p["wg"], 8)
    out = conv_same(out, p["wp"], 1)
    out = prelu(bn(out, p["bn2_scale"], p["bn2_shift"]), p["alpha2"])
    out = avgpool(out, 8)
    enc = out.reshape(out.shape[0], -1)
    logits = jnp.dot(enc, p["fc_w"].T, precision=hi) + p["fc_b"]
    return enc, jax.nn.softmax(logits, axis=1)


# ------------------------------ parameter init --------------------------------

def init_params(key, *, L, n_classes):
    C0, C1 = 8, 16
    K0, K1, K2 = 21, 11, 17
    h = C1 * (L // 32)
    ks = jax.random.split(key, 10)

    def bn_affine(k, C):
        k1, k2, k3, k4 = jax.random.split(k, 4)
        gamma = jax.random.uniform(k1, (C,), minval=0.5, maxval=1.5)
        beta = 0.1 * jax.random.normal(k2, (C,))
        mean = 0.1 * jax.random.normal(k3, (C,))
        var = jax.random.uniform(k4, (C,), minval=0.5, maxval=1.5)
        scale = gamma / jnp.sqrt(var + 1e-5)
        shift = beta - mean * scale
        return scale.astype(jnp.float32), shift.astype(jnp.float32)

    p = {}
    p["w0"] = jax.random.normal(ks[0], (C0, 1, K0), jnp.float32) / np.sqrt(K0)
    p["bn0_scale"], p["bn0_shift"] = bn_affine(ks[1], C0)
    p["alpha0"] = jnp.asarray([0.25], jnp.float32)

    p["w1"] = jax.random.normal(ks[2], (C1, 1, K1), jnp.float32) / np.sqrt(K1)
    p["bn1_scale"], p["bn1_shift"] = bn_affine(ks[3], C1)
    p["alpha1"] = jnp.asarray([0.20], jnp.float32)

    p["wg"] = jax.random.normal(ks[4], (C1, 2, K2), jnp.float32) / np.sqrt(2 * K2)
    p["wp"] = jax.random.normal(ks[5], (C1, C1, 1), jnp.float32) / np.sqrt(C1)
    p["bn2_scale"], p["bn2_shift"] = bn_affine(ks[6], C1)
    p["alpha2"] = jnp.asarray([0.30], jnp.float32)

    p["fc_w"] = 0.2 * jax.random.normal(ks[7], (n_classes, h), jnp.float32)
    p["fc_b"] = 0.1 * jax.random.normal(ks[8], (n_classes,), jnp.float32)
    return p


# ----------------------------------- main --------------------------------------

if __name__ == "__main__":
    N, L, N_CLASSES = 2, 128, 2           # h = 16 * (L / 32) = 64
    root = jax.random.PRNGKey(0)
    k_x, k_p = jax.random.split(root)
    x = jax.random.normal(k_x, (N, 1, L), jnp.float32)
    params = init_params(k_p, L=L, n_classes=N_CLASSES)

    fwd = jax.jit(eegconv_forward)
    enc, probs = jax.block_until_ready(fwd(x, params))

    enc_ref, probs_ref = reference_forward(x, params)
    np.testing.assert_allclose(np.asarray(enc), np.asarray(enc_ref), rtol=5e-2, atol=5e-2)
    np.testing.assert_allclose(np.asarray(probs), np.asarray(probs_ref), rtol=5e-2, atol=5e-2)
    assert enc.shape == (N, 16 * (L // 32)) and probs.shape == (N, N_CLASSES)

    print("KERNEL_OK")
</pallas_src>

<mosaic_0001>
module attributes {stable_mosaic.version = 11 : i64} {
  func.func @_eegconv_kernel(%arg0: memref<2x1x128xf32, #tpu.memory_space<vmem>>, %arg1: memref<16x656xf32, #tpu.memory_space<vmem>>, %arg2: memref<16x8xf32, #tpu.memory_space<vmem>>, %arg3: memref<2x16x4xf32, #tpu.memory_space<vmem>>, %arg4: memref<266x88xf32, #tpu.memory_space<vmem>>, %arg5: memref<72x8xf32, #tpu.memory_space<vmem>>, %arg6: memref<16x8xf32, #tpu.memory_space<vmem>>, %arg7: memref<2x2xf32, #tpu.memory_space<vmem>>, %arg8: memref<1x296xf32, #tpu.memory_space<vmem>>, %arg9: memref<8x276xf32, #tpu.memory_space<vmem>>, %arg10: memref<16x88xf32, #tpu.memory_space<vmem>>, %arg11: memref<21x276xf32, #tpu.memory_space<vmem>>, %arg12: memref<88x266xf32, #tpu.memory_space<vmem>>, %arg13: memref<272x72xf32, #tpu.memory_space<vmem>>) attributes {dimension_semantics = [], scalar_prefetch = 0 : i64, scratch_operands = 6 : i64, tpu.core_type = #tpu.core_type<tc>} {
    %c0 = arith.constant 0 : index
    %c0_0 = arith.constant 0 : index
    %0 = vector.load %arg2[%c0, %c0_0] : memref<16x8xf32, #tpu.memory_space<vmem>>, vector<8x1xf32>
    %c0_1 = arith.constant 0 : index
    %c1 = arith.constant 1 : index
    %1 = vector.load %arg2[%c0_1, %c1] : memref<16x8xf32, #tpu.memory_space<vmem>>, vector<16x1xf32>
    %c0_2 = arith.constant 0 : index
    %c2 = arith.constant 2 : index
    %2 = vector.load %arg2[%c0_2, %c2] : memref<16x8xf32, #tpu.memory_space<vmem>>, vector<16x1xf32>
    %c0_3 = arith.constant 0 : index
    %c3 = arith.constant 3 : index
    %3 = vector.load %arg2[%c0_3, %c3] : memref<16x8xf32, #tpu.memory_space<vmem>>, vector<1x1xf32>
    %c1_4 = arith.constant 1 : index
    %c3_5 = arith.constant 3 : index
    %4 = vector.load %arg2[%c1_4, %c3_5] : memref<16x8xf32, #tpu.memory_space<vmem>>, vector<1x1xf32>
    %c2_6 = arith.constant 2 : index
    %c3_7 = arith.constant 3 : index
    %5 = vector.load %arg2[%c2_6, %c3_7] : memref<16x8xf32, #tpu.memory_space<vmem>>, vector<1x1xf32>
    %c0_8 = arith.constant 0 : index
    %c4 = arith.constant 4 : index
    %6 = vector.load %arg2[%c0_8, %c4] : memref<16x8xf32, #tpu.memory_space<vmem>>, vector<2x1xf32>
    %cst = arith.constant 0.000000e+00 : f32
    %7 = vector.broadcast %cst : f32 to vector<1x296xf32>
    %c0_9 = arith.constant 0 : index
    %c0_10 = arith.constant 0 : index
    %8 = vector.load %arg8[%c0_9, %c0_10] : memref<1x296xf32, #tpu.memory_space<vmem>>, vector<1x296xf32>
    tpu.vector_store %arg8[%c0_9, %c0_10], %7 {strides = array<i32>} : memref<1x296xf32, #tpu.memory_space<vmem>>, vector<1x296xf32>,
    %c0_11 = arith.constant 0 : index
    %c0_12 = arith.constant 0 : index
    %c0_13 = arith.constant 0 : index
    %9 = vector.load %arg0[%c0_11, %c0_12, %c0_13] : memref<2x1x128xf32, #tpu.memory_space<vmem>>, vector<1x1x128xf32>
    %10 = vector.shape_cast %9 : vector<1x1x128xf32> to vector<1x128xf32>
    %c0_14 = arith.constant 0 : index
    %c15 = arith.constant 15 : index
    %11 = vector.load %arg8[%c0_14, %c15] : memref<1x296xf32, #tpu.memory_space<vmem>>, vector<1x128xf32>
    tpu.vector_store %arg8[%c0_14, %c15], %10 {strides = array<i32>} : memref<1x296xf32, #tpu.memory_space<vmem>>, vector<1x128xf32>,
    %c1_15 = arith.constant 1 : index
    %c0_16 = arith.constant 0 : index
    %c0_17 = arith.constant 0 : index
    %12 = vector.load %arg0[%c1_15, %c0_16, %c0_17] : memref<2x1x128xf32, #tpu.memory_space<vmem>>, vector<1x1x128xf32>
    %13 = vector.shape_cast %12 : vector<1x1x128xf32> to vector<1x128xf32>
    %c0_18 = arith.constant 0 : index
    %c153 = arith.constant 153 : index
    %14 = vector.load %arg8[%c0_18, %c153] : memref<1x296xf32, #tpu.memory_space<vmem>>, vector<1x128xf32>
    tpu.vector_store %arg8[%c0_18, %c153], %13 {strides = array<i32>} : memref<1x296xf32, #tpu.memory_space<vmem>>, vector<1x128xf32>,
    %c0_19 = arith.constant 0 : index
    %c0_20 = arith.constant 0 : index
    %15 = vector.load %arg8[%c0_19, %c0_20] : memref<1x296xf32, #tpu.memory_space<vmem>>, vector<1x276xf32>
    %c0_21 = arith.constant 0 : index
    %c0_22 = arith.constant 0 : index
    %16 = vector.load %arg11[%c0_21, %c0_22] : memref<21x276xf32, #tpu.memory_space<vmem>>, vector<1x276xf32>
    tpu.vector_store %arg11[%c0_21, %c0_22], %15 {strides = array<i32>} : memref<21x276xf32, #tpu.memory_space<vmem>>, vector<1x276xf32>,
    %c0_23 = arith.constant 0 : index
    %c1_24 = arith.constant 1 : index
    %17 = vector.load %arg8[%c0_23, %c1_24] : memref<1x296xf32, #tpu.memory_space<vmem>>, vector<1x276xf32>
    %c1_25 = arith.constant 1 : index
    %c0_26 = arith.constant 0 : index
    %18 = vector.load %arg11[%c1_25, %c0_26] : memref<21x276xf32, #tpu.memory_space<vmem>>, vector<1x276xf32>
    tpu.vector_store %arg11[%c1_25, %c0_26], %17 {strides = array<i32>} : memref<21x276xf32, #tpu.memory_space<vmem>>, vector<1x276xf32>,
    %c0_27 = arith.constant 0 : index
    %c2_28 = arith.constant 2 : index
    %19 = vector.load %arg8[%c0_27, %c2_28] : memref<1x296xf32, #tpu.memory_space<vmem>>, vector<1x276xf32>
    %c2_29 = arith.constant 2 : index
    %c0_30 = arith.constant 0 : index
    %20 = vector.load %arg11[%c2_29, %c0_30] : memref<21x276xf32, #tpu.memory_space<vmem>>, vector<1x276xf32>
    tpu.vector_store %arg11[%c2_29, %c0_30], %19 {strides = array<i32>} : memref<21x276xf32, #tpu.memory_space<vmem>>, vector<1x276xf32>,
    %c0_31 = arith.constant 0 : index
    %c3_32 = arith.constant 3 : index
    %21 = vector.load %arg8[%c0_31, %c3_32] : memref<1x296xf32, #tpu.memory_space<vmem>>, vector<1x276xf32>
    %c3_33 = arith.constant 3 : index
    %c0_34 = arith.constant 0 : index
    %22 = vector.load %arg11[%c3_33, %c0_34] : memref<21x276xf32, #tpu.memory_space<vmem>>, vector<1x276xf32>
    tpu.vector_store %arg11[%c3_33, %c0_34], %21 {strides = array<i32>} : memref<21x276xf32, #tpu.memory_space<vmem>>, vector<1x276xf32>,
    %c0_35 = arith.constant 0 : index
    %c4_36 = arith.constant 4 : index
    %23 = vector.load %arg8[%c0_35, %c4_36] : memref<1x296xf32, #tpu.memory_space<vmem>>, vector<1x276xf32>
    %c4_37 = arith.constant 4 : index
    %c0_38 = arith.constant 0 : index
    %24 = vector.load %arg11[%c4_37, %c0_38] : memref<21x276xf32, #tpu.memory_space<vmem>>, vector<1x276xf32>
    tpu.vector_store %arg11[%c4_37, %c0_38], %23 {strides = array<i32>} : memref<21x276xf32, #tpu.memory_space<vmem>>, vector<1x276xf32>,
    %c0_39 = arith.constant 0 : index
    %c5 = arith.constant 5 : index
    %25 = vector.load %arg8[%c0_39, %c5] : memref<1x296xf32, #tpu.memory_space<vmem>>, vector<1x276xf32>
    %c5_40 = arith.constant 5 : index
    %c0_41 = arith.constant 0 : index
    %26 = vector.load %arg11[%c5_40, %c0_41] : memref<21x276xf32, #tpu.memory_space<vmem>>, vector<1x276xf32>
    tpu.vector_store %arg11[%c5_40, %c0_41], %25 {strides = array<i32>} : memref<21x276xf32, #tpu.memory_space<vmem>>, vector<1x276xf32>,
    %c0_42 = arith.constant 0 : index
    %c6 = arith.constant 6 : index
    %27 = vector.load %arg8[%c0_42, %c6] : memref<1x296xf32, #tpu.memory_space<vmem>>, vector<1x276xf32>
    %c6_43 = arith.constant 6 : index
    %c0_44 = arith.constant 0 : index
    %28 = vector.load %arg11[%c6_43, %c0_44] : memref<21x276xf32, #tpu.memory_space<vmem>>, vector<1x276xf32>
    tpu.vector_store %arg11[%c6_43, %c0_44], %27 {strides = array<i32>} : memref<21x276xf32, #tpu.memory_space<vmem>>, vector<1x276xf32>,
    %c0_45 = arith.constant 0 : index
    %c7 = arith.constant 7 : index
    %29 = vector.load %arg8[%c0_45, %c7] : memref<1x296xf32, #tpu.memory_space<vmem>>, vector<1x276xf32>
    %c7_46 = arith.constant 7 : index
    %c0_47 = arith.constant 0 : index
    %30 = vector.load %arg11[%c7_46, %c0_47] : memref<21x276xf32, #tpu.memory_space<vmem>>, vector<1x276xf32>
    tpu.vector_store %arg11[%c7_46, %c0_47], %29 {strides = array<i32>} : memref<21x276xf32, #tpu.memory_space<vmem>>, vector<1x276xf32>,
    %c0_48 = arith.constant 0 : index
    %c8 = arith.constant 8 : index
    %31 = vector.load %arg8[%c0_48, %c8] : memref<1x296xf32, #tpu.memory_space<vmem>>, vector<1x276xf32>
    %c8_49 = arith.constant 8 : index
    %c0_50 = arith.constant 0 : index
    %32 = vector.load %arg11[%c8_49, %c0_50] : memref<21x276xf32, #tpu.memory_space<vmem>>, vector<1x276xf32>
    tpu.vector_store %arg11[%c8_49, %c0_50], %31 {strides = array<i32>} : memref<21x276xf32, #tpu.memory_space<vmem>>, vector<1x276xf32>,
    %c0_51 = arith.constant 0 : index
    %c9 = arith.constant 9 : index
    %33 = vector.load %arg8[%c0_51, %c9] : memref<1x296xf32, #tpu.memory_space<vmem>>, vector<1x276xf32>
    %c9_52 = arith.constant 9 : index
    %c0_53 = arith.constant 0 : index
    %34 = vector.load %arg11[%c9_52, %c0_53] : memref<21x276xf32, #tpu.memory_space<vmem>>, vector<1x276xf32>
    tpu.vector_store %arg11[%c9_52, %c0_53], %33 {strides = array<i32>} : memref<21x276xf32, #tpu.memory_space<vmem>>, vector<1x276xf32>,
    %c0_54 = arith.constant 0 : index
    %c10 = arith.constant 10 : index
    %35 = vector.load %arg8[%c0_54, %c10] : memref<1x296xf32, #tpu.memory_space<vmem>>, vector<1x276xf32>
    %c10_55 = arith.constant 10 : index
    %c0_56 = arith.constant 0 : index
    %36 = vector.load %arg11[%c10_55, %c0_56] : memref<21x276xf32, #tpu.memory_space<vmem>>, vector<1x276xf32>
    tpu.vector_store %arg11[%c10_55, %c0_56], %35 {strides = array<i32>} : memref<21x276xf32, #tpu.memory_space<vmem>>, vector<1x276xf32>,
    %c0_57 = arith.constant 0 : index
    %c11 = arith.constant 11 : index
    %37 = vector.load %arg8[%c0_57, %c11] : memref<1x296xf32, #tpu.memory_space<vmem>>, vector<1x276xf32>
    %c11_58 = arith.constant 11 : index
    %c0_59 = arith.constant 0 : index
    %38 = vector.load %arg11[%c11_58, %c0_59] : memref<21x276xf32, #tpu.memory_space<vmem>>, vector<1x276xf32>
    tpu.vector_store %arg11[%c11_58, %c0_59], %37 {strides = array<i32>} : memref<21x276xf32, #tpu.memory_space<vmem>>, vector<1x276xf32>,
    %c0_60 = arith.constant 0 : index
    %c12 = arith.constant 12 : index
    %39 = vector.load %arg8[%c0_60, %c12] : memref<1x296xf32, #tpu.memory_space<vmem>>, vector<1x276xf32>
    %c12_61 = arith.constant 12 : index
    %c0_62 = arith.constant 0 : index
    %40 = vector.load %arg11[%c12_61, %c0_62] : memref<21x276xf32, #tpu.memory_space<vmem>>, vector<1x276xf32>
    tpu.vector_store %arg11[%c12_61, %c0_62], %39 {strides = array<i32>} : memref<21x276xf32, #tpu.memory_space<vmem>>, vector<1x276xf32>,
    %c0_63 = arith.constant 0 : index
    %c13 = arith.constant 13 : index
    %41 = vector.load %arg8[%c0_63, %c13] : memref<1x296xf32, #tpu.memory_space<vmem>>, vector<1x276xf32>
    %c13_64 = arith.constant 13 : index
    %c0_65 = arith.constant 0 : index
    %42 = vector.load %arg11[%c13_64, %c0_65] : memref<21x276xf32, #tpu.memory_space<vmem>>, vector<1x276xf32>
    tpu.vector_store %arg11[%c13_64, %c0_65], %41 {strides = array<i32>} : memref<21x276xf32, #tpu.memory_space<vmem>>, vector<1x276xf32>,
    %c0_66 = arith.constant 0 : index
    %c14 = arith.constant 14 : index
    %43 = vector.load %arg8[%c0_66, %c14] : memref<1x296xf32, #tpu.memory_space<vmem>>, vector<1x276xf32>
    %c14_67 = arith.constant 14 : index
    %c0_68 = arith.constant 0 : index
    %44 = vector.load %arg11[%c14_67, %c0_68] : memref<21x276xf32, #tpu.memory_space<vmem>>, vector<1x276xf32>
    tpu.vector_store %arg11[%c14_67, %c0_68], %43 {strides = array<i32>} : memref<21x276xf32, #tpu.memory_space<vmem>>, vector<1x276xf32>,
    %c0_69 = arith.constant 0 : index
    %c15_70 = arith.constant 15 : index
    %45 = vector.load %arg8[%c0_69, %c15_70] : memref<1x296xf32, #tpu.memory_space<vmem>>, vector<1x276xf32>
    %c15_71 = arith.constant 15 : index
    %c0_72 = arith.constant 0 : index
    %46 = vector.load %arg11[%c15_71, %c0_72] : memref<21x276xf32, #tpu.memory_space<vmem>>, vector<1x276xf32>
    tpu.vector_store %arg11[%c15_71, %c0_72], %45 {strides = array<i32>} : memref<21x276xf32, #tpu.memory_space<vmem>>, vector<1x276xf32>,
    %c0_73 = arith.constant 0 : index
    %c16 = arith.constant 16 : index
    %47 = vector.load %arg8[%c0_73, %c16] : memref<1x296xf32, #tpu.memory_space<vmem>>, vector<1x276xf32>
    %c16_74 = arith.constant 16 : index
    %c0_75 = arith.constant 0 : index
    %48 = vector.load %arg11[%c16_74, %c0_75] : memref<21x276xf32, #tpu.memory_space<vmem>>, vector<1x276xf32>
    tpu.vector_store %arg11[%c16_74, %c0_75], %47 {strides = array<i32>} : memref<21x276xf32, #tpu.memory_space<vmem>>, vector<1x276xf32>,
    %c0_76 = arith.constant 0 : index
    %c17 = arith.constant 17 : index
    %49 = vector.load %arg8[%c0_76, %c17] : memref<1x296xf32, #tpu.memory_space<vmem>>, vector<1x276xf32>
    %c17_77 = arith.constant 17 : index
    %c0_78 = arith.constant 0 : index
    %50 = vector.load %arg11[%c17_77, %c0_78] : memref<21x276xf32, #tpu.memory_space<vmem>>, vector<1x276xf32>
    tpu.vector_store %arg11[%c17_77, %c0_78], %49 {strides = array<i32>} : memref<21x276xf32, #tpu.memory_space<vmem>>, vector<1x276xf32>,
    %c0_79 = arith.constant 0 : index
    %c18 = arith.constant 18 : index
    %51 = vector.load %arg8[%c0_79, %c18] : memref<1x296xf32, #tpu.memory_space<vmem>>, vector<1x276xf32>
    %c18_80 = arith.constant 18 : index
    %c0_81 = arith.constant 0 : index
    %52 = vector.load %arg11[%c18_80, %c0_81] : memref<21x276xf32, #tpu.memory_space<vmem>>, vector<1x276xf32>
    tpu.vector_store %arg11[%c18_80, %c0_81], %51 {strides = array<i32>} : memref<21x276xf32, #tpu.memory_space<vmem>>, vector<1x276xf32>,
    %c0_82 = arith.constant 0 : index
    %c19 = arith.constant 19 : index
    %53 = vector.load %arg8[%c0_82, %c19] : memref<1x296xf32, #tpu.memory_space<vmem>>, vector<1x276xf32>
    %c19_83 = arith.constant 19 : index
    %c0_84 = arith.constant 0 : index
    %54 = vector.load %arg11[%c19_83, %c0_84] : memref<21x276xf32, #tpu.memory_space<vmem>>, vector<1x276xf32>
    tpu.vector_store %arg11[%c19_83, %c0_84], %53 {strides = array<i32>} : memref<21x276xf32, #tpu.memory_space<vmem>>, vector<1x276xf32>,
    %c0_85 = arith.constant 0 : index
    %c20 = arith.constant 20 : index
    %55 = vector.load %arg8[%c0_85, %c20] : memref<1x296xf32, #tpu.memory_space<vmem>>, vector<1x276xf32>
    %c20_86 = arith.constant 20 : index
    %c0_87 = arith.constant 0 : index
    %56 = vector.load %arg11[%c20_86, %c0_87] : memref<21x276xf32, #tpu.memory_space<vmem>>, vector<1x276xf32>
    tpu.vector_store %arg11[%c20_86, %c0_87], %55 {strides = array<i32>} : memref<21x276xf32, #tpu.memory_space<vmem>>, vector<1x276xf32>,
    %c0_88 = arith.constant 0 : index
    %c0_89 = arith.constant 0 : index
    %57 = vector.load %arg1[%c0_88, %c0_89] : memref<16x656xf32, #tpu.memory_space<vmem>>, vector<8x21xf32>
    %c0_90 = arith.constant 0 : index
    %c0_91 = arith.constant 0 : index
    %58 = vector.load %arg11[%c0_90, %c0_91] : memref<21x276xf32, #tpu.memory_space<vmem>>, vector<21x276xf32>
    %cst_92 = arith.constant dense<0.000000e+00> : vector<8x276xf32>
    %59 = tpu.matmul %57, %58, %cst_92 {dimension_numbers = #tpu.dot_dimension_numbers<[1], [0], [0], [1], [0, 0, 1, 1], [], []>, precision = #tpu.contract_precision<fp32>} : vector<8x21xf32>, vector<21x276xf32>, vector<8x276xf32> -> vector<8x276xf32>
    %60 = vector.broadcast %0 : vector<8x1xf32> to vector<8x276xf32>
    %61 = arith.addf %59, %60 : vector<8x276xf32>
    %cst_93 = arith.constant 0.000000e+00 : f32
    %62 = vector.broadcast %cst_93 : f32 to vector<8x276xf32>
    %63 = arith.maximumf %61, %62 : vector<8x276xf32>
    %cst_94 = arith.constant 0.000000e+00 : f32
    %64 = vector.broadcast %cst_94 : f32 to vector<8x276xf32>
    %65 = arith.minimumf %61, %64 : vector<8x276xf32>
    %66 = vector.broadcast %3 : vector<1x1xf32> to vector<8x276xf32>
    %67 = arith.mulf %66, %65 : vector<8x276xf32>
    %68 = arith.addf %63, %67 : vector<8x276xf32>
    %cst_95 = arith.constant 0.000000e+00 : f32
    %69 = vector.broadcast %cst_95 : f32 to vector<8x276xf32>
    %c0_96 = arith.constant 0 : index
    %c0_97 = arith.constant 0 : index
    %70 = vector.load %arg9[%c0_96, %c0_97] : memref<8x276xf32, #tpu.memory_space<vmem>>, vector<8x276xf32>
    tpu.vector_store %arg9[%c0_96, %c0_97], %69 {strides = array<i32>} : memref<8x276xf32, #tpu.memory_space<vmem>>, vector<8x276xf32>,
    %71 = vector.extract_strided_slice %68 {offsets = [0, 5], sizes = [8, 128], strides = [1, 1]} : vector<8x276xf32> to vector<8x128xf32>
    %c0_98 = arith.constant 0 : index
    %c5_99 = arith.constant 5 : index
    %72 = vector.load %arg9[%c0_98, %c5_99] : memref<8x276xf32, #tpu.memory_space<vmem>>, vector<8x128xf32>
    tpu.vector_store %arg9[%c0_98, %c5_99], %71 {strides = array<i32>} : memref<8x276xf32, #tpu.memory_space<vmem>>, vector<8x128xf32>,
    %73 = vector.extract_strided_slice %68 {offsets = [0, 143], sizes = [8, 128], strides = [1, 1]} : vector<8x276xf32> to vector<8x128xf32>
    %c0_100 = arith.constant 0 : index
    %c143 = arith.constant 143 : index
    %74 = vector.load %arg9[%c0_100, %c143] : memref<8x276xf32, #tpu.memory_space<vmem>>, vector<8x128xf32>
    tpu.vector_store %arg9[%c0_100, %c143], %73 {strides = array<i32>} : memref<8x276xf32, #tpu.memory_space<vmem>>, vector<8x128xf32>,
    %c0_101 = arith.constant 0 : index
    %c0_102 = arith.constant 0 : index
    %75 = vector.load %arg9[%c0_101, %c0_102] : memref<8x276xf32, #tpu.memory_space<vmem>>, vector<8x266xf32>
    %c0_103 = arith.constant 0 : index
    %c0_104 = arith.constant 0 : index
    %76 = vector.load %arg12[%c0_103, %c0_104] : memref<88x266xf32, #tpu.memory_space<vmem>>, vector<8x266xf32>
    tpu.vector_store %arg12[%c0_103, %c0_104], %75 {strides = array<i32>} : memref<88x266xf32, #tpu.memory_space<vmem>>, vector<8x266xf32>,
    %c0_105 = arith.constant 0 : index
    %c1_106 = arith.constant 1 : index
    %77 = vector.load %arg9[%c0_105, %c1_106] : memref<8x276xf32, #tpu.memory_space<vmem>>, vector<8x266xf32>
    %c8_107 = arith.constant 8 : index
    %c0_108 = arith.constant 0 : index
    %78 = vector.load %arg12[%c8_107, %c0_108] : memref<88x266xf32, #tpu.memory_space<vmem>>, vector<8x266xf32>
    tpu.vector_store %arg12[%c8_107, %c0_108], %77 {strides = array<i32>} : memref<88x266xf32, #tpu.memory_space<vmem>>, vector<8x266xf32>,
    %c0_109 = arith.constant 0 : index
    %c2_110 = arith.constant 2 : index
    %79 = vector.load %arg9[%c0_109, %c2_110] : memref<8x276xf32, #tpu.memory_space<vmem>>, vector<8x266xf32>
    %c16_111 = arith.constant 16 : index
    %c0_112 = arith.constant 0 : index
    %80 = vector.load %arg12[%c16_111, %c0_112] : memref<88x266xf32, #tpu.memory_space<vmem>>, vector<8x266xf32>
    tpu.vector_store %arg12[%c16_111, %c0_112], %79 {strides = array<i32>} : memref<88x266xf32, #tpu.memory_space<vmem>>, vector<8x266xf32>,
    %c0_113 = arith.constant 0 : index
    %c3_114 = arith.constant 3 : index
    %81 = vector.load %arg9[%c0_113, %c3_114] : memref<8x276xf32, #tpu.memory_space<vmem>>, vector<8x266xf32>
    %c24 = arith.constant 24 : index
    %c0_115 = arith.constant 0 : index
    %82 = vector.load %arg12[%c24, %c0_115] : memref<88x266xf32, #tpu.memory_space<vmem>>, vector<8x266xf32>
    tpu.vector_store %arg12[%c24, %c0_115], %81 {strides = array<i32>} : memref<88x266xf32, #tpu.memory_space<vmem>>, vector<8x266xf32>,
    %c0_116 = arith.constant 0 : index
    %c4_117 = arith.constant 4 : index
    %83 = vector.load %arg9[%c0_116, %c4_117] : memref<8x276xf32, #tpu.memory_space<vmem>>, vector<8x266xf32>
    %c32 = arith.constant 32 : index
    %c0_118 = arith.constant 0 : index
    %84 = vector.load %arg12[%c32, %c0_118] : memref<88x266xf32, #tpu.memory_space<vmem>>, vector<8x266xf32>
    tpu.vector_store %arg12[%c32, %c0_118], %83 {strides = array<i32>} : memref<88x266xf32, #tpu.memory_space<vmem>>, vector<8x266xf32>,
    %c0_119 = arith.constant 0 : index
    %c5_120 = arith.constant 5 : index
    %85 = vector.load %arg9[%c0_119, %c5_120] : memref<8x276xf32, #tpu.memory_space<vmem>>, vector<8x266xf32>
    %c40 = arith.constant 40 : index
    %c0_121 = arith.constant 0 : index
    %86 = vector.load %arg12[%c40, %c0_121] : memref<88x266xf32, #tpu.memory_space<vmem>>, vector<8x266xf32>
    tpu.vector_store %arg12[%c40, %c0_121], %85 {strides = array<i32>} : memref<88x266xf32, #tpu.memory_space<vmem>>, vector<8x266xf32>,
    %c0_122 = arith.constant 0 : index
    %c6_123 = arith.constant 6 : index
    %87 = vector.load %arg9[%c0_122, %c6_123] : memref<8x276xf32, #tpu.memory_space<vmem>>, vector<8x266xf32>
    %c48 = arith.constant 48 : index
    %c0_124 = arith.constant 0 : index
    %88 = vector.load %arg12[%c48, %c0_124] : memref<88x266xf32, #tpu.memory_space<vmem>>, vector<8x266xf32>
    tpu.vector_store %arg12[%c48, %c0_124], %87 {strides = array<i32>} : memref<88x266xf32, #tpu.memory_space<vmem>>, vector<8x266xf32>,
    %c0_125 = arith.constant 0 : index
    %c7_126 = arith.constant 7 : index
    %89 = vector.load %arg9[%c0_125, %c7_126] : memref<8x276xf32, #tpu.memory_space<vmem>>, vector<8x266xf32>
    %c56 = arith.constant 56 : index
    %c0_127 = arith.constant 0 : index
    %90 = vector.load %arg12[%c56, %c0_127] : memref<88x266xf32, #tpu.memory_space<vmem>>, vector<8x266xf32>
    tpu.vector_store %arg12[%c56, %c0_127], %89 {strides = array<i32>} : memref<88x266xf32, #tpu.memory_space<vmem>>, vector<8x266xf32>,
    %c0_128 = arith.constant 0 : index
    %c8_129 = arith.constant 8 : index
    %91 = vector.load %arg9[%c0_128, %c8_129] : memref<8x276xf32, #tpu.memory_space<vmem>>, vector<8x266xf32>
    %c64 = arith.constant 64 : index
    %c0_130 = arith.constant 0 : index
    %92 = vector.load %arg12[%c64, %c0_130] : memref<88x266xf32, #tpu.memory_space<vmem>>, vector<8x266xf32>
    tpu.vector_store %arg12[%c64, %c0_130], %91 {strides = array<i32>} : memref<88x266xf32, #tpu.memory_space<vmem>>, vector<8x266xf32>,
    %c0_131 = arith.constant 0 : index
    %c9_132 = arith.constant 9 : index
    %93 = vector.load %arg9[%c0_131, %c9_132] : memref<8x276xf32, #tpu.memory_space<vmem>>, vector<8x266xf32>
    %c72 = arith.constant 72 : index
    %c0_133 = arith.constant 0 : index
    %94 = vector.load %arg12[%c72, %c0_133] : memref<88x266xf32, #tpu.memory_space<vmem>>, vector<8x266xf32>
    tpu.vector_store %arg12[%c72, %c0_133], %93 {strides = array<i32>} : memref<88x266xf32, #tpu.memory_space<vmem>>, vector<8x266xf32>,
    %c0_134 = arith.constant 0 : index
    %c10_135 = arith.constant 10 : index
    %95 = vector.load %arg9[%c0_134, %c10_135] : memref<8x276xf32, #tpu.memory_space<vmem>>, vector<8x266xf32>
    %c80 = arith.constant 80 : index
    %c0_136 = arith.constant 0 : index
    %96 = vector.load %arg12[%c80, %c0_136] : memref<88x266xf32, #tpu.memory_space<vmem>>, vector<8x266xf32>
    tpu.vector_store %arg12[%c80, %c0_136], %95 {strides = array<i32>} : memref<88x266xf32, #tpu.memory_space<vmem>>, vector<8x266xf32>,
    %c0_137 = arith.constant 0 : index
    %c128 = arith.constant 128 : index
    %97 = vector.load %arg1[%c0_137, %c128] : memref<16x656xf32, #tpu.memory_space<vmem>>, vector<16x88xf32>
    %c0_138 = arith.constant 0 : index
    %c0_139 = arith.constant 0 : index
    %98 = vector.load %arg12[%c0_138, %c0_139] : memref<88x266xf32, #tpu.memory_space<vmem>>, vector<88x266xf32>
    %cst_140 = arith.constant dense<0.000000e+00> : vector<16x266xf32>
    %99 = tpu.matmul %97, %98, %cst_140 {dimension_numbers = #tpu.dot_dimension_numbers<[1], [0], [0], [1], [0, 0, 1, 1], [], []>, precision = #tpu.contract_precision<fp32>} : vector<16x88xf32>, vector<88x266xf32>, vector<16x266xf32> -> vector<16x266xf32>
    %100 = vector.broadcast %1 : vector<16x1xf32> to vector<16x266xf32>
    %101 = arith.addf %99, %100 : vector<16x266xf32>
    %cst_141 = arith.constant 0.000000e+00 : f32
    %102 = vector.broadcast %cst_141 : f32 to vector<16x266xf32>
    %103 = arith.maximumf %101, %102 : vector<16x266xf32>
    %cst_142 = arith.constant 0.000000e+00 : f32
    %104 = vector.broadcast %cst_142 : f32 to vector<16x266xf32>
    %105 = arith.minimumf %101, %104 : vector<16x266xf32>
    %106 = vector.broadcast %4 : vector<1x1xf32> to vector<16x266xf32>
    %107 = arith.mulf %106, %105 : vector<16x266xf32>
    %108 = arith.addf %103, %107 : vector<16x266xf32>
    %c0_143 = arith.constant 0 : index
    %c0_144 = arith.constant 0 : index
    %109 = vector.load %arg4[%c0_143, %c0_144] : memref<266x88xf32, #tpu.memory_space<vmem>>, vector<266x88xf32>
    %cst_145 = arith.constant dense<0.000000e+00> : vector<16x88xf32>
    %110 = tpu.matmul %108, %109, %cst_145 {dimension_numbers = #tpu.dot_dimension_numbers<[1], [0], [0], [1], [0, 0, 1, 1], [], []>, precision = #tpu.contract_precision<fp32>} : vector<16x266xf32>, vector<266x88xf32>, vector<16x88xf32> -> vector<16x88xf32>
    %c0_146 = arith.constant 0 : index
    %c0_147 = arith.constant 0 : index
    %111 = vector.load %arg10[%c0_146, %c0_147] : memref<16x88xf32, #tpu.memory_space<vmem>>, vector<16x88xf32>
    tpu.vector_store %arg10[%c0_146, %c0_147], %110 {strides = array<i32>} : memref<16x88xf32, #tpu.memory_space<vmem>>, vector<16x88xf32>,
    %c0_148 = arith.constant 0 : index
    %c0_149 = arith.constant 0 : index
    %112 = vector.load %arg10[%c0_148, %c0_149] : memref<16x88xf32, #tpu.memory_space<vmem>>, vector<16x72xf32>
    %c0_150 = arith.constant 0 : index
    %c0_151 = arith.constant 0 : index
    %113 = vector.load %arg13[%c0_150, %c0_151] : memref<272x72xf32, #tpu.memory_space<vmem>>, vector<16x72xf32>
    tpu.vector_store %arg13[%c0_150, %c0_151], %112 {strides = array<i32>} : memref<272x72xf32, #tpu.memory_space<vmem>>, vector<16x72xf32>,
    %c0_152 = arith.constant 0 : index
    %c1_153 = arith.constant 1 : index
    %114 = vector.load %arg10[%c0_152, %c1_153] : memref<16x88xf32, #tpu.memory_space<vmem>>, vector<16x72xf32>
    %c16_154 = arith.constant 16 : index
    %c0_155 = arith.constant 0 : index
    %115 = vector.load %arg13[%c16_154, %c0_155] : memref<272x72xf32, #tpu.memory_space<vmem>>, vector<16x72xf32>
    tpu.vector_store %arg13[%c16_154, %c0_155], %114 {strides = array<i32>} : memref<272x72xf32, #tpu.memory_space<vmem>>, vector<16x72xf32>,
    %c0_156 = arith.constant 0 : index
    %c2_157 = arith.constant 2 : index
    %116 = vector.load %arg10[%c0_156, %c2_157] : memref<16x88xf32, #tpu.memory_space<vmem>>, vector<16x72xf32>
    %c32_158 = arith.constant 32 : index
    %c0_159 = arith.constant 0 : index
    %117 = vector.load %arg13[%c32_158, %c0_159] : memref<272x72xf32, #tpu.memory_space<vmem>>, vector<16x72xf32>
    tpu.vector_store %arg13[%c32_158, %c0_159], %116 {strides = array<i32>} : memref<272x72xf32, #tpu.memory_space<vmem>>, vector<16x72xf32>,
    %c0_160 = arith.constant 0 : index
    %c3_161 = arith.constant 3 : index
    %118 = vector.load %arg10[%c0_160, %c3_161] : memref<16x88xf32, #tpu.memory_space<vmem>>, vector<16x72xf32>
    %c48_162 = arith.constant 48 : index
    %c0_163 = arith.constant 0 : index
    %119 = vector.load %arg13[%c48_162, %c0_163] : memref<272x72xf32, #tpu.memory_space<vmem>>, vector<16x72xf32>
    tpu.vector_store %arg13[%c48_162, %c0_163], %118 {strides = array<i32>} : memref<272x72xf32, #tpu.memory_space<vmem>>, vector<16x72xf32>,
    %c0_164 = arith.constant 0 : index
    %c4_165 = arith.constant 4 : index
    %120 = vector.load %arg10[%c0_164, %c4_165] : memref<16x88xf32, #tpu.memory_space<vmem>>, vector<16x72xf32>
    %c64_166 = arith.constant 64 : index
    %c0_167 = arith.constant 0 : index
    %121 = vector.load %arg13[%c64_166, %c0_167] : memref<272x72xf32, #tpu.memory_space<vmem>>, vector<16x72xf32>
    tpu.vector_store %arg13[%c64_166, %c0_167], %120 {strides = array<i32>} : memref<272x72xf32, #tpu.memory_space<vmem>>, vector<16x72xf32>,
    %c0_168 = arith.constant 0 : index
    %c5_169 = arith.constant 5 : index
    %122 = vector.load %arg10[%c0_168, %c5_169] : memref<16x88xf32, #tpu.memory_space<vmem>>, vector<16x72xf32>
    %c80_170 = arith.constant 80 : index
    %c0_171 = arith.constant 0 : index
    %123 = vector.load %arg13[%c80_170, %c0_171] : memref<272x72xf32, #tpu.memory_space<vmem>>, vector<16x72xf32>
    tpu.vector_store %arg13[%c80_170, %c0_171], %122 {strides = array<i32>} : memref<272x72xf32, #tpu.memory_space<vmem>>, vector<16x72xf32>,
    %c0_172 = arith.constant 0 : index
    %c6_173 = arith.constant 6 : index
    %124 = vector.load %arg10[%c0_172, %c6_173] : memref<16x88xf32, #tpu.memory_space<vmem>>, vector<16x72xf32>
    %c96 = arith.constant 96 : index
    %c0_174 = arith.constant 0 : index
    %125 = vector.load %arg13[%c96, %c0_174] : memref<272x72xf32, #tpu.memory_space<vmem>>, vector<16x72xf32>
    tpu.vector_store %arg13[%c96, %c0_174], %124 {strides = array<i32>} : memref<272x72xf32, #tpu.memory_space<vmem>>, vector<16x72xf32>,
    %c0_175 = arith.constant 0 : index
    %c7_176 = arith.constant 7 : index
    %126 = vector.load %arg10[%c0_175, %c7_176] : memref<16x88xf32, #tpu.memory_space<vmem>>, vector<16x72xf32>
    %c112 = arith.constant 112 : index
    %c0_177 = arith.constant 0 : index
    %127 = vector.load %arg13[%c112, %c0_177] : memref<272x72xf32, #tpu.memory_space<vmem>>, vector<16x72xf32>
    tpu.vector_store %arg13[%c112, %c0_177], %126 {strides = array<i32>} : memref<272x72xf32, #tpu.memory_space<vmem>>, vector<16x72xf32>,
    %c0_178 = arith.constant 0 : index
    %c8_179 = arith.constant 8 : index
    %128 = vector.load %arg10[%c0_178, %c8_179] : memref<16x88xf32, #tpu.memory_space<vmem>>, vector<16x72xf32>
    %c128_180 = arith.constant 128 : index
    %c0_181 = arith.constant 0 : index
    %129 = vector.load %arg13[%c128_180, %c0_181] : memref<272x72xf32, #tpu.memory_space<vmem>>, vector<16x72xf32>
    tpu.vector_store %arg13[%c128_180, %c0_181], %128 {strides = array<i32>} : memref<272x72xf32, #tpu.memory_space<vmem>>, vector<16x72xf32>,
    %c0_182 = arith.constant 0 : index
    %c9_183 = arith.constant 9 : index
    %130 = vector.load %arg10[%c0_182, %c9_183] : memref<16x88xf32, #tpu.memory_space<vmem>>, vector<16x72xf32>
    %c144 = arith.constant 144 : index
    %c0_184 = arith.constant 0 : index
    %131 = vector.load %arg13[%c144, %c0_184] : memref<272x72xf32, #tpu.memory_space<vmem>>, vector<16x72xf32>
    tpu.vector_store %arg13[%c144, %c0_184], %130 {strides = array<i32>} : memref<272x72xf32, #tpu.memory_space<vmem>>, vector<16x72xf32>,
    %c0_185 = arith.constant 0 : index
    %c10_186 = arith.constant 10 : index
    %132 = vector.load %arg10[%c0_185, %c10_186] : memref<16x88xf32, #tpu.memory_space<vmem>>, vector<16x72xf32>
    %c160 = arith.constant 160 : index
    %c0_187 = arith.constant 0 : index
    %133 = vector.load %arg13[%c160, %c0_187] : memref<272x72xf32, #tpu.memory_space<vmem>>, vector<16x72xf32>
    tpu.vector_store %arg13[%c160, %c0_187], %132 {strides = array<i32>} : memref<272x72xf32, #tpu.memory_space<vmem>>, vector<16x72xf32>,
    %c0_188 = arith.constant 0 : index
    %c11_189 = arith.constant 11 : index
    %134 = vector.load %arg10[%c0_188, %c11_189] : memref<16x88xf32, #tpu.memory_space<vmem>>, vector<16x72xf32>
    %c176 = arith.constant 176 : index
    %c0_190 = arith.constant 0 : index
    %135 = vector.load %arg13[%c176, %c0_190] : memref<272x72xf32, #tpu.memory_space<vmem>>, vector<16x72xf32>
    tpu.vector_store %arg13[%c176, %c0_190], %134 {strides = array<i32>} : memref<272x72xf32, #tpu.memory_space<vmem>>, vector<16x72xf32>,
    %c0_191 = arith.constant 0 : index
    %c12_192 = arith.constant 12 : index
    %136 = vector.load %arg10[%c0_191, %c12_192] : memref<16x88xf32, #tpu.memory_space<vmem>>, vector<16x72xf32>
    %c192 = arith.constant 192 : index
    %c0_193 = arith.constant 0 : index
    %137 = vector.load %arg13[%c192, %c0_193] : memref<272x72xf32, #tpu.memory_space<vmem>>, vector<16x72xf32>
    tpu.vector_store %arg13[%c192, %c0_193], %136 {strides = array<i32>} : memref<272x72xf32, #tpu.memory_space<vmem>>, vector<16x72xf32>,
    %c0_194 = arith.constant 0 : index
    %c13_195 = arith.constant 13 : index
    %138 = vector.load %arg10[%c0_194, %c13_195] : memref<16x88xf32, #tpu.memory_space<vmem>>, vector<16x72xf32>
    %c208 = arith.constant 208 : index
    %c0_196 = arith.constant 0 : index
    %139 = vector.load %arg13[%c208, %c0_196] : memref<272x72xf32, #tpu.memory_space<vmem>>, vector<16x72xf32>
    tpu.vector_store %arg13[%c208, %c0_196], %138 {strides = array<i32>} : memref<272x72xf32, #tpu.memory_space<vmem>>, vector<16x72xf32>,
    %c0_197 = arith.constant 0 : index
    %c14_198 = arith.constant 14 : index
    %140 = vector.load %arg10[%c0_197, %c14_198] : memref<16x88xf32, #tpu.memory_space<vmem>>, vector<16x72xf32>
    %c224 = arith.constant 224 : index
    %c0_199 = arith.constant 0 : index
    %141 = vector.load %arg13[%c224, %c0_199] : memref<272x72xf32, #tpu.memory_space<vmem>>, vector<16x72xf32>
    tpu.vector_store %arg13[%c224, %c0_199], %140 {strides = array<i32>} : memref<272x72xf32, #tpu.memory_space<vmem>>, vector<16x72xf32>,
    %c0_200 = arith.constant 0 : index
    %c15_201 = arith.constant 15 : index
    %142 = vector.load %arg10[%c0_200, %c15_201] : memref<16x88xf32, #tpu.memory_space<vmem>>, vector<16x72xf32>
    %c240 = arith.constant 240 : index
    %c0_202 = arith.constant 0 : index
    %143 = vector.load %arg13[%c240, %c0_202] : memref<272x72xf32, #tpu.memory_space<vmem>>, vector<16x72xf32>
    tpu.vector_store %arg13[%c240, %c0_202], %142 {strides = array<i32>} : memref<272x72xf32, #tpu.memory_space<vmem>>, vector<16x72xf32>,
    %c0_203 = arith.constant 0 : index
    %c16_204 = arith.constant 16 : index
    %144 = vector.load %arg10[%c0_203, %c16_204] : memref<16x88xf32, #tpu.memory_space<vmem>>, vector<16x72xf32>
    %c256 = arith.constant 256 : index
    %c0_205 = arith.constant 0 : index
    %145 = vector.load %arg13[%c256, %c0_205] : memref<272x72xf32, #tpu.memory_space<vmem>>, vector<16x72xf32>
    tpu.vector_store %arg13[%c256, %c0_205], %144 {strides = array<i32>} : memref<272x72xf32, #tpu.memory_space<vmem>>, vector<16x72xf32>,
    %c0_206 = arith.constant 0 : index
    %c256_207 = arith.constant 256 : index
    %146 = vector.load %arg1[%c0_206, %c256_207] : memref<16x656xf32, #tpu.memory_space<vmem>>, vector<16x272xf32>
    %c0_208 = arith.constant 0 : index
    %c0_209 = arith.constant 0 : index
    %147 = vector.load %arg13[%c0_208, %c0_209] : memref<272x72xf32, #tpu.memory_space<vmem>>, vector<272x72xf32>
    %cst_210 = arith.constant dense<0.000000e+00> : vector<16x72xf32>
    %148 = tpu.matmul %146, %147, %cst_210 {dimension_numbers = #tpu.dot_dimension_numbers<[1], [0], [0], [1], [0, 0, 1, 1], [], []>, precision = #tpu.contract_precision<fp32>} : vector<16x272xf32>, vector<272x72xf32>, vector<16x72xf32> -> vector<16x72xf32>
    %c0_211 = arith.constant 0 : index
    %c640 = arith.constant 640 : index
    %149 = vector.load %arg1[%c0_211, %c640] : memref<16x656xf32, #tpu.memory_space<vmem>>, vector<16x16xf32>
    %cst_212 = arith.constant dense<0.000000e+00> : vector<16x72xf32>
    %150 = tpu.matmul %149, %148, %cst_212 {dimension_numbers = #tpu.dot_dimension_numbers<[1], [0], [0], [1], [0, 0, 1, 1], [], []>, precision = #tpu.contract_precision<fp32>} : vector<16x16xf32>, vector<16x72xf32>, vector<16x72xf32> -> vector<16x72xf32>
    %151 = vector.broadcast %2 : vector<16x1xf32> to vector<16x72xf32>
    %152 = arith.addf %150, %151 : vector<16x72xf32>
    %cst_213 = arith.constant 0.000000e+00 : f32
    %153 = vector.broadcast %cst_213 : f32 to vector<16x72xf32>
    %154 = arith.maximumf %152, %153 : vector<16x72xf32>
    %cst_214 = arith.constant 0.000000e+00 : f32
    %155 = vector.broadcast %cst_214 : f32 to vector<16x72xf32>
    %156 = arith.minimumf %152, %155 : vector<16x72xf32>
    %157 = vector.broadcast %5 : vector<1x1xf32> to vector<16x72xf32>
    %158 = arith.mulf %157, %156 : vector<16x72xf32>
    %159 = arith.addf %154, %158 : vector<16x72xf32>
    %c0_215 = arith.constant 0 : index
    %c0_216 = arith.constant 0 : index
    %160 = vector.load %arg5[%c0_215, %c0_216] : memref<72x8xf32, #tpu.memory_space<vmem>>, vector<72x8xf32>
    %cst_217 = arith.constant dense<0.000000e+00> : vector<16x8xf32>
    %161 = tpu.matmul %159, %160, %cst_217 {dimension_numbers = #tpu.dot_dimension_numbers<[1], [0], [0], [1], [0, 0, 1, 1], [], []>, precision = #tpu.contract_precision<fp32>} : vector<16x72xf32>, vector<72x8xf32>, vector<16x8xf32> -> vector<16x8xf32>
    %c0_218 = arith.constant 0 : index
    %c0_219 = arith.constant 0 : index
    %162 = vector.load %arg6[%c0_218, %c0_219] : memref<16x8xf32, #tpu.memory_space<vmem>>, vector<16x8xf32>
    tpu.vector_store %arg6[%c0_218, %c0_219], %161 {strides = array<i32>} : memref<16x8xf32, #tpu.memory_space<vmem>>, vector<16x8xf32>,
    %163 = vector.extract_strided_slice %161 {offsets = [0, 0], sizes = [16, 4], strides = [1, 1]} : vector<16x8xf32> to vector<16x4xf32>
    %c0_220 = arith.constant 0 : index
    %c0_221 = arith.constant 0 : index
    %c0_222 = arith.constant 0 : index
    %164 = vector.load %arg3[%c0_220, %c0_221, %c0_222] : memref<2x16x4xf32, #tpu.memory_space<vmem>>, vector<2x16x4xf32>
    %165 = vector.shape_cast %163 : vector<16x4xf32> to vector<1x16x4xf32>
    %166 = vector.broadcast %165 : vector<1x16x4xf32> to vector<2x16x4xf32>
    %167 = arith.mulf %164, %166 : vector<2x16x4xf32>
    %cst_223 = arith.constant dense<0.000000e+00> : vector<2x16xf32>
    %168 = vector.multi_reduction <add>, %167, %cst_223 [2] : vector<2x16x4xf32> to vector<2x16xf32>
    %cst_224 = arith.constant dense<0.000000e+00> : vector<2xf32>
    %169 = vector.multi_reduction <add>, %168, %cst_224 [1] : vector<2x16xf32> to vector<2xf32>
    %170 = vector.shape_cast %169 : vector<2xf32> to vector<2x1xf32>
    %171 = arith.addf %170, %6 : vector<2x1xf32>
    %cst_225 = arith.constant dense<0xFF800000> : vector<1xf32>
    %172 = vector.multi_reduction <maximumf>, %171, %cst_225 [0] : vector<2x1xf32> to vector<1xf32>
    %173 = vector.shape_cast %172 : vector<1xf32> to vector<1x1xf32>
    %174 = vector.broadcast %173 : vector<1x1xf32> to vector<2x1xf32>
    %175 = arith.subf %171, %174 : vector<2x1xf32>
    %176 = math.exp %175 : vector<2x1xf32>
    %cst_226 = arith.constant dense<0.000000e+00> : vector<1xf32>
    %177 = vector.multi_reduction <add>, %176, %cst_226 [0] : vector<2x1xf32> to vector<1xf32>
    %178 = vector.shape_cast %177 : vector<1xf32> to vector<1x1xf32>
    %179 = vector.broadcast %178 : vector<1x1xf32> to vector<2x1xf32>
    %180 = arith.divf %176, %179 : vector<2x1xf32>
    %181 = vector.extract_strided_slice %161 {offsets = [0, 4], sizes = [16, 4], strides = [1, 1]} : vector<16x8xf32> to vector<16x4xf32>
    %c0_227 = arith.constant 0 : index
    %c0_228 = arith.constant 0 : index
    %c0_229 = arith.constant 0 : index
    %182 = vector.load %arg3[%c0_227, %c0_228, %c0_229] : memref<2x16x4xf32, #tpu.memory_space<vmem>>, vector<2x16x4xf32>
    %183 = vector.shape_cast %181 : vector<16x4xf32> to vector<1x16x4xf32>
    %184 = vector.broadcast %183 : vector<1x16x4xf32> to vector<2x16x4xf32>
    %185 = arith.mulf %182, %184 : vector<2x16x4xf32>
    %cst_230 = arith.constant dense<0.000000e+00> : vector<2x16xf32>
    %186 = vector.multi_reduction <add>, %185, %cst_230 [2] : vector<2x16x4xf32> to vector<2x16xf32>
    %cst_231 = arith.constant dense<0.000000e+00> : vector<2xf32>
    %187 = vector.multi_reduction <add>, %186, %cst_231 [1] : vector<2x16xf32> to vector<2xf32>
    %188 = vector.shape_cast %187 : vector<2xf32> to vector<2x1xf32>
    %189 = arith.addf %188, %6 : vector<2x1xf32>
    %cst_232 = arith.constant dense<0xFF800000> : vector<1xf32>
    %190 = vector.multi_reduction <maximumf>, %189, %cst_232 [0] : vector<2x1xf32> to vector<1xf32>
    %191 = vector.shape_cast %190 : vector<1xf32> to vector<1x1xf32>
    %192 = vector.broadcast %191 : vector<1x1xf32> to vector<2x1xf32>
    %193 = arith.subf %189, %192 : vector<2x1xf32>
    %194 = math.exp %193 : vector<2x1xf32>
    %cst_233 = arith.constant dense<0.000000e+00> : vector<1xf32>
    %195 = vector.multi_reduction <add>, %194, %cst_233 [0] : vector<2x1xf32> to vector<1xf32>
    %196 = vector.shape_cast %195 : vector<1xf32> to vector<1x1xf32>
    %197 = vector.broadcast %196 : vector<1x1xf32> to vector<2x1xf32>
    %198 = arith.divf %194, %197 : vector<2x1xf32>
    %199 = tpu.concatenate %180, %198 in 1 : vector<2x1xf32>, vector<2x1xf32> -> vector<2x2xf32>
    %c0_234 = arith.constant 0 : index
    %c0_235 = arith.constant 0 : index
    %200 = vector.load %arg7[%c0_234, %c0_235] : memref<2x2xf32, #tpu.memory_space<vmem>>, vector<2x2xf32>
    tpu.vector_store %arg7[%c0_234, %c0_235], %199 {strides = array<i32>} : memref<2x2xf32, #tpu.memory_space<vmem>>, vector<2x2xf32>,
    return
  }
}

</mosaic_0001>

<bundles_post_ra>
// kernel: eegconv_forward.1
= control target key start
LH: loop header
LB: loop body
LE: loop exit
PB: predicated region body
PF: predicated region fallthrough
CT: control target
= control target key end

     0   :  { %v11488_v0 = vlaneseq  ;;  %v11502_v2 = vmov 0.0   ;;  %s8655_s26 = smov 15   ;;  %s8656_s29 = smov 25   ;;  %vm41_vm3 = vcmask 121856   ;;  %vm54_vm7 = vcmask 203776   ;;  %s11480_s0 = inlined_call_operand.vmem [shape: f32[2,1,128], index: 0, kind: input, shape index: {}]   ;;  %s11481_s2 = inlined_call_operand.vmem [shape: f32[16,8], index: 2, kind: input, shape index: {}]   ;;  %s11482_s1 = inlined_call_operand.vmem [shape: f32[16,656], index: 1, kind: input, shape index: {}]   ;;  %s11483_s4 = inlined_call_operand.vmem [shape: f32[266,88], index: 4, kind: input, shape index: {}]   ;;  %s11484_s5 = inlined_call_operand.vmem [shape: f32[72,8], index: 5, kind: input, shape index: {}]   ;;  %s11485_s3 = inlined_call_operand.vmem [shape: f32[2,16,4], index: 3, kind: input, shape index: {}]   ;;  %s11486_s6 = inlined_call_operand.vmem [shape: f32[16,8], index: 6, kind: output, shape index: {0}]   ;;  %s11487_s7 = inlined_call_operand.vmem [shape: f32[2,2], index: 7, kind: output, shape index: {1}]  }
   0x1   :  { %v36_v1 = vld [vmem:[%s11480_s0] sm:$0x1]  ;;  %1322 = vst [vmem:[#allocation3] sm:$0xff] %v11502_v2  ;;  %1323 = vst [vmem:[#allocation3 + $0x8] sm:$0xff] %v11502_v2  ;;  %385 = vmatprep.mubr.f32.mxu0 %v11502_v2  ;;  %491 = vmatprep.mubr.f32.mxu1 %v11502_v2  ;;  %v7453_v3 = vld [vmem:[%s11480_s0 + $0x1] sm:$0x1] }
   0x2   :  { %38 = vrot.lane.b32.xlu0 %v36_v1, %s8655_s26  ;;  %vm33_vm0 = vcmp.lt.s32.totalorder %v11488_v0, 296  ;;  %vm44_vm1 = vcmp.ge.s32.totalorder %v11488_v0, 15  ;;  %vm45_vm2 = vcmp.lt.s32.totalorder %v11488_v0, 143  ;;  %vm57_vm5 = vcmp.ge.s32.totalorder %v11488_v0, 25  ;;  %s8657_s0 = smov 110   ;;  %s8658_s30 = smov 112  }
   0x3   :  { %35 = vst.msk [vmem:[#allocation2] sm:$0x7] %vm33_vm0, %v11502_v2  ;;  %vm46_vm4 = vmand %vm44_vm1, %vm45_vm2  ;;  %vm58_vm6 = vcmp.lt.s32.totalorder %v11488_v0, 153  ;;  %vm8739_vm9 = vcmp.lt.s32.totalorder %v11488_v0, 276  ;;  %s8659_s8 = smov 108   ;;  %s8660_s9 = smov 111  }
   0x4   :  { %vm59_vm8 = vmand %vm57_vm5, %vm58_vm6  ;;  %s8661_s10 = smov 109   ;;  %s8662_s11 = smov 119   ;;  %v27_v32 = vld [vmem:[%s11481_s2] sm:$0x1]  ;;  %v8677_v33 = vmov 0   ;;  %vm258_vm10 = vcmask 900096  }
   0x5   :  { %s8663_s12 = smov 117   ;;  %s8664_s13 = smov 120   ;;  %8639 = vset.pattern.permute.xlu1 %v8677_v33  ;;  %v8767_v34 = vld [vmem:[%s11481_s2] sm:$0xff]  ;;  %vm236_vm11 = vcmask 916480   ;;  %vm280_vm12 = vcmask 883712   ;;  %vm247_vm13 = vcmask 908288  }
   0x6   :  { %51 = vrot.lane.b32.xlu0 %v7453_v3, %s8656_s29  ;;  %s8665_s14 = smov 115   ;;  %s8666_s15 = smov 118   ;;  %vm269_vm14 = vcmask 891904   ;;  %vm159_vm15 = vcmask 973824   ;;  %vm181_vm0 = vcmask 957440   ;;  %vm148_vm1 = vcmask 982016  }
   0x7   :  { %s8667_s16 = smov 113   ;;  %s8668_s17 = smov 116   ;;  %vm203_vm2 = vcmask 941056   ;;  %vm305_vm5 = vcmask 1044480   ;;  %vm225_vm6 = vcmask 924672  }
   0x8   :  { %s8669_s18 = smov 114   ;;  %s8670_s19 = smov 126  }
   0x9   :  { %s8671_s20 = smov 124   ;;  %s8672_s21 = smov 127  }
   0xa   :  { %s8673_s22 = smov 122   ;;  %s8674_s23 = smov 125  }
   0xb   :  { %s8675_s24 = smov 123   ;;  %s8676_s25 = smov 121  }
  0x74   :  { %v39_v4 = vpop.permute.xlu0 %38 }
  0x75   :  { %v40_v5 = vrot.slane %v39_v4, 7 }
  0x77   :  { %v42_v6 = vsel %vm41_vm3, %v40_v5, %v39_v4 }
  0x78   :  { %47 = vst.msk [vmem:[#allocation2] sm:$0x3] %vm46_vm4, %v42_v6  ;;  %v52_v7 = vpop.permute.xlu0 %51  ;;  %vm170_vm4 = vcmask 965632  }
  0x79   :  { %v53_v8 = vrot.slane %v52_v7, 7 }
  0x7b   :  { %v55_v9 = vsel %vm54_vm7, %v53_v8, %v52_v7  ;;  %vm192_vm7 = vcmask 949248  }
  0x7c   :  { %60 = vst.msk [vmem:[#allocation2 + $0x1] sm:$0x3] %vm59_vm8, %v55_v9  ;;  %vm214_vm8 = vcmask 932864  }
  0x83   :  { %v61_v11 = vld [vmem:[#allocation2] sm:$0x7] }
  0x84   :  { %v253_v12 = vld [vmem:[#allocation2] sm:$0x7]  ;;  %64 = vst.msk [vmem:[#allocation5] ss:$8 sm:$0x7] %vm8739_vm9, %v61_v11 }
  0x85   :  { %v231_v13 = vld [vmem:[#allocation2] sm:$0x7]  ;;  %255 = vrot.lane.b32.xlu0 %v253_v12, %s8657_s0 }
  0x86   :  { %233 = vrot.lane.b32.xlu1 %v231_v13, %s8658_s30  ;;  %v275_v14 = vld [vmem:[#allocation2] sm:$0x7] }
  0x87   :  { %v242_v15 = vld [vmem:[#allocation2] sm:$0x7] }
  0x88   :  { %v264_v16 = vld [vmem:[#allocation2] sm:$0x7] }
  0x89   :  { %277 = vrot.lane.b32.xlu0 %v275_v14, %s8659_s8  ;;  %v154_v17 = vld [vmem:[#allocation2] sm:$0x7] }
  0x8a   :  { %244 = vrot.lane.b32.xlu1 %v242_v15, %s8660_s9  ;;  %v176_v18 = vld [vmem:[#allocation2] sm:$0x7] }
  0x8b   :  { %v143_v19 = vld [vmem:[#allocation2] sm:$0x7] }
  0x8c   :  { %v198_v20 = vld [vmem:[#allocation2] sm:$0x7] }
  0x8d   :  { %156 = vrot.lane.b32.xlu0 %v154_v17, %s8662_s11  ;;  %v165_v21 = vld [vmem:[#allocation2] sm:$0x7] }
  0x8e   :  { %266 = vrot.lane.b32.xlu1 %v264_v16, %s8661_s10  ;;  %v220_v22 = vld [vmem:[#allocation2] sm:$0x7] }
  0x8f   :  { %v187_v23 = vld [vmem:[#allocation2] sm:$0x7] }
  0x90   :  { %v209_v24 = vld [vmem:[#allocation2] sm:$0x7] }
  0x91   :  { %178 = vrot.lane.b32.xlu0 %v176_v18, %s8663_s12  ;;  %v77_v25 = vld [vmem:[#allocation2] sm:$0x7] }
  0x92   :  { %145 = vrot.lane.b32.xlu1 %v143_v19, %s8664_s13  ;;  %v99_v26 = vld [vmem:[#allocation2] sm:$0x7] }
  0x93   :  { %v66_v27 = vld [vmem:[#allocation2] sm:$0x7] }
  0x94   :  { %v121_v28 = vld [vmem:[#allocation2] sm:$0x7] }
  0x95   :  { %200 = vrot.lane.b32.xlu0 %v198_v20, %s8665_s14  ;;  %v88_v29 = vld [vmem:[#allocation2] sm:$0x7] }
  0x96   :  { %167 = vrot.lane.b32.xlu1 %v165_v21, %s8666_s15  ;;  %v110_v30 = vld [vmem:[#allocation2] sm:$0x7] }
  0x97   :  { %v132_v31 = vld [vmem:[#allocation2] sm:$0x7] }
  0x99   :  { %222 = vrot.lane.b32.xlu0 %v220_v22, %s8667_s16 }
  0x9a   :  { %189 = vrot.lane.b32.xlu1 %v187_v23, %s8668_s17 }
  0x9d   :  { %79 = vrot.lane.b32.xlu0 %v77_v25, %s8670_s19 }
  0x9e   :  { %211 = vrot.lane.b32.xlu1 %v209_v24, %s8669_s18 }
  0xa1   :  { %101 = vrot.lane.b32.xlu0 %v99_v26, %s8671_s20 }
  0xa2   :  { %68 = vrot.lane.b32.xlu1 %v66_v27, %s8672_s21 }
  0xa5   :  { %123 = vrot.lane.b32.xlu0 %v121_v28, %s8673_s22 }
  0xa6   :  { %90 = vrot.lane.b32.xlu1 %v88_v29, %s8674_s23 }
  0xa9   :  { %1311 = vrot.lane.b32.xlu0 %v27_v32, %s8674_s23 }
  0xaa   :  { %112 = vrot.lane.b32.xlu1 %v110_v30, %s8675_s24 }
  0xae   :  { %134 = vrot.lane.b32.xlu1 %v132_v31, %s8676_s25 }
  0xb2   :  { %298 = vperm.xlu1 %8639, %v8767_v34  }
  0xf7   :  { %v256_v35 = vpop.permute.xlu0 %255 }
  0xf8   :  { %v234_v36 = vpop.permute.xlu1 %233  ;;  %v257_v37 = vrot.slane %v256_v35, 1 }
  0xf9   :  { %v235_v38 = vrot.slane %v234_v36, 1 }
  0xfa   :  { %v259_v39 = vsel %vm258_vm10, %v256_v35, %v257_v37  ;;  %vm82_vm10 = vcmask 1031168   ;;  %v286_v35 = vld [vmem:[%s11482_s1] sm:$0xff] }
  0xfb   :  { %v237_v40 = vsel %vm236_vm11, %v234_v36, %v235_v38  ;;  %262 = vst.msk [vmem:[#allocation5 + $0x32] ss:$8 sm:$0x7] %vm8739_vm9, %v259_v39  ;;  %v278_v41 = vpop.permute.xlu0 %277  ;;  %vm104_vm11 = vcmask 1014784  }
  0xfc   :  { %240 = vst.msk [vmem:[#allocation5 + $0x30] ss:$8 sm:$0x7] %vm8739_vm9, %v237_v40  ;;  %v245_v42 = vpop.permute.xlu1 %244  ;;  %v279_v43 = vrot.slane %v278_v41, 1 }
  0xfd   :  { %v246_v44 = vrot.slane %v245_v42, 1 }
  0xfe   :  { %v281_v45 = vsel %vm280_vm12, %v278_v41, %v279_v43  ;;  %vm71_vm12 = vcmask 1039360  }
  0xff   :  { %v248_v46 = vsel %vm247_vm13, %v245_v42, %v246_v44  ;;  %284 = vst.msk [vmem:[#allocation5 + $0x34] ss:$8 sm:$0x7] %vm8739_vm9, %v281_v45  ;;  %v157_v48 = vpop.permute.xlu0 %156  ;;  %vm301_vm13 = vcmask 171008  }
 0x100   :  { %251 = vst.msk [vmem:[#allocation5 + $0x31] ss:$8 sm:$0x7] %vm8739_vm9, %v248_v46  ;;  %v267_v47 = vpop.permute.xlu1 %266  ;;  %v158_v50 = vrot.slane %v157_v48, 1  ;;  %v303_v42 = vsel %vm301_vm13, %v286_v35, 0  ;;  %vm1330_vm13 = vcmask 1047672  }
 0x101   :  { %v268_v49 = vrot.slane %v267_v47, 1 }
 0x102   :  { %v160_v52 = vsel %vm159_vm15, %v157_v48, %v158_v50  ;;  %v8844_v50 = vand.u32 4294901760, %v303_v42 }
 0x103   :  { %v270_v51 = vsel %vm269_vm14, %v267_v47, %v268_v49  ;;  %163 = vst.msk [vmem:[#allocation5 + $0x19] ss:$8 sm:$0x7] %vm8739_vm9, %v160_v52  ;;  %v179_v53 = vpop.permute.xlu0 %178  ;;  %vm126_vm14 = vcmask 998400  }
 0x104   :  { %273 = vst.msk [vmem:[#allocation5 + $0x33] ss:$8 sm:$0x7] %vm8739_vm9, %v270_v51  ;;  %v146_v54 = vpop.permute.xlu1 %145  ;;  %v180_v55 = vrot.slane %v179_v53, 1 }
 0x105   :  { %v147_v56 = vrot.slane %v146_v54, 1 }
 0x106   :  { %v182_v57 = vsel %vm181_vm0, %v179_v53, %v180_v55  ;;  %vm93_vm0 = vcmask 1022976  }
 0x107   :  { %v149_v58 = vsel %vm148_vm1, %v146_v54, %v147_v56  ;;  %185 = vst.msk [vmem:[#allocation5 + $0x1b] ss:$8 sm:$0x7] %vm8739_vm9, %v182_v57  ;;  %v201_v59 = vpop.permute.xlu0 %200 }
 0x108   :  { %152 = vst.msk [vmem:[#allocation5 + $0x18] ss:$8 sm:$0x7] %vm8739_vm9, %v149_v58  ;;  %v168_v60 = vpop.permute.xlu1 %167  ;;  %v202_v61 = vrot.slane %v201_v59, 1  ;;  %v8854_v58 = vsub.f32 %v303_v42, %v8844_v50 }
 0x109   :  { %v169_v62 = vrot.slane %v168_v60, 1 }
 0x10a   :  { %v204_v63 = vsel %vm203_vm2, %v201_v59, %v202_v61  ;;  %vm115_vm2 = vcmask 1006592  }
 0x10b   :  { %v171_v1 = vsel %vm170_vm4, %v168_v60, %v169_v62  ;;  %v294_v3 = vld [vmem:[#allocation5 + $0x38] sm:$0x1f]  ;;  %v293_v4 = vld [vmem:[#allocation5 + $0x30] sm:$0x1f]  ;;  %v223_v5 = vpop.permute.xlu0 %222 }
 0x10c   :  { %207 = vst.msk [vmem:[#allocation5 + $0x1d] ss:$8 sm:$0x7] %vm8739_vm9, %v204_v63  ;;  %174 = vst.msk [vmem:[#allocation5 + $0x1a] ss:$8 sm:$0x7] %vm8739_vm9, %v171_v1  ;;  %v190_v6 = vpop.permute.xlu1 %189 }
 0x10d   :  { %v310_v7 = vsel %vm305_vm5, %v294_v3, 0  ;;  %v307_v8 = vsel %vm305_vm5, %v293_v4, 0  ;;  %v224_v9 = vrot.slane %v223_v5, 1  ;;  %v191_v11 = vrot.slane %v190_v6, 1 }
 0x10e   :  { %v8796_v12 = vand.u32 4294901760, %v310_v7  ;;  %v8798_v13 = vand.u32 4294901760, %v307_v8  ;;  %v8860_v3 = vand.u32 4294901760, %v8854_v58 }
 0x10f   :  { %v226_v14 = vsel %vm225_vm6, %v223_v5, %v224_v9  ;;  %v193_v15 = vsel %vm192_vm7, %v190_v6, %v191_v11  ;;  %v80_v19 = vpop.permute.xlu0 %79  ;;  %vm137_vm6 = vcmask 990208   ;;  %vm1326_vm7 = vcmask 1047592  }
 0x110   :  { %342 = vmatprep.subr.mxu0 %v8796_v12  ;;  %v8802_v16 = vsub.f32 %v310_v7, %v8796_v12  ;;  %v8805_v17 = vsub.f32 %v307_v8, %v8798_v13  ;;  %229 = vst.msk [vmem:[#allocation5 + $0x1f] ss:$8 sm:$0x7] %vm8739_vm9, %v226_v14  ;;  %196 = vst.msk [vmem:[#allocation5 + $0x1c] ss:$8 sm:$0x7] %vm8739_vm9, %v193_v15  ;;  %v212_v18 = vpop.permute.xlu1 %211  ;;  %v389_v4 = vsub.f32 %v8854_v58, %v8860_v3 }
 0x111   :  { %344 = vmatpush1.msra.mxu0 %v8798_v13  ;;  %v213_v20 = vrot.slane %v212_v18, 1  ;;  %v81_v21 = vrot.slane %v80_v19, 1 }
 0x112   :  { %v425_v22 = vand.u32 4294901760, %v8802_v16  ;;  %v431_v23 = vand.u32 4294901760, %v8805_v17  ;;  %v8868_v9 = vand.u32 4294901760, %v389_v4 }
 0x113   :  { %v215_v24 = vsel %vm214_vm8, %v212_v18, %v213_v20  ;;  %v83_v25 = vsel %vm82_vm10, %v80_v19, %v81_v21  ;;  %v102_v28 = vpop.permute.xlu0 %101  ;;  %v295_v20 = vld [vmem:[#allocation5 + $0x40] sm:$0x1f]  ;;  %vm1328_vm8 = vcmask 39936  }
 0x114   :  { %v426_v26 = vsub.f32 %v8802_v16, %v425_v22  ;;  %v432_v27 = vsub.f32 %v8805_v17, %v431_v23  ;;  %218 = vst.msk [vmem:[#allocation5 + $0x1e] ss:$8 sm:$0x7] %vm8739_vm9, %v215_v24  ;;  %86 = vst.msk [vmem:[#allocation5 + $0x2] ss:$8 sm:$0x7] %vm8739_vm9, %v83_v25  ;;  %v69_v29 = vpop.permute.xlu1 %68 }
 0x115   :  { %v103_v30 = vrot.slane %v102_v28, 1  ;;  %v70_v31 = vrot.slane %v69_v29, 1  ;;  %v313_v25 = vsel %vm305_vm5, %v295_v20, 0  ;;  %vm1324_vm5 = vcmask 162816  }
 0x116   :  { %v427_v32 = vand.u32 4294901760, %v426_v26  ;;  %v433_v33 = vand.u32 4294901760, %v432_v27  ;;  %v8885_v27 = vand.u32 4294901760, %v313_v25  ;;  %1325 = vst.msk [vmem:[#allocation3 + $0x10] sm:$0xff] %vm1324_vm5, %v11502_v2  ;;  %vm7443_vm5 = vcmask 9216  }
 0x117   :  { %v105_v36 = vsel %vm104_vm11, %v102_v28, %v103_v30  ;;  %v72_v37 = vsel %vm71_vm12, %v69_v29, %v70_v31  ;;  %v124_v38 = vpop.permute.xlu0 %123 }
 0x118   :  { %428 = vmatprep.subr.mxu1 %v427_v32  ;;  %108 = vst.msk [vmem:[#allocation5 + $0x4] ss:$8 sm:$0x7] %vm8739_vm9, %v105_v36  ;;  %75 = vst.msk [vmem:[#allocation5 + $0x1] ss:$8 sm:$0x7] %vm8739_vm9, %v72_v37  ;;  %v91_v39 = vpop.permute.xlu1 %90 }
 0x119   :  { %434 = vmatpush1.msra.mxu1 %v433_v33  ;;  %v125_v40 = vrot.slane %v124_v38, 1  ;;  %v92_v41 = vrot.slane %v91_v39, 1 }
 0x11b   :  { %v127_v43 = vsel %vm126_vm14, %v124_v38, %v125_v40  ;;  %v94_v44 = vsel %vm93_vm0, %v91_v39, %v92_v41  ;;  %v291_v45 = vld [vmem:[#allocation5 + $0x20] sm:$0xff]  ;;  %v290_v46 = vld [vmem:[#allocation5 + $0x18] sm:$0xff]  ;;  %v292_v26 = vld [vmem:[#allocation5 + $0x28] sm:$0xff]  ;;  %v1312_v38 = vpop.permute.xlu0 %1311 }
 0x11c   :  { %130 = vst.msk [vmem:[#allocation5 + $0x6] ss:$8 sm:$0x7] %vm8739_vm9, %v127_v43  ;;  %97 = vst.msk [vmem:[#allocation5 + $0x3] ss:$8 sm:$0x7] %vm8739_vm9, %v94_v44  ;;  %v113_v47 = vpop.permute.xlu1 %112 }
 0x11d   :  { %v8840_v48 = vand.u32 4294901760, %v291_v45  ;;  %v8842_v49 = vand.u32 4294901760, %v290_v46  ;;  %v114_v51 = vrot.slane %v113_v47, 1  ;;  %8606 = vpush %v1312_v38 }
 0x11f   :  { %346 = vmatprep.subr.mxu0 %v8840_v48  ;;  %v436_v52 = vsub.f32 %v291_v45, %v8840_v48  ;;  %v442_v53 = vsub.f32 %v290_v46, %v8842_v49  ;;  %v116_v54 = vsel %vm115_vm2, %v113_v47, %v114_v51 }
 0x120   :  { %348 = vmatpush1.msra.mxu0 %v8842_v49  ;;  %119 = vst.msk [vmem:[#allocation5 + $0x5] ss:$8 sm:$0x7] %vm8739_vm9, %v116_v54  ;;  %v135_v55 = vpop.permute.xlu1 %134 }
 0x121   :  { %v437_v56 = vand.u32 4294901760, %v436_v52  ;;  %v443_v57 = vand.u32 4294901760, %v442_v53  ;;  %v136_v59 = vrot.slane %v135_v55, 1 }
 0x123   :  { %v438_v60 = vsub.f32 %v436_v52, %v437_v56  ;;  %v444_v61 = vsub.f32 %v442_v53, %v443_v57  ;;  %v138_v62 = vsel %vm137_vm6, %v135_v55, %v136_v59 }
 0x124   :  { %141 = vst.msk [vmem:[#allocation5 + $0x7] ss:$8 sm:$0x7] %vm8739_vm9, %v138_v62  ;;  %vm8678_vm9 = vmmov 0  }
 0x125   :  { %v439_v63 = vand.u32 4294901760, %v438_v60  ;;  %v445_v1 = vand.u32 4294901760, %v444_v61 }
 0x127   :  { %440 = vmatprep.subr.mxu1 %v439_v63 }
 0x128   :  { %446 = vmatpush1.msra.mxu1 %v445_v1 }
 0x12b   :  { %v288_v5 = vld [vmem:[#allocation5 + $0x8] sm:$0xff]  ;;  %v287_v6 = vld [vmem:[#allocation5] sm:$0xff]  ;;  %v289_v28 = vld [vmem:[#allocation5 + $0x10] sm:$0xff] }
 0x12c   :  { %v8864_v7 = vand.u32 4294901760, %v288_v5  ;;  %v8866_v8 = vand.u32 4294901760, %v287_v6 }
 0x12d   :  { %v299_v41 = vpop.permute.xlu1 %298 }
 0x12e   :  { %350 = vmatprep.subr.mxu0 %v8864_v7  ;;  %v448_v10 = vsub.f32 %v288_v5, %v8864_v7  ;;  %v454_v11 = vsub.f32 %v287_v6, %v8866_v8 }
 0x12f   :  { %352 = vmatpush1.msra.mxu0 %v8866_v8 }
 0x130   :  { %527 = vmatprep.subr.mxu0 %v8802_v16  ;;  %391 = vmatmul.mubr.f32.vlgmr.msra.gmra.mxu0 %v8868_v9  ;;  %v449_v14 = vand.u32 4294901760, %v448_v10  ;;  %v455_v15 = vand.u32 4294901760, %v454_v11  ;;  %v8889_v16 = vand.u32 4294901760, %v292_v26 }
 0x131   :  { %530 = vmatpush1.msra.mxu0 %v8805_v17  ;;  %575 = vmatprep.mubr.f32.mxu0 %v11502_v2  ;;  %v8893_v17 = vand.u32 4294901760, %v289_v28 }
 0x132   :  { %533 = vmatprep.subr.mxu0 %v436_v52  ;;  %v450_v18 = vsub.f32 %v448_v10, %v449_v14  ;;  %v456_v19 = vsub.f32 %v454_v11, %v455_v15 }
 0x133   :  { %536 = vmatpush1.msra.mxu0 %v442_v53  ;;  %v952_v30 = vsub.f32 %v289_v28, %v8893_v17 }
 0x134   :  { %539 = vmatprep.subr.mxu0 %v448_v10  ;;  %v451_v21 = vand.u32 4294901760, %v450_v18  ;;  %v457_v24 = vand.u32 4294901760, %v456_v19 }
 0x135   :  { %542 = vmatpush1.msra.mxu0 %v454_v11  ;;  %v953_v33 = vand.u32 4294901760, %v952_v30 }
 0x136   :  { %452 = vmatprep.subr.mxu1 %v451_v21  ;;  %693 = vmatprep.subr.mxu0 %v425_v22  ;;  %v938_v22 = vsub.f32 %v313_v25, %v8885_v27 }
 0x137   :  { %458 = vmatpush1.msra.mxu1 %v457_v24  ;;  %578 = vmatmul.mubr.f32.vlgmr.msra.gmra.mxu0 %v8854_v58  ;;  %v954_v35 = vsub.f32 %v952_v30, %v953_v33 }
 0x138   :  { %697 = vmatpush1.msra.mxu0 %v431_v23  ;;  %493 = vmatmul.mubr.f32.vlgmr.msra.gmra.mxu1 %v8844_v50  ;;  %v945_v23 = vsub.f32 %v292_v26, %v8889_v16  ;;  %v939_v29 = vand.u32 4294901760, %v938_v22 }
 0x139   :  { %611 = vmatprep.subr.mxu1 %v8796_v12  ;;  %701 = vmatprep.subr.mxu0 %v437_v56  ;;  %v955_v37 = vand.u32 4294901760, %v954_v35 }
 0x13a   :  { %613 = vmatpush1.msra.mxu1 %v8798_v13  ;;  %705 = vmatpush1.msra.mxu0 %v443_v57  ;;  %v946_v31 = vand.u32 4294901760, %v945_v23  ;;  %v940_v32 = vsub.f32 %v938_v22, %v939_v29 }
 0x13b   :  { %615 = vmatprep.subr.mxu1 %v8840_v48  ;;  %709 = vmatprep.subr.mxu0 %v449_v14 }
 0x13c   :  { %617 = vmatpush1.msra.mxu1 %v8842_v49  ;;  %713 = vmatpush1.msra.mxu0 %v455_v15 }
 0x13d   :  { %619 = vmatprep.subr.mxu1 %v8864_v7  ;;  %746 = vmatprep.mubr.f32.mxu0 %v11502_v2 }
 0x13e   :  { %8150 = vmatprep.subr.mxu0 %v11502_v2  ;;  %621 = vmatpush1.msra.mxu1 %v8866_v8 }
 0x13f   :  { %654 = vmatprep.mubr.f32.mxu1 %v11502_v2  ;;  %748 = vmatmul.mubr.f32.vlgmr.msra.gmra.mxu0 %v8844_v50 }
 0x140   :  { %8151 = vmatpush3.msra.mxu0 %v8885_v27  ;;  %658 = vmatmul.mubr.f32.vlgmr.msra.gmra.mxu1 %v8860_v3 }
 0x141   :  { %781 = vmatprep.subr.mxu1 %v8796_v12  ;;  %8152 = vmatprep.subr.mxu0 %v11502_v2  ;;  %v947_v12 = vsub.f32 %v945_v23, %v946_v31 }
 0x142   :  { %783 = vmatpush1.msra.mxu1 %v8798_v13  ;;  %8153 = vmatpush3.msra.mxu0 %v8889_v16  ;;  %v941_v13 = vand.u32 4294901760, %v940_v32 }
 0x143   :  { %785 = vmatprep.subr.mxu1 %v8840_v48  ;;  %8154 = vmatprep.subr.mxu0 %v11502_v2  ;;  %v948_v36 = vand.u32 4294901760, %v947_v12 }
 0x144   :  { %787 = vmatpush1.msra.mxu1 %v8842_v49  ;;  %8155 = vmatpush3.msra.mxu0 %v8893_v17 }
 0x145   :  { %8156 = vmatprep.mubr.msk.f32.mxu0 %vm8678_vm9, %v11502_v2  ;;  %789 = vmatprep.subr.mxu1 %v8864_v7 }
 0x146   :  { %8157 = vmatmul.mubr.f32.vlgmr.msra.gmra.mxu0 %v8868_v9  ;;  %8168 = vmatprep.subr.mxu0 %v11502_v2 }
 0x147   :  { %791 = vmatpush1.msra.mxu1 %v8866_v8  ;;  %824 = vmatprep.mubr.f32.mxu1 %v11502_v2 }
 0x148   :  { %8169 = vmatpush3.msra.mxu0 %v938_v22  ;;  %826 = vmatmul.mubr.f32.vlgmr.msra.gmra.mxu1 %v8844_v50 }
 0x149   :  { %8159 = vmatprep.subr.mxu1 %v11502_v2  ;;  %8170 = vmatprep.subr.mxu0 %v11502_v2 }
 0x14a   :  { %8160 = vmatpush3.msra.mxu1 %v941_v13  ;;  %8171 = vmatpush3.msra.mxu0 %v945_v23 }
 0x14b   :  { %8161 = vmatprep.subr.mxu1 %v11502_v2  ;;  %8172 = vmatprep.subr.mxu0 %v11502_v2 }
 0x14c   :  { %8162 = vmatpush3.msra.mxu1 %v948_v36  ;;  %8173 = vmatpush3.msra.mxu0 %v952_v30 }
 0x14d   :  { %8163 = vmatprep.subr.mxu1 %v11502_v2  ;;  %8174 = vmatprep.mubr.msk.f32.mxu0 %vm8678_vm9, %v11502_v2 }
 0x14e   :  { %8186 = vmatprep.subr.mxu0 %v11502_v2  ;;  %8164 = vmatpush3.msra.mxu1 %v955_v37  ;;  %s8607_s9 = spop %8606 }
 0x14f   :  { %8165 = vmatprep.mubr.msk.f32.mxu1 %vm8678_vm9, %v11502_v2  ;;  %8175 = vmatmul.mubr.f32.vlgmr.msra.gmra.mxu0 %v8854_v58 }
 0x150   :  { %8187 = vmatpush3.msra.mxu0 %v939_v29  ;;  %8166 = vmatmul.mubr.f32.vlgmr.msra.gmra.mxu1 %v8844_v50 }
 0x151   :  { %8177 = vmatprep.subr.mxu1 %v11502_v2  ;;  %8188 = vmatprep.subr.mxu0 %v11502_v2 }
 0x152   :  { %8178 = vmatpush3.msra.mxu1 %v8885_v27  ;;  %8189 = vmatpush3.msra.mxu0 %v946_v31 }
 0x153   :  { %8179 = vmatprep.subr.mxu1 %v11502_v2  ;;  %8190 = vmatprep.subr.mxu0 %v11502_v2 }
 0x154   :  { %8180 = vmatpush3.msra.mxu1 %v8889_v16  ;;  %8191 = vmatpush3.msra.mxu0 %v953_v33 }
 0x155   :  { %8181 = vmatprep.subr.mxu1 %v11502_v2  ;;  %8183 = vmatprep.mubr.msk.f32.mxu1 %vm8678_vm9, %v11502_v2 }
 0x156   :  { %8182 = vmatpush3.msra.mxu1 %v8893_v17  ;;  %8192 = vmatprep.mubr.msk.f32.mxu0 %vm8678_vm9, %v11502_v2 }
 0x157   :  { %8184 = vmatmul.mubr.f32.vlgmr.msra.gmra.mxu1 %v8860_v3  ;;  %8195 = vmatprep.subr.mxu1 %v11502_v2  ;;  %v1314_v3 = vstv %s8607_s9 }
 0x158   :  { %8196 = vmatpush3.msra.mxu1 %v8885_v27  ;;  %8193 = vmatmul.mubr.f32.vlgmr.msra.gmra.mxu0 %v8844_v50 }
 0x159   :  { %8197 = vmatprep.subr.mxu1 %v11502_v2  ;;  %8201 = vmatprep.mubr.msk.f32.mxu1 %vm8678_vm9, %v11502_v2  ;;  %vm1338_vm9 = vcmask 80896  }
 0x15a   :  { %8198 = vmatpush3.msra.mxu1 %v8889_v16  ;;  %1677 = vmatprep.mubr.f32.mxu0 %v11502_v2 }
 0x15b   :  { %8199 = vmatprep.subr.mxu1 %v11502_v2 }
 0x15c   :  { %8200 = vmatpush3.msra.mxu1 %v8893_v17 }
 0x15d   :  { %8202 = vmatmul.mubr.f32.vlgmr.msra.gmra.mxu1 %v8844_v50 }
 0x15e   :  { %1874 = vmatprep.mubr.f32.mxu1 %v11502_v2 }
 0x1f0   :  { %v392_v39 = vpop.f32.mrf.mxu0 }
 0x1f1   :  { %v393_v42 = vadd.f32 %v392_v39, %v299_v41 }
 0x1f2   :  { %v394_v40 = vpop.f32.mrf.mxu0 }
 0x1f3   :  { %v395_v45 = vadd.f32 %v394_v40, %v299_v41 }
 0x1f7   :  { %v579_v43 = vpop.f32.mrf.mxu0 }
 0x1f8   :  { %v494_v44 = vpop.f32.mrf.mxu1 }
 0x1f9   :  { %v495_v46 = vadd.f32 %v494_v44, %v393_v42  ;;  %v581_v47 = vpop.f32.mrf.mxu0 }
 0x1fa   :  { %v496_v48 = vpop.f32.mrf.mxu1 }
 0x1fb   :  { %v497_v49 = vadd.f32 %v496_v48, %v395_v45  ;;  %v580_v51 = vadd.f32 %v579_v43, %v495_v46 }
 0x1fd   :  { %v582_v55 = vadd.f32 %v581_v47, %v497_v49 }
 0x1ff   :  { %v749_v52 = vpop.f32.mrf.mxu0 }
 0x200   :  { %v659_v53 = vpop.f32.mrf.mxu1 }
 0x201   :  { %v751_v54 = vpop.f32.mrf.mxu0  ;;  %v660_v56 = vadd.f32 %v659_v53, %v580_v51  ;;  %v1540_v53 = vld [vmem:[%s11482_s1 + $0x8] sm:$0xff] }
 0x202   :  { %v661_v50 = vpop.f32.mrf.mxu1 }
 0x203   :  { %v662_v57 = vadd.f32 %v661_v50, %v582_v55  ;;  %v750_v59 = vadd.f32 %v749_v52, %v660_v56  ;;  %v8679_v55 = vmov 1  }
 0x204   :  { %8640 = vset.pattern.permute.xlu1 %v8679_v55  ;;  %8641 = vset.pattern.permute.xlu0 %v8679_v55 }
 0x205   :  { %v752_v62 = vadd.f32 %v751_v54, %v662_v57 }
 0x206   :  { %v906_v58 = vpop.f32.mrf.mxu0 }
 0x207   :  { %v907_v15 = vadd.f32 %v906_v58, %v299_v41 }
 0x208   :  { %v827_v60 = vpop.f32.mrf.mxu1  ;;  %v8158_v61 = vpop.f32.mrf.mxu0 }
 0x209   :  { %v828_v63 = vadd.f32 %v827_v60, %v750_v59 }
 0x20a   :  { %v829_v1 = vpop.f32.mrf.mxu1 }
 0x20b   :  { %v1307_v4 = vmin.f32 %v828_v63, 0.0  ;;  %v830_v5 = vadd.f32 %v829_v1, %v752_v62  ;;  %v1304_v6 = vmax.f32 %v828_v63, 0.0 }
 0x20d   :  { %v1308_v7 = vmin.f32 %v830_v5, 0.0  ;;  %v1316_v8 = vmul.f32 %v1314_v3, %v1307_v4  ;;  %v1305_v9 = vmax.f32 %v830_v5, 0.0 }
 0x20f   :  { %v1317_v10 = vmul.f32 %v1314_v3, %v1308_v7  ;;  %v1319_v11 = vadd.f32 %v1316_v8, %v1304_v6  ;;  %v1070_v14 = vpop.f32.mrf.mxu0  ;;  %v28_v6 = vld [vmem:[%s11481_s2 + $0x1] sm:$0x1] }
 0x210   :  { %v992_v18 = vpop.f32.mrf.mxu1 }
 0x211   :  { %v1320_v19 = vadd.f32 %v1317_v10, %v1305_v9  ;;  %1327 = vst.msk [vmem:[#allocation3] sm:$0xff] %vm1326_vm7, %v1319_v11  ;;  %v8176_v20 = vpop.f32.mrf.mxu0  ;;  %v993_v21 = vadd.f32 %v992_v18, %v907_v15 }
 0x212   :  { %v8167_v24 = vpop.f32.mrf.mxu1 }
 0x213   :  { %1329 = vst.msk [vmem:[#allocation3 + $0x8] sm:$0xff] %vm1328_vm8, %v1320_v19  ;;  %v1071_v25 = vadd.f32 %v1070_v14, %v993_v21 }
 0x214   :  { %1331 = vst.msk [vmem:[#allocation3 + $0x8] sm:$0xff] %vm1330_vm13, %v1320_v19 }
 0x217   :  { %v1146_v26 = vpop.f32.mrf.mxu1 }
 0x218   :  { %v1147_v27 = vadd.f32 %v1146_v26, %v1071_v25  ;;  %v1226_v28 = vpop.f32.mrf.mxu0  ;;  %v8960_v16 = vld [vmem:[#allocation3] sm:$0xff] }
 0x219   :  { %v8185_v17 = vpop.f32.mrf.mxu1  ;;  %1526 = vrot.lane.b32.xlu0 %v8960_v16, %s8666_s15  ;;  %1506 = vrot.lane.b32.xlu1 %v8960_v16, %s8662_s11  ;;  %v9056_v5 = vand.u32 4294901760, %v8960_v16 }
 0x21a   :  { %v8194_v22 = vpop.f32.mrf.mxu0  ;;  %v1227_v29 = vadd.f32 %v1226_v28, %v1147_v27 }
 0x21b   :  { %v8966_v23 = vld [vmem:[#allocation3 + $0x8] sm:$0xff]  ;;  %v9092_v21 = vsub.f32 %v8960_v16, %v9056_v5 }
 0x21c   :  { %v9069_v10 = vand.u32 4294901760, %v8966_v23 }
 0x21d   :  { %v1300_v30 = vpop.f32.mrf.mxu1  ;;  %1486 = vrot.lane.b32.xlu0 %v8960_v16, %s8664_s13  ;;  %1466 = vrot.lane.b32.xlu1 %v8960_v16, %s8676_s25 }
 0x21e   :  { %v1301_v31 = vadd.f32 %v1300_v30, %v1227_v29  ;;  %v9102_v28 = vsub.f32 %v8966_v23, %v9069_v10 }
 0x21f   :  { %v8203_v32 = vpop.f32.mrf.mxu1 }
 0x220   :  { %v1309_v33 = vmin.f32 %v1301_v31, 0.0  ;;  %v1306_v12 = vmax.f32 %v1301_v31, 0.0 }
 0x221   :  { %1446 = vrot.lane.b32.xlu0 %v8960_v16, %s8673_s22  ;;  %1426 = vrot.lane.b32.xlu1 %v8960_v16, %s8675_s24 }
 0x222   :  { %v1318_v13 = vmul.f32 %v1314_v3, %v1309_v33 }
 0x224   :  { %v1321_v35 = vadd.f32 %v1318_v13, %v1306_v12 }
 0x225   :  { %1406 = vrot.lane.b32.xlu0 %v8960_v16, %s8671_s20  ;;  %1386 = vrot.lane.b32.xlu1 %v8960_v16, %s8674_s23 }
 0x226   :  { %1332 = vst.msk [vmem:[#allocation3 + $0x10] sm:$0xff] %vm41_vm3, %v1321_v35  ;;  %vm1584_vm3 = vcmask 719872  }
 0x227   :  { %v1586_v58 = vsel %vm1584_vm3, %v1540_v53, 0  ;;  %v26_v53 = vld [vmem:[%s11481_s2 + $0x8] sm:$0xff] }
 0x228   :  { %v9041_v62 = vand.u32 4294901760, %v1586_v58 }
 0x229   :  { %1508 = vrot.lane.b32.xlu1 %v8966_v23, %s8662_s11  ;;  %1366 = vrot.lane.b32.xlu0 %v8960_v16, %s8670_s19 }
 0x22a   :  { %v9072_v11 = vsub.f32 %v1586_v58, %v9041_v62 }
 0x22c   :  { %v9098_v27 = vand.u32 4294901760, %v9072_v11 }
 0x22d   :  { %v1335_v36 = vld [vmem:[#allocation3 + $0x10] sm:$0xff]  ;;  %1468 = vrot.lane.b32.xlu1 %v8966_v23, %s8676_s25  ;;  %1528 = vrot.lane.b32.xlu0 %v8966_v23, %s8666_s15 }
 0x22e   :  { %1339 = vst.msk [vmem:[#allocation6 + $0x10] sm:$0xff] %vm1338_vm9, %v1335_v36 }
 0x231   :  { %1428 = vrot.lane.b32.xlu1 %v8966_v23, %s8675_s24  ;;  %1488 = vrot.lane.b32.xlu0 %v8966_v23, %s8664_s13 }
 0x235   :  { %1388 = vrot.lane.b32.xlu1 %v8966_v23, %s8674_s23  ;;  %1448 = vrot.lane.b32.xlu0 %v8966_v23, %s8673_s22 }
 0x239   :  { %1348 = vrot.lane.b32.xlu1 %v8966_v23, %s8672_s21  ;;  %1408 = vrot.lane.b32.xlu0 %v8966_v23, %s8671_s20 }
 0x23d   :  { %1530 = vrot.lane.b32.xlu1 %v1335_v36, %s8666_s15  ;;  %1368 = vrot.lane.b32.xlu0 %v8966_v23, %s8670_s19 }
 0x241   :  { %1490 = vrot.lane.b32.xlu1 %v1335_v36, %s8664_s13  ;;  %1510 = vrot.lane.b32.xlu0 %v1335_v36, %s8662_s11 }
 0x245   :  { %1450 = vrot.lane.b32.xlu1 %v1335_v36, %s8673_s22  ;;  %1470 = vrot.lane.b32.xlu0 %v1335_v36, %s8676_s25 }
 0x249   :  { %1410 = vrot.lane.b32.xlu1 %v1335_v36, %s8671_s20  ;;  %1430 = vrot.lane.b32.xlu0 %v1335_v36, %s8675_s24 }
 0x24d   :  { %1370 = vrot.lane.b32.xlu1 %v1335_v36, %s8670_s19  ;;  %1390 = vrot.lane.b32.xlu0 %v1335_v36, %s8674_s23 }
 0x251   :  { %1350 = vrot.lane.b32.xlu0 %v1335_v36, %s8672_s21  ;;  %1346 = vrot.lane.b32.xlu1 %v8960_v16, %s8672_s21 }
 0x255   :  { %1576 = vperm.xlu1 %8640, %v8767_v34   ;;  %2997 = vrot.lane.b32.xlu0 %v28_v6, %s8674_s23 }
 0x259   :  { %1581 = vperm.xlu0 %8641, %v26_v53  }
 0x28b   :  { %v1527_v37 = vpop.permute.xlu0 %1526  ;;  %v1507_v38 = vpop.permute.xlu1 %1506 }
 0x28f   :  { %v1487_v39 = vpop.permute.xlu0 %1486  ;;  %v1467_v40 = vpop.permute.xlu1 %1466 }
 0x293   :  { %v1447_v41 = vpop.permute.xlu0 %1446  ;;  %v1427_v42 = vpop.permute.xlu1 %1426 }
 0x297   :  { %v1407_v43 = vpop.permute.xlu0 %1406  ;;  %v1387_v44 = vpop.permute.xlu1 %1386 }
 0x29b   :  { %v9016_v45 = vpop.permute.xlu1 %1508  ;;  %v1367_v46 = vpop.permute.xlu0 %1366 }
 0x29c   :  { %v1512_v47 = vsel %vm159_vm15, %v1507_v38, %v9016_v45  ;;  %v1832_v38 = vand.u32 4294901760, %v9102_v28 }
 0x29d   :  { %v9049_v3 = vand.u32 4294901760, %v1512_v47 }
 0x29f   :  { %v9020_v48 = vpop.permute.xlu1 %1468  ;;  %v1529_v49 = vpop.permute.xlu0 %1528  ;;  %v9082_v18 = vsub.f32 %v1512_v47, %v9049_v3 }
 0x2a0   :  { %v1472_v51 = vsel %vm137_vm6, %v1467_v40, %v9020_v48  ;;  %v1532_v52 = vsel %vm170_vm4, %v1527_v37, %v1529_v49  ;;  %v1681_v37 = vsub.f32 %v9072_v11, %v9098_v27 }
 0x2a1   :  { %v9039_v61 = vand.u32 4294901760, %v1532_v52  ;;  %v9053_v34 = vand.u32 4294901760, %v1472_v51  ;;  %v11494_v30 = vand.u32 4294901760, %v9082_v18 }
 0x2a3   :  { %v9028_v50 = vpop.permute.xlu1 %1428  ;;  %v1489_v54 = vpop.permute.xlu0 %1488  ;;  %v9066_v9 = vsub.f32 %v1532_v52, %v9039_v61  ;;  %v9088_v20 = vsub.f32 %v1472_v51, %v9053_v34  ;;  %v9149_v47 = vsub.f32 %v9082_v18, %v11494_v30 }
 0x2a4   :  { %v1432_v56 = vsel %vm115_vm2, %v1427_v42, %v9028_v50  ;;  %v1492_v57 = vsel %vm148_vm1, %v1487_v39, %v1489_v54 }
 0x2a5   :  { %v9051_v4 = vand.u32 4294901760, %v1492_v57  ;;  %v9079_v15 = vand.u32 4294901760, %v1432_v56  ;;  %v11496_v26 = vand.u32 4294901760, %v9066_v9  ;;  %v11491_v32 = vand.u32 4294901760, %v9088_v20 }
 0x2a6   :  { %v1732_v0 = vand.u32 4294901760, %v9149_v47 }
 0x2a7   :  { %v9035_v59 = vpop.permute.xlu1 %1388  ;;  %v9037_v60 = vpop.permute.xlu0 %1448  ;;  %v9085_v19 = vsub.f32 %v1492_v57, %v9051_v4  ;;  %v9111_v22 = vsub.f32 %v1432_v56, %v9079_v15  ;;  %v1719_v36 = vsub.f32 %v9066_v9, %v11496_v26  ;;  %v9165_v52 = vsub.f32 %v9088_v20, %v11491_v32 }
 0x2a8   :  { %v9045_v63 = vsel %vm93_vm0, %v1387_v44, %v9035_v59  ;;  %v1452_v1 = vsel %vm126_vm14, %v1447_v41, %v9037_v60 }
 0x2a9   :  { %v9116_v31 = vand.u32 4294901760, %v1452_v1  ;;  %v11492_v23 = vand.u32 4294901760, %v9085_v19  ;;  %v9138_v41 = vand.u32 4294901760, %v9045_v63  ;;  %v11490_v42 = vand.u32 4294901760, %v9111_v22 }
 0x2aa   :  { %v1720_v57 = vand.u32 4294901760, %v1719_v36 }
 0x2ab   :  { %v9061_v7 = vpop.permute.xlu1 %1348  ;;  %v9063_v8 = vpop.permute.xlu0 %1408  ;;  %v9160_v51 = vsub.f32 %v9085_v19, %v11492_v23 }
 0x2ac   :  { %v9077_v14 = vsel %vm104_vm11, %v1407_v43, %v9063_v8 }
 0x2af   :  { %v1531_v24 = vpop.permute.xlu1 %1530  ;;  %v9094_v25 = vpop.permute.xlu0 %1368 }
 0x2b0   :  { %v1533_v17 = vsel %vm170_vm4, %v1529_v49, %v1531_v24  ;;  %1539 = vst.msk [vmem:[#allocation6 + $0x100] sm:$0xff] %vm1338_vm9, %v1531_v24  ;;  %v9108_v16 = vsel %vm82_vm10, %v1367_v46, %v9094_v25  ;;  %v9155_v49 = vand.u32 4294901760, %v9077_v14  ;;  %vm4717_vm4 = vcmask 130048  }
 0x2b1   :  { %v9113_v29 = vand.u32 4294901760, %v1533_v17 }
 0x2b3   :  { %v1491_v12 = vpop.permute.xlu1 %1490  ;;  %v1511_v13 = vpop.permute.xlu0 %1510  ;;  %1602 = vmatprep.subr.mxu0 %v9113_v29  ;;  %v9123_v35 = vsub.f32 %v1533_v17, %v9113_v29  ;;  %v9189_v17 = vsub.f32 %v9045_v63, %v9138_v41  ;;  %v9206_v63 = vsub.f32 %v9077_v14, %v9155_v49 }
 0x2b4   :  { %v1493_v39 = vsel %vm148_vm1, %v1489_v54, %v1491_v12  ;;  %1499 = vst.msk [vmem:[#allocation6 + $0xd0] sm:$0xff] %vm1338_vm9, %v1491_v12  ;;  %v1513_v40 = vsel %vm159_vm15, %v9016_v45, %v1511_v13  ;;  %1519 = vst.msk [vmem:[#allocation6 + $0xe8] sm:$0xff] %vm1338_vm9, %v1511_v13  ;;  %1604 = vmatpush1.msra.mxu0 %v9039_v61  ;;  %v9152_v45 = vsub.f32 %v1452_v1, %v9116_v31  ;;  %vm3054_vm15 = vcmask 1041408  }
 0x2b5   :  { %v9141_v43 = vand.u32 4294901760, %v1513_v40  ;;  %v9143_v44 = vand.u32 4294901760, %v1493_v39  ;;  %v11498_v46 = vand.u32 4294901760, %v9123_v35  ;;  %v9194_v12 = vsub.f32 %v9111_v22, %v11490_v42 }
 0x2b6   :  { %v11497_v53 = vand.u32 4294901760, %v9152_v45  ;;  %v11501_v23 = vand.u32 4294901760, %v9206_v63  ;;  %vm4482_vm1 = vcmask 588800  }
 0x2b7   :  { %v1451_v54 = vpop.permute.xlu1 %1450  ;;  %v1471_v55 = vpop.permute.xlu0 %1470  ;;  %1606 = vmatprep.subr.mxu0 %v9141_v43  ;;  %v1713_v56 = vsub.f32 %v9123_v35, %v11498_v46  ;;  %v9175_v58 = vsub.f32 %v1513_v40, %v9141_v43  ;;  %v9178_v1 = vsub.f32 %v1493_v39, %v9143_v44  ;;  %v9209_v40 = vand.u32 4294901760, %v9108_v16 }
 0x2b8   :  { %v1453_v6 = vsel %vm126_vm14, %v9037_v60, %v1451_v54  ;;  %1459 = vst.msk [vmem:[#allocation6 + $0xa0] sm:$0xff] %vm1338_vm9, %v1451_v54  ;;  %v1473_v24 = vsel %vm137_vm6, %v9020_v48, %v1471_v55  ;;  %1479 = vst.msk [vmem:[#allocation6 + $0xb8] sm:$0xff] %vm1338_vm9, %v1471_v55  ;;  %1608 = vmatpush1.msra.mxu0 %v9049_v3  ;;  %vm7334_vm14 = vcmask 1041409   ;;  %vm7441_vm6 = vcmask 7168  }
 0x2b9   :  { %1610 = vmatprep.subr.mxu0 %v9143_v44  ;;  %v9197_v60 = vand.u32 4294901760, %v1473_v24  ;;  %v1714_v13 = vand.u32 4294901760, %v1713_v56  ;;  %v9199_v36 = vand.u32 4294901760, %v1453_v6  ;;  %v11495_v48 = vand.u32 4294901760, %v9175_v58 }
 0x2ba   :  { %1612 = vmatpush1.msra.mxu0 %v9051_v4  ;;  %v11493_v39 = vand.u32 4294901760, %v9178_v1 }
 0x2bb   :  { %v1411_v54 = vpop.permute.xlu1 %1410  ;;  %v1431_v55 = vpop.permute.xlu0 %1430  ;;  %1614 = vmatprep.subr.mxu0 %v9197_v60  ;;  %1715 = vmatprep.subr.mxu1 %v1714_v13  ;;  %v1725_v56 = vsub.f32 %v9175_v58, %v11495_v48  ;;  %v9218_v42 = vsub.f32 %v1473_v24, %v9197_v60  ;;  %v9221_v14 = vsub.f32 %v1453_v6, %v9199_v36  ;;  %v1756_v6 = vand.u32 4294901760, %v9165_v52 }
 0x2bc   :  { %v1413_v32 = vsel %vm104_vm11, %v9063_v8, %v1411_v54  ;;  %1419 = vst.msk [vmem:[#allocation6 + $0x70] sm:$0xff] %vm1338_vm9, %v1411_v54  ;;  %v1433_v13 = vsel %vm115_vm2, %v9028_v50, %v1431_v55  ;;  %1439 = vst.msk [vmem:[#allocation6 + $0x88] sm:$0xff] %vm1338_vm9, %v1431_v55  ;;  %1616 = vmatpush1.msra.mxu0 %v9053_v34  ;;  %1721 = vmatpush1.msra.mxu1 %v1720_v57  ;;  %vm7295_vm11 = vcmask 31744   ;;  %vm7342_vm2 = vcmask 33824  }
 0x2bd   :  { %v1737_v47 = vsub.f32 %v9178_v1, %v11493_v39  ;;  %1618 = vmatprep.subr.mxu0 %v9199_v36  ;;  %v9235_v24 = vand.u32 4294901760, %v1433_v13  ;;  %v1726_v8 = vand.u32 4294901760, %v1725_v56  ;;  %v9237_v54 = vand.u32 4294901760, %v1413_v32 }
 0x2be   :  { %v11500_v50 = vand.u32 4294901760, %v9218_v42  ;;  %1620 = vmatpush1.msra.mxu0 %v9116_v31  ;;  %v11499_v55 = vand.u32 4294901760, %v9221_v14  ;;  %v9244_v57 = vsub.f32 %v9108_v16, %v9209_v40  ;;  %v1767_v52 = vsub.f32 %v9152_v45, %v11497_v53 }
 0x2bf   :  { %v1371_v39 = vpop.permute.xlu1 %1370  ;;  %v1391_v56 = vpop.permute.xlu0 %1390  ;;  %1622 = vmatprep.subr.mxu0 %v9235_v24  ;;  %1727 = vmatprep.subr.mxu1 %v1726_v8  ;;  %v1738_v30 = vand.u32 4294901760, %v1737_v47  ;;  %v9255_v26 = vsub.f32 %v1433_v13, %v9235_v24  ;;  %v9258_v16 = vsub.f32 %v1413_v32, %v9237_v54  ;;  %v1744_v47 = vand.u32 4294901760, %v9160_v51 }
 0x2c0   :  { %v1749_v48 = vsub.f32 %v9218_v42, %v11500_v50  ;;  %v1373_v53 = vsel %vm82_vm10, %v9094_v25, %v1371_v39  ;;  %1379 = vst.msk [vmem:[#allocation6 + $0x40] sm:$0xff] %vm1338_vm9, %v1371_v39  ;;  %v1393_v46 = vsel %vm93_vm0, %v9035_v59, %v1391_v56  ;;  %1399 = vst.msk [vmem:[#allocation6 + $0x58] sm:$0xff] %vm1338_vm9, %v1391_v56  ;;  %1624 = vmatpush1.msra.mxu0 %v9079_v15  ;;  %vm7284_vm10 = vcmask 64512  }
 0x2c1   :  { %1733 = vmatpush1.msra.mxu1 %v1732_v0  ;;  %v1761_v32 = vsub.f32 %v9221_v14, %v11499_v55  ;;  %1626 = vmatprep.subr.mxu0 %v9237_v54  ;;  %v9272_v25 = vand.u32 4294901760, %v1393_v46  ;;  %v9274_v13 = vand.u32 4294901760, %v1373_v53  ;;  %v11504_v59 = vand.u32 4294901760, %v9255_v26 }
 0x2c2   :  { %1739 = vmatprep.subr.mxu1 %v1738_v30  ;;  %v1750_v39 = vand.u32 4294901760, %v1749_v48  ;;  %1628 = vmatpush1.msra.mxu0 %v9155_v49  ;;  %v1768_v0 = vand.u32 4294901760, %v1767_v52  ;;  %v11505_v51 = vand.u32 4294901760, %v9258_v16  ;;  %v1791_v8 = vsub.f32 %v9206_v63, %v11501_v23  ;;  %v1541_v23 = vld [vmem:[%s11482_s1 + $0x38] sm:$0xff] }
 0x2c3   :  { %1745 = vmatpush1.msra.mxu1 %v1744_v47  ;;  %v11506_v56 = vand.u32 4294901760, %v9189_v17  ;;  %v1351_v30 = vpop.permute.xlu0 %1350  ;;  %v1347_v55 = vpop.permute.xlu1 %1346  ;;  %1630 = vmatprep.subr.mxu0 %v9272_v25  ;;  %v1762_v48 = vand.u32 4294901760, %v1761_v32  ;;  %v1773_v50 = vsub.f32 %v9255_v26, %v11504_v59  ;;  %v9288_v52 = vsub.f32 %v1393_v46, %v9272_v25 }
 0x2c4   :  { %1751 = vmatprep.subr.mxu1 %v1750_v39  ;;  %v9291_v47 = vsub.f32 %v1373_v53, %v9274_v13  ;;  %v1353_v2 = vsel %vm71_vm12, %v9061_v7, %v1351_v30  ;;  %1359 = vst.msk [vmem:[#allocation6 + $0x28] sm:$0xff] %vm1338_vm9, %v1351_v30  ;;  %v1352_v32 = vsel %vm71_vm12, %v1347_v55, %v9061_v7  ;;  %v11508_v53 = vand.u32 4294901760, %v9244_v57 }
 0x2c5   :  { %1632 = vmatpush1.msra.mxu0 %v9138_v41  ;;  %1757 = vmatpush1.msra.mxu1 %v1756_v6  ;;  %v1785_v46 = vsub.f32 %v9258_v16, %v11505_v51  ;;  %v9307_v39 = vand.u32 4294901760, %v1353_v2  ;;  %v1774_v59 = vand.u32 4294901760, %v1773_v50  ;;  %v9309_v33 = vand.u32 4294901760, %v1352_v32 }
 0x2c6   :  { %1634 = vmatprep.subr.mxu0 %v9274_v13  ;;  %1763 = vmatprep.subr.mxu1 %v1762_v48  ;;  %v1796_v30 = vand.u32 4294901760, %v9288_v52  ;;  %v1780_v7 = vand.u32 4294901760, %v9194_v12  ;;  %v1803_v6 = vsub.f32 %v9189_v17, %v11506_v56  ;;  %v11507_v55 = vand.u32 4294901760, %v9291_v47 }
 0x2c7   :  { %1636 = vmatpush1.msra.mxu0 %v9209_v40  ;;  %1769 = vmatpush1.msra.mxu1 %v1768_v0  ;;  %v1589_v48 = vsel %vm1584_vm3, %v1541_v23, 0  ;;  %v9321_v50 = vsub.f32 %v1352_v32, %v9309_v33  ;;  %v1786_v51 = vand.u32 4294901760, %v1785_v46  ;;  %v9327_v12 = vsub.f32 %v1353_v2, %v9307_v39 }
 0x2c8   :  { %1638 = vmatprep.subr.mxu0 %v9307_v39  ;;  %1775 = vmatprep.subr.mxu1 %v1774_v59  ;;  %v1797_v0 = vsub.f32 %v9288_v52, %v1796_v30  ;;  %v1792_v56 = vand.u32 4294901760, %v1791_v8  ;;  %v9333_v23 = vand.u32 4294901760, %v1681_v37  ;;  %v1809_v59 = vsub.f32 %v9291_v47, %v11507_v55 }
 0x2c9   :  { %1640 = vmatpush1.msra.mxu0 %v9309_v33  ;;  %1781 = vmatpush1.msra.mxu1 %v1780_v7  ;;  %v1815_v32 = vsub.f32 %v9244_v57, %v11508_v53  ;;  %v11509_v46 = vand.u32 4294901760, %v9327_v12  ;;  %v11510_v8 = vand.u32 4294901760, %v9321_v50  ;;  %v1804_v37 = vand.u32 4294901760, %v1803_v6 }
 0x2ca   :  { %1642 = vmatprep.subr.mxu0 %v9069_v10  ;;  %1787 = vmatprep.subr.mxu1 %v1786_v51  ;;  %v1798_v2 = vand.u32 4294901760, %v1797_v0  ;;  %v9345_v7 = vand.u32 4294901760, %v1589_v48  ;;  %v1810_v55 = vand.u32 4294901760, %v1809_v59  ;;  %v1833_v0 = vsub.f32 %v9102_v28, %v1832_v38 }
 0x2cb   :  { %1644 = vmatpush1.msra.mxu0 %v9056_v5  ;;  %1793 = vmatpush1.msra.mxu1 %v1792_v56  ;;  %v1821_v53 = vsub.f32 %v9327_v12, %v11509_v46  ;;  %v1827_v51 = vsub.f32 %v9321_v50, %v11510_v8  ;;  %v1816_v56 = vand.u32 4294901760, %v1815_v32  ;;  %v11674_v6 = vand.u32 4294901760, %v9092_v21 }
 0x2cc   :  { %1799 = vmatprep.subr.mxu1 %v1798_v2  ;;  %1901 = vmatprep.subr.mxu0 %v9123_v35  ;;  %v9364_v8 = vsub.f32 %v1589_v48, %v9345_v7  ;;  %vm7323_vm12 = vcmask 130112   ;;  %vm7337_vm0 = vcmask 123904  }
 0x2cd   :  { %1683 = vmatmul.mubr.f32.vlgmr.msra.gmra.mxu0 %v9333_v23  ;;  %1805 = vmatpush1.msra.mxu1 %v1804_v37  ;;  %v1839_v59 = vsub.f32 %v9092_v21, %v11674_v6  ;;  %v1822_v2 = vand.u32 4294901760, %v1821_v53  ;;  %v1828_v46 = vand.u32 4294901760, %v1827_v51  ;;  %v1834_v37 = vand.u32 4294901760, %v1833_v0 }
 0x2ce   :  { %1904 = vmatpush1.msra.mxu0 %v9066_v9  ;;  %1811 = vmatprep.subr.mxu1 %v1810_v55  ;;  %v9371_v53 = vand.u32 4294901760, %v9364_v8  ;;  %v11676_v51 = vand.u32 4294901760, %v9123_v35  ;;  %v11677_v0 = vand.u32 4294901760, %v9066_v9  ;;  %v11679_v6 = vand.u32 4294901760, %v9082_v18 }
 0x2cf   :  { %1907 = vmatprep.subr.mxu0 %v9175_v58  ;;  %1817 = vmatpush1.msra.mxu1 %v1816_v56  ;;  %v1840_v32 = vand.u32 4294901760, %v1839_v59  ;;  %v11678_v56 = vand.u32 4294901760, %v9175_v58  ;;  %v11680_v9 = vand.u32 4294901760, %v9178_v1  ;;  %v11681_v35 = vand.u32 4294901760, %v9085_v19 }
 0x2d0   :  { %1910 = vmatpush1.msra.mxu0 %v9082_v18  ;;  %1823 = vmatprep.subr.mxu1 %v1822_v2  ;;  %v1692_v55 = vsub.f32 %v9364_v8, %v9371_v53  ;;  %v11682_v58 = vand.u32 4294901760, %v9218_v42  ;;  %v11683_v18 = vand.u32 4294901760, %v9088_v20 }
 0x2d1   :  { %1913 = vmatprep.subr.mxu0 %v9178_v1  ;;  %1829 = vmatpush1.msra.mxu1 %v1828_v46  ;;  %v11675_v46 = vmov 0.0   ;;  %v11684_v1 = vand.u32 4294901760, %v9221_v14 }
 0x2d2   :  { %1916 = vmatpush1.msra.mxu0 %v9085_v19  ;;  %1835 = vmatprep.subr.mxu1 %v1834_v37  ;;  %v9391_v48 = vand.u32 4294901760, %v1692_v55  ;;  %v11685_v19 = vand.u32 4294901760, %v9152_v45 }
 0x2d3   :  { %1919 = vmatprep.subr.mxu0 %v9218_v42  ;;  %1841 = vmatpush1.msra.mxu1 %v1840_v32  ;;  %v11686_v42 = vand.u32 4294901760, %v9255_v26  ;;  %v1547_v32 = vld [vmem:[#allocation6 + $0x28] sm:$0xff] }
 0x2d4   :  { %1922 = vmatpush1.msra.mxu0 %v9088_v20  ;;  %1876 = vmatmul.mubr.f32.vlgmr.msra.gmra.mxu1 %v9041_v62  ;;  %v11687_v20 = vand.u32 4294901760, %v9111_v22 }
 0x2d5   :  { %1925 = vmatprep.subr.mxu0 %v9221_v14  ;;  %2025 = vmatprep.subr.mxu1 %v9113_v29  ;;  %v11688_v14 = vand.u32 4294901760, %v9258_v16 }
 0x2d6   :  { %1928 = vmatpush1.msra.mxu0 %v9152_v45  ;;  %2027 = vmatpush1.msra.mxu1 %v9039_v61  ;;  %v1568_v45 = vld [vmem:[#allocation6 + $0xd0] sm:$0xff] }
 0x2d7   :  { %1931 = vmatprep.subr.mxu0 %v9255_v26  ;;  %2029 = vmatprep.subr.mxu1 %v9141_v43  ;;  %v11689_v26 = vand.u32 4294901760, %v9206_v63 }
 0x2d8   :  { %1934 = vmatpush1.msra.mxu0 %v9111_v22  ;;  %2031 = vmatpush1.msra.mxu1 %v9049_v3  ;;  %v1571_v22 = vld [vmem:[#allocation6 + $0xe8] sm:$0xff] }
 0x2d9   :  { %1937 = vmatprep.subr.mxu0 %v9258_v16  ;;  %2033 = vmatprep.subr.mxu1 %v9143_v44  ;;  %v1556_v16 = vld [vmem:[#allocation6 + $0x70] sm:$0xff] }
 0x2da   :  { %1940 = vmatpush1.msra.mxu0 %v9206_v63  ;;  %2035 = vmatpush1.msra.mxu1 %v9051_v4  ;;  %v11695_v63 = vand.u32 4294901760, %v9092_v21 }
 0x2db   :  { %1943 = vmatprep.subr.mxu0 %v9288_v52  ;;  %2037 = vmatprep.subr.mxu1 %v9197_v60  ;;  %v9531_v52 = vand.u32 4294901760, %v1556_v16 }
 0x2dc   :  { %1946 = vmatpush1.msra.mxu0 %v9189_v17  ;;  %2039 = vmatpush1.msra.mxu1 %v9053_v34 }
 0x2dd   :  { %1949 = vmatprep.subr.mxu0 %v9291_v47  ;;  %2041 = vmatprep.subr.mxu1 %v9199_v36  ;;  %v9563_v55 = vsub.f32 %v1556_v16, %v9531_v52 }
 0x2de   :  { %1688 = vmatprep.mubr.f32.mxu0 %v11675_v46  ;;  %1952 = vmatpush1.msra.mxu0 %v9244_v57 }
 0x2df   :  { %2043 = vmatpush1.msra.mxu1 %v9116_v31  ;;  %1694 = vmatmul.mubr.f32.gmra.mxu0 %v9391_v48 }
 0x2e0   :  { %1955 = vmatprep.subr.mxu0 %v9327_v12  ;;  %2045 = vmatprep.subr.mxu1 %v9235_v24 }
 0x2e1   :  { %1958 = vmatpush1.msra.mxu0 %v9321_v50  ;;  %2047 = vmatpush1.msra.mxu1 %v9079_v15 }
 0x2e2   :  { %1961 = vmatprep.subr.mxu0 %v9102_v28  ;;  %2049 = vmatprep.subr.mxu1 %v9237_v54 }
 0x2e3   :  { %1964 = vmatpush1.msra.mxu0 %v9092_v21  ;;  %1997 = vmatprep.mubr.f32.mxu0 %v11675_v46  ;;  %v1559_v21 = vld [vmem:[#allocation6 + $0x88] sm:$0xff] }
 0x2e4   :  { %2051 = vmatpush1.msra.mxu1 %v9155_v49  ;;  %2000 = vmatmul.mubr.f32.vlgmr.msra.gmra.mxu0 %v9072_v11 }
 0x2e5   :  { %2053 = vmatprep.subr.mxu1 %v9272_v25  ;;  %2132 = vmatprep.subr.mxu0 %v11676_v51 }
 0x2e6   :  { %2055 = vmatpush1.msra.mxu1 %v9138_v41  ;;  %2136 = vmatpush1.msra.mxu0 %v11677_v0 }
 0x2e7   :  { %1881 = vmatprep.mubr.f32.mxu1 %v11675_v46  ;;  %2057 = vmatprep.subr.mxu1 %v9274_v13 }
 0x2e8   :  { %2140 = vmatprep.subr.mxu0 %v11678_v56  ;;  %1883 = vmatmul.mubr.f32.gmra.mxu1 %v9345_v7 }
 0x2e9   :  { %2059 = vmatpush1.msra.mxu1 %v9209_v40  ;;  %2144 = vmatpush1.msra.mxu0 %v11679_v6  ;;  %v1544_v6 = vld [vmem:[#allocation6 + $0x10] sm:$0xff] }
 0x2ea   :  { %2005 = vmatprep.mubr.f32.mxu0 %v11675_v46  ;;  %2061 = vmatprep.subr.mxu1 %v9307_v39 }
 0x2eb   :  { %2148 = vmatprep.subr.mxu0 %v11680_v9  ;;  %2008 = vmatmul.mubr.f32.gmra.mxu0 %v9364_v8  ;;  %v9575_v9 = vand.u32 4294901760, %v1547_v32 }
 0x2ec   :  { %2063 = vmatpush1.msra.mxu1 %v9309_v33  ;;  %2152 = vmatpush1.msra.mxu0 %v11681_v35 }
 0x2ed   :  { %2065 = vmatprep.subr.mxu1 %v9069_v10  ;;  %2156 = vmatprep.subr.mxu0 %v11682_v58 }
 0x2ee   :  { %2067 = vmatpush1.msra.mxu1 %v9056_v5  ;;  %2100 = vmatprep.mubr.f32.mxu1 %v11675_v46 }
 0x2ef   :  { %2160 = vmatpush1.msra.mxu0 %v11683_v18  ;;  %2104 = vmatmul.mubr.f32.vlgmr.msra.gmra.mxu1 %v9098_v27 }
 0x2f0   :  { %2164 = vmatprep.subr.mxu0 %v11684_v1  ;;  %2275 = vmatprep.subr.mxu1 %v9113_v29  ;;  %v9585_v1 = vand.u32 4294901760, %v9563_v55 }
 0x2f1   :  { %2168 = vmatpush1.msra.mxu0 %v11685_v19  ;;  %2277 = vmatpush1.msra.mxu1 %v9039_v61  ;;  %v1574_v61 = vld [vmem:[#allocation6 + $0x100] sm:$0xff]  ;;  %v9588_v19 = vand.u32 4294901760, %v1544_v6 }
 0x2f2   :  { %2172 = vmatprep.subr.mxu0 %v11686_v42  ;;  %2279 = vmatprep.subr.mxu1 %v9141_v43  ;;  %v9467_v29 = vand.u32 4294901760, %v1574_v61  ;;  %v11691_v43 = vand.u32 4294901760, %v9291_v47  ;;  %v1553_v47 = vld [vmem:[#allocation6 + $0x58] sm:$0xff] }
 0x2f3   :  { %2109 = vmatprep.mubr.f32.mxu1 %v11675_v46  ;;  %2176 = vmatpush1.msra.mxu0 %v11687_v20  ;;  %v9553_v2 = vand.u32 4294901760, %v1553_v47 }
 0x2f4   :  { %2281 = vmatpush1.msra.mxu1 %v9049_v3  ;;  %2180 = vmatprep.subr.mxu0 %v11688_v14  ;;  %v11690_v3 = vand.u32 4294901760, %v9189_v17  ;;  %v11693_v17 = vand.u32 4294901760, %v9327_v12  ;;  %v1550_v12 = vld [vmem:[#allocation6 + $0x40] sm:$0xff] }
 0x2f5   :  { %2113 = vmatmul.mubr.f32.gmra.mxu1 %v9371_v53  ;;  %2283 = vmatprep.subr.mxu1 %v9143_v44  ;;  %v9475_v44 = vand.u32 4294901760, %v1571_v22  ;;  %v9566_v51 = vand.u32 4294901760, %v1550_v12  ;;  %v9578_v35 = vsub.f32 %v1553_v47, %v9553_v2  ;;  %v2998_v47 = vpop.permute.xlu0 %2997 }
 0x2f6   :  { %2184 = vmatpush1.msra.mxu0 %v11689_v26  ;;  %2285 = vmatpush1.msra.mxu1 %v9051_v4  ;;  %v11692_v4 = vand.u32 4294901760, %v9244_v57  ;;  %8608 = vpush %v2998_v47 }
 0x2f7   :  { %2188 = vmatprep.subr.mxu0 %v1796_v30  ;;  %2287 = vmatprep.subr.mxu1 %v9197_v60  ;;  %v1565_v60 = vld [vmem:[#allocation6 + $0xb8] sm:$0xff]  ;;  %v9495_v57 = vsub.f32 %v1571_v22, %v9475_v44  ;;  %v9591_v42 = vsub.f32 %v1550_v12, %v9566_v51  ;;  %v9598_v14 = vand.u32 4294901760, %v9578_v35  ;;  %v2517_v22 = vsub.f32 %v9563_v55, %v9585_v1 }
 0x2f8   :  { %2192 = vmatpush1.msra.mxu0 %v11690_v3  ;;  %2289 = vmatpush1.msra.mxu1 %v9053_v34  ;;  %v11694_v34 = vand.u32 4294901760, %v9321_v50 }
 0x2f9   :  { %2196 = vmatprep.subr.mxu0 %v11691_v43  ;;  %2291 = vmatprep.subr.mxu1 %v9199_v36  ;;  %v9484_v36 = vsub.f32 %v1574_v61, %v9467_v29  ;;  %v9601_v61 = vsub.f32 %v1547_v32, %v9575_v9  ;;  %v9608_v3 = vand.u32 4294901760, %v9591_v42  ;;  %v9611_v43 = vsub.f32 %v1544_v6, %v9588_v19 }
 0x2fa   :  { %2200 = vmatpush1.msra.mxu0 %v11692_v4  ;;  %2293 = vmatpush1.msra.mxu1 %v9116_v31  ;;  %v9489_v31 = vand.u32 4294901760, %v1568_v45 }
 0x2fb   :  { %2204 = vmatprep.subr.mxu0 %v11693_v17  ;;  %2295 = vmatprep.subr.mxu1 %v9235_v24  ;;  %v1562_v24 = vld [vmem:[#allocation6 + $0xa0] sm:$0xff]  ;;  %v9504_v28 = vand.u32 4294901760, %v9484_v36  ;;  %v9618_v17 = vand.u32 4294901760, %v9601_v61 }
 0x2fc   :  { %2208 = vmatpush1.msra.mxu0 %v11694_v34  ;;  %2297 = vmatpush1.msra.mxu1 %v9079_v15  ;;  %v9499_v15 = vand.u32 4294901760, %v1565_v60  ;;  %v2518_v34 = vand.u32 4294901760, %v2517_v22 }
 0x2fd   :  { %2212 = vmatprep.subr.mxu0 %v1832_v38  ;;  %2299 = vmatprep.subr.mxu1 %v9237_v54  ;;  %v9508_v38 = vand.u32 4294901760, %v1562_v24  ;;  %v9516_v54 = vand.u32 4294901760, %v9495_v57 }
 0x2fe   :  { %2216 = vmatpush1.msra.mxu0 %v11695_v63  ;;  %2249 = vmatprep.mubr.f32.mxu0 %v11675_v46  ;;  %v9625_v63 = vand.u32 4294901760, %v9611_v43 }
 0x2ff   :  { %2301 = vmatpush1.msra.mxu1 %v9155_v49  ;;  %2251 = vmatmul.mubr.f32.vlgmr.msra.gmra.mxu0 %v9041_v62  ;;  %v9511_v49 = vsub.f32 %v1568_v45, %v9489_v31  ;;  %v9537_v30 = vsub.f32 %v1562_v24, %v9508_v38  ;;  %v2524_v45 = vsub.f32 %v9578_v35, %v9598_v14 }
 0x300   :  { %2303 = vmatprep.subr.mxu1 %v9272_v25  ;;  %8204 = vmatprep.subr.mxu0 %v9467_v29  ;;  %v9523_v25 = vsub.f32 %v1565_v60, %v9499_v15  ;;  %v2531_v60 = vsub.f32 %v9591_v42, %v9608_v3 }
 0x301   :  { %2305 = vmatpush1.msra.mxu1 %v9138_v41  ;;  %8205 = vmatpush3.msra.mxu0 %v9467_v29  ;;  %v9520_v41 = vand.u32 4294901760, %v1559_v21  ;;  %v9560_v37 = vand.u32 4294901760, %v9537_v30  ;;  %v2525_v24 = vand.u32 4294901760, %v2524_v45 }
 0x302   :  { %2307 = vmatprep.subr.mxu1 %v9274_v13  ;;  %8206 = vmatprep.subr.mxu0 %v9475_v44  ;;  %v2475_v13 = vsub.f32 %v9484_v36, %v9504_v28  ;;  %v9546_v50 = vand.u32 4294901760, %v9523_v25  ;;  %v2532_v16 = vand.u32 4294901760, %v2531_v60 }
 0x303   :  { %2256 = vmatprep.mubr.f32.mxu0 %v11675_v46  ;;  %2309 = vmatpush1.msra.mxu1 %v9209_v40  ;;  %v9534_v40 = vand.u32 4294901760, %v9511_v49  ;;  %v9549_v59 = vsub.f32 %v1559_v21, %v9520_v41  ;;  %v2503_v18 = vsub.f32 %v9537_v30, %v9560_v37  ;;  %v2538_v21 = vsub.f32 %v9601_v61, %v9618_v17 }
 0x304   :  { %8207 = vmatpush3.msra.mxu0 %v9475_v44  ;;  %2311 = vmatprep.subr.mxu1 %v9307_v39  ;;  %v2482_v39 = vsub.f32 %v9495_v57, %v9516_v54  ;;  %v2496_v0 = vsub.f32 %v9523_v25, %v9546_v50 }
 0x305   :  { %2258 = vmatmul.mubr.f32.gmra.mxu0 %v9345_v7  ;;  %8208 = vmatprep.subr.mxu0 %v9489_v31  ;;  %v9572_v56 = vand.u32 4294901760, %v9549_v59  ;;  %v2504_v26 = vand.u32 4294901760, %v2503_v18 }
 0x306   :  { %2313 = vmatpush1.msra.mxu1 %v9309_v33  ;;  %8209 = vmatpush3.msra.mxu0 %v9489_v31  ;;  %v2476_v33 = vand.u32 4294901760, %v2475_v13  ;;  %v2545_v13 = vsub.f32 %v9611_v43, %v9625_v63 }
 0x307   :  { %2315 = vmatprep.subr.mxu1 %v9069_v10  ;;  %8210 = vmatprep.subr.mxu0 %v9499_v15  ;;  %v2489_v10 = vsub.f32 %v9511_v49, %v9534_v40  ;;  %v2510_v20 = vsub.f32 %v9549_v59, %v9572_v56 }
 0x308   :  { %2317 = vmatpush1.msra.mxu1 %v9056_v5  ;;  %2350 = vmatprep.mubr.f32.mxu1 %v11675_v46  ;;  %v2483_v5 = vand.u32 4294901760, %v2482_v39  ;;  %v3026_v39 = vld [vmem:[%s11483_s4 + $0x60] sm:$0xff] }
 0x309   :  { %8211 = vmatpush3.msra.mxu0 %v9499_v15  ;;  %2352 = vmatmul.mubr.f32.vlgmr.msra.gmra.mxu1 %v9041_v62  ;;  %v2490_v58 = vand.u32 4294901760, %v2489_v10  ;;  %v2511_v4 = vand.u32 4294901760, %v2510_v20  ;;  %v3025_v10 = vld [vmem:[%s11483_s4 + $0x58] sm:$0xff]  ;;  %v9763_v32 = vand.u32 4294901760, %v3026_v39 }
 0x30a   :  { %8212 = vmatprep.subr.mxu0 %v9508_v38  ;;  %8229 = vmatprep.subr.mxu1 %v2476_v33 }
 0x30b   :  { %8213 = vmatpush3.msra.mxu0 %v9508_v38  ;;  %8230 = vmatpush3.msra.mxu1 %v2476_v33 }
 0x30c   :  { %8214 = vmatprep.subr.mxu0 %v9520_v41  ;;  %8231 = vmatprep.subr.mxu1 %v2483_v5 }
 0x30d   :  { %2357 = vmatprep.mubr.f32.mxu1 %v11675_v46  ;;  %8215 = vmatpush3.msra.mxu0 %v9520_v41  ;;  %v2497_v46 = vand.u32 4294901760, %v2496_v0 }
 0x30e   :  { %8232 = vmatpush3.msra.mxu1 %v2483_v5  ;;  %8216 = vmatprep.subr.mxu0 %v9531_v52 }
 0x30f   :  { %2359 = vmatmul.mubr.f32.gmra.mxu1 %v9345_v7  ;;  %8233 = vmatprep.subr.mxu1 %v2490_v58 }
 0x310   :  { %8217 = vmatpush3.msra.mxu0 %v9531_v52  ;;  %8234 = vmatpush3.msra.mxu1 %v2490_v58  ;;  %v3039_v58 = vld [vmem:[%s11483_s4 + $0xc8] sm:$0xff] }
 0x311   :  { %8218 = vmatprep.subr.mxu0 %v9553_v2  ;;  %8235 = vmatprep.subr.mxu1 %v2497_v46 }
 0x312   :  { %8219 = vmatpush3.msra.mxu0 %v9553_v2  ;;  %8236 = vmatpush3.msra.mxu1 %v2497_v46  ;;  %v3023_v46 = vld [vmem:[%s11483_s4 + $0x48] sm:$0xff] }
 0x313   :  { %8220 = vmatprep.subr.mxu0 %v9566_v51  ;;  %8237 = vmatprep.subr.mxu1 %v2504_v26 }
 0x314   :  { %8221 = vmatpush3.msra.mxu0 %v9566_v51  ;;  %8238 = vmatpush3.msra.mxu1 %v2504_v26 }
 0x315   :  { %8222 = vmatprep.subr.mxu0 %v9575_v9  ;;  %8239 = vmatprep.subr.mxu1 %v2511_v4 }
 0x316   :  { %8223 = vmatpush3.msra.mxu0 %v9575_v9  ;;  %8240 = vmatpush3.msra.mxu1 %v2511_v4  ;;  %v3022_v4 = vld [vmem:[%s11483_s4 + $0x40] sm:$0xff] }
 0x317   :  { %8224 = vmatprep.subr.mxu0 %v9588_v19  ;;  %8241 = vmatprep.subr.mxu1 %v2518_v34 }
 0x318   :  { %8225 = vmatpush3.msra.mxu0 %v9588_v19  ;;  %8226 = vmatprep.mubr.f32.mxu0 %v9333_v23  ;;  %v2539_v23 = vand.u32 4294901760, %v2538_v21 }
 0x319   :  { %8242 = vmatpush3.msra.mxu1 %v2518_v34  ;;  %8227 = vmatmul.mubr.f32.vlgmr.msra.gmra.mxu0 %v9391_v48  ;;  %v2546_v48 = vand.u32 4294901760, %v2545_v13  ;;  %v9839_v34 = vand.u32 4294901760, %v3023_v46 }
 0x31a   :  { %8243 = vmatprep.subr.mxu1 %v2525_v24  ;;  %8254 = vmatprep.subr.mxu0 %v9484_v36 }
 0x31b   :  { %8244 = vmatpush3.msra.mxu1 %v2525_v24  ;;  %8255 = vmatpush3.msra.mxu0 %v9484_v36  ;;  %v3044_v36 = vld [vmem:[%s11483_s4 + $0xf0] sm:$0xff] }
 0x31c   :  { %8245 = vmatprep.subr.mxu1 %v2532_v16  ;;  %8256 = vmatprep.subr.mxu0 %v9495_v57 }
 0x31d   :  { %8246 = vmatpush3.msra.mxu1 %v2532_v16  ;;  %8257 = vmatpush3.msra.mxu0 %v9495_v57 }
 0x31e   :  { %8247 = vmatprep.subr.mxu1 %v2539_v23  ;;  %8258 = vmatprep.subr.mxu0 %v9511_v49 }
 0x31f   :  { %8248 = vmatpush3.msra.mxu1 %v2539_v23  ;;  %8259 = vmatpush3.msra.mxu0 %v9511_v49 }
 0x320   :  { %8249 = vmatprep.subr.mxu1 %v2546_v48  ;;  %8260 = vmatprep.subr.mxu0 %v9523_v25 }
 0x321   :  { %8250 = vmatpush3.msra.mxu1 %v2546_v48  ;;  %8251 = vmatprep.mubr.f32.mxu1 %v9041_v62  ;;  %v9865_v48 = vand.u32 4294901760, %v3022_v4 }
 0x322   :  { %8261 = vmatpush3.msra.mxu0 %v9523_v25  ;;  %8252 = vmatmul.mubr.f32.vlgmr.msra.gmra.mxu1 %v9345_v7 }
 0x323   :  { %8262 = vmatprep.subr.mxu0 %v9537_v30  ;;  %8279 = vmatprep.subr.mxu1 %v9467_v29 }
 0x324   :  { %8263 = vmatpush3.msra.mxu0 %v9537_v30  ;;  %8280 = vmatpush3.msra.mxu1 %v9467_v29 }
 0x325   :  { %8264 = vmatprep.subr.mxu0 %v9549_v59  ;;  %8281 = vmatprep.subr.mxu1 %v9475_v44 }
 0x326   :  { %8265 = vmatpush3.msra.mxu0 %v9549_v59  ;;  %8282 = vmatpush3.msra.mxu1 %v9475_v44 }
 0x327   :  { %8266 = vmatprep.subr.mxu0 %v9563_v55  ;;  %8283 = vmatprep.subr.mxu1 %v9489_v31  ;;  %s8609_s10 = spop %8608 }
 0x328   :  { %8267 = vmatpush3.msra.mxu0 %v9563_v55  ;;  %8284 = vmatpush3.msra.mxu1 %v9489_v31 }
 0x329   :  { %8268 = vmatprep.subr.mxu0 %v9578_v35  ;;  %8285 = vmatprep.subr.mxu1 %v9499_v15 }
 0x32a   :  { %8269 = vmatpush3.msra.mxu0 %v9578_v35  ;;  %8286 = vmatpush3.msra.mxu1 %v9499_v15 }
 0x32b   :  { %8270 = vmatprep.subr.mxu0 %v9591_v42  ;;  %8287 = vmatprep.subr.mxu1 %v9508_v38 }
 0x32c   :  { %8271 = vmatpush3.msra.mxu0 %v9591_v42  ;;  %8288 = vmatpush3.msra.mxu1 %v9508_v38 }
 0x32d   :  { %8272 = vmatprep.subr.mxu0 %v9601_v61  ;;  %8289 = vmatprep.subr.mxu1 %v9520_v41 }
 0x32e   :  { %8273 = vmatpush3.msra.mxu0 %v9601_v61  ;;  %8290 = vmatpush3.msra.mxu1 %v9520_v41  ;;  %v3038_v61 = vld [vmem:[%s11483_s4 + $0xc0] sm:$0xff] }
 0x32f   :  { %8274 = vmatprep.subr.mxu0 %v9611_v43  ;;  %8291 = vmatprep.subr.mxu1 %v9531_v52  ;;  %v9852_v16 = vand.u32 4294901760, %v3038_v61 }
 0x330   :  { %8275 = vmatpush3.msra.mxu0 %v9611_v43  ;;  %8276 = vmatprep.mubr.f32.mxu0 %v9072_v11  ;;  %v3045_v11 = vld [vmem:[%s11483_s4 + $0xf8] sm:$0xff]  ;;  %v9823_v43 = vand.u32 4294901760, %v3039_v58 }
 0x331   :  { %8292 = vmatpush3.msra.mxu1 %v9531_v52  ;;  %8277 = vmatmul.mubr.f32.vlgmr.msra.gmra.mxu0 %v9364_v8  ;;  %v3029_v8 = vld [vmem:[%s11483_s4 + $0x78] sm:$0xff]  ;;  %v9702_v57 = vand.u32 4294901760, %v3045_v11  ;;  %11703 = vst [vmem:[#allocation15_spill] sm:$0xff] %v9852_v16 }
 0x332   :  { %8293 = vmatprep.subr.mxu1 %v9553_v2  ;;  %8304 = vmatprep.subr.mxu0 %v9504_v28  ;;  %v9709_v49 = vand.u32 4294901760, %v3029_v8 }
 0x333   :  { %8294 = vmatpush3.msra.mxu1 %v9553_v2  ;;  %8305 = vmatpush3.msra.mxu0 %v9504_v28  ;;  %11696 = vst [vmem:[#allocation8_spill] sm:$0xff] %v9702_v57  ;;  %v3028_v28 = vld [vmem:[%s11483_s4 + $0x70] sm:$0xff] }
 0x334   :  { %8295 = vmatprep.subr.mxu1 %v9566_v51  ;;  %8306 = vmatprep.subr.mxu0 %v9516_v54  ;;  %v9723_v25 = vand.u32 4294901760, %v3028_v28 }
 0x335   :  { %8296 = vmatpush3.msra.mxu1 %v9566_v51  ;;  %8307 = vmatpush3.msra.mxu0 %v9516_v54  ;;  %v3027_v54 = vld [vmem:[%s11483_s4 + $0x68] sm:$0xff] }
 0x336   :  { %8297 = vmatprep.subr.mxu1 %v9575_v9  ;;  %8308 = vmatprep.subr.mxu0 %v9534_v40  ;;  %v9743_v12 = vand.u32 4294901760, %v3027_v54 }
 0x337   :  { %8298 = vmatpush3.msra.mxu1 %v9575_v9  ;;  %8309 = vmatpush3.msra.mxu0 %v9534_v40  ;;  %v3042_v40 = vld [vmem:[%s11483_s4 + $0xe0] sm:$0xff] }
 0x338   :  { %8299 = vmatprep.subr.mxu1 %v9588_v19  ;;  %8310 = vmatprep.subr.mxu0 %v9546_v50  ;;  %v9753_v33 = vand.u32 4294901760, %v3042_v40  ;;  %v9783_v35 = vsub.f32 %v3027_v54, %v9743_v12  ;;  %v3037_v54 = vld [vmem:[%s11483_s4 + $0xb8] sm:$0xff] }
 0x339   :  { %8300 = vmatpush3.msra.mxu1 %v9588_v19  ;;  %8301 = vmatprep.mubr.f32.mxu1 %v9098_v27  ;;  %v3043_v27 = vld [vmem:[%s11483_s4 + $0xe8] sm:$0xff] }
 0x33a   :  { %8311 = vmatpush3.msra.mxu0 %v9546_v50  ;;  %8302 = vmatmul.mubr.f32.vlgmr.msra.gmra.mxu1 %v9371_v53  ;;  %v9716_v53 = vand.u32 4294901760, %v3044_v36  ;;  %v9733_v30 = vand.u32 4294901760, %v3043_v27  ;;  %v9741_v50 = vsub.f32 %v3029_v8, %v9709_v49  ;;  %v11515_v45 = vand.u32 4294901760, %v9783_v35 }
 0x33b   :  { %8312 = vmatprep.subr.mxu0 %v9560_v37  ;;  %8329 = vmatprep.subr.mxu1 %v9467_v29  ;;  %v9877_v8 = vsub.f32 %v3039_v58, %v9823_v43 }
 0x33c   :  { %8313 = vmatpush3.msra.mxu0 %v9560_v37  ;;  %8330 = vmatpush3.msra.mxu1 %v9467_v29  ;;  %v9731_v29 = vsub.f32 %v3045_v11, %v9702_v57  ;;  %v9751_v59 = vsub.f32 %v3044_v36, %v9716_v53  ;;  %v9761_v37 = vsub.f32 %v3028_v28, %v9723_v25  ;;  %v11520_v6 = vand.u32 4294901760, %v9741_v50 }
 0x33d   :  { %8314 = vmatprep.subr.mxu0 %v9572_v56  ;;  %8331 = vmatprep.subr.mxu1 %v9475_v44  ;;  %v9772_v5 = vsub.f32 %v3043_v27, %v9733_v30  ;;  %11705 = vst [vmem:[#allocation17_spill] sm:$0xff] %v9877_v8  ;;  %v9889_v27 = vsub.f32 %v3023_v46, %v9839_v34 }
 0x33e   :  { %8315 = vmatpush3.msra.mxu0 %v9572_v56  ;;  %8332 = vmatpush3.msra.mxu1 %v9475_v44  ;;  %11697 = vst [vmem:[#allocation9_spill] sm:$0xff] %v9731_v29  ;;  %v3041_v44 = vld [vmem:[%s11483_s4 + $0xd8] sm:$0xff]  ;;  %v11522_v55 = vand.u32 4294901760, %v9731_v29  ;;  %v3024_v56 = vld [vmem:[%s11483_s4 + $0x50] sm:$0xff]  ;;  %v11519_v18 = vand.u32 4294901760, %v9751_v59  ;;  %v11517_v20 = vand.u32 4294901760, %v9761_v37  ;;  %v9919_v46 = vsub.f32 %v3022_v4, %v9865_v48 }
 0x33f   :  { %8316 = vmatprep.subr.mxu0 %v9585_v1  ;;  %8333 = vmatprep.subr.mxu1 %v9489_v31  ;;  %v9774_v0 = vand.u32 4294901760, %v3041_v44  ;;  %v11516_v22 = vand.u32 4294901760, %v9772_v5  ;;  %11706 = vst [vmem:[#allocation18_spill] sm:$0xff] %v9889_v27  ;;  %v3020_v4 = vld [vmem:[%s11483_s4 + $0x30] sm:$0xff] }
 0x340   :  { %8317 = vmatpush3.msra.mxu0 %v9585_v1  ;;  %8334 = vmatpush3.msra.mxu1 %v9489_v31  ;;  %v3040_v31 = vld [vmem:[%s11483_s4 + $0xd0] sm:$0xff]  ;;  %v9794_v1 = vsub.f32 %v3042_v40, %v9753_v33  ;;  %v9817_v26 = vsub.f32 %v9731_v29, %v11522_v55  ;;  %v9846_v60 = vsub.f32 %v9751_v59, %v11519_v18  ;;  %v9975_v18 = vand.u32 4294901760, %v3020_v4 }
 0x341   :  { %8318 = vmatprep.subr.mxu0 %v9598_v14  ;;  %8335 = vmatprep.subr.mxu1 %v9499_v15  ;;  %v9796_v42 = vand.u32 4294901760, %v3040_v31  ;;  %v9873_v47 = vsub.f32 %v9772_v5, %v11516_v22  ;;  %11708 = vst [vmem:[#allocation20_spill] sm:$0xff] %v9919_v46  ;;  %v3019_v22 = vld [vmem:[%s11483_s4 + $0x28] sm:$0xff] }
 0x342   :  { %8319 = vmatpush3.msra.mxu0 %v9598_v14  ;;  %8336 = vmatpush3.msra.mxu1 %v9499_v15  ;;  %v9785_v15 = vand.u32 4294901760, %v3025_v10  ;;  %11698 = vst [vmem:[#allocation10_spill] sm:$0xff] %v9794_v1  ;;  %v9805_v14 = vsub.f32 %v3026_v39, %v9763_v32  ;;  %v11513_v24 = vand.u32 4294901760, %v9794_v1 }
 0x343   :  { %8320 = vmatprep.subr.mxu0 %v9608_v3  ;;  %8337 = vmatprep.subr.mxu1 %v9508_v38  ;;  %v9850_v21 = vsub.f32 %v3040_v31, %v9796_v42 }
 0x344   :  { %8321 = vmatpush3.msra.mxu0 %v9608_v3  ;;  %8338 = vmatpush3.msra.mxu1 %v9508_v38  ;;  %11699 = vst [vmem:[#allocation11_spill] sm:$0xff] %v9805_v14  ;;  %v9807_v38 = vand.u32 4294901760, %v3024_v56  ;;  %v9821_v3 = vsub.f32 %v3041_v44, %v9774_v0  ;;  %v11512_v13 = vand.u32 4294901760, %v9805_v14  ;;  %v9899_v40 = vsub.f32 %v9794_v1, %v11513_v24  ;;  %v3035_v24 = vld [vmem:[%s11483_s4 + $0xa8] sm:$0xff] }
 0x345   :  { %8322 = vmatprep.subr.mxu0 %v9618_v17  ;;  %8339 = vmatprep.subr.mxu1 %v9520_v41  ;;  %11702 = vst [vmem:[#allocation14_spill] sm:$0xff] %v9850_v21  ;;  %v11518_v39 = vand.u32 4294901760, %v9850_v21  ;;  %v9904_v44 = vsub.f32 %v3038_v61, %v9852_v16  ;;  %v3036_v61 = vld [vmem:[%s11483_s4 + $0xb0] sm:$0xff]  ;;  %v9990_v55 = vand.u32 4294901760, %v3035_v24 }
 0x346   :  { %8323 = vmatpush3.msra.mxu0 %v9618_v17  ;;  %8340 = vmatpush3.msra.mxu1 %v9520_v41  ;;  %11700 = vst [vmem:[#allocation12_spill] sm:$0xff] %v9821_v3  ;;  %v9833_v41 = vsub.f32 %v9741_v50, %v11520_v6  ;;  %v9837_v17 = vsub.f32 %v3025_v10, %v9785_v15  ;;  %v11511_v11 = vand.u32 4294901760, %v9821_v3  ;;  %v3021_v10 = vld [vmem:[%s11483_s4 + $0x38] sm:$0xff]  ;;  %v3034_v6 = vld [vmem:[%s11483_s4 + $0xa0] sm:$0xff] }
 0x347   :  { %8324 = vmatprep.subr.mxu0 %v9625_v63  ;;  %8341 = vmatprep.subr.mxu1 %v9531_v52  ;;  %v9863_v23 = vsub.f32 %v3024_v56, %v9807_v38  ;;  %11707 = vst [vmem:[#allocation19_spill] sm:$0xff] %v9904_v44  ;;  %v9914_v56 = vsub.f32 %v9805_v14, %v11512_v13  ;;  %v9947_v13 = vand.u32 4294901760, %v3021_v10  ;;  %v3014_v14 = vld [vmem:[%s11483_s4] sm:$0xff] }
 0x348   :  { %11701 = vst [vmem:[#allocation13_spill] sm:$0xff] %v9837_v17  ;;  %8325 = vmatpush3.msra.mxu0 %v9625_v63  ;;  %8326 = vmatprep.mubr.f32.mxu0 %v9041_v62  ;;  %v9859_v63 = vsub.f32 %v9761_v37, %v11517_v20  ;;  %v3190_v36 = vand.u32 4294901760, %v9833_v41  ;;  %v11514_v28 = vand.u32 4294901760, %v9837_v17  ;;  %v11523_v41 = vand.u32 4294901760, %v9877_v8 }
 0x349   :  { %8342 = vmatpush3.msra.mxu1 %v9531_v52  ;;  %8327 = vmatmul.mubr.f32.vlgmr.msra.gmra.mxu0 %v9345_v7  ;;  %11704 = vst [vmem:[#allocation16_spill] sm:$0xff] %v9863_v23  ;;  %v3302_v52 = vand.u32 4294901760, %v9817_v26  ;;  %v11521_v58 = vand.u32 4294901760, %v9863_v23  ;;  %v9929_v26 = vsub.f32 %v9821_v3, %v11511_v11  ;;  %v11524_v11 = vand.u32 4294901760, %v9889_v27 }
 0x34a   :  { %8343 = vmatprep.subr.mxu1 %v9553_v2  ;;  %8351 = vmatprep.mubr.f32.mxu1 %v9041_v62  ;;  %v9884_v62 = vsub.f32 %v9783_v35, %v11515_v45  ;;  %v3197_v31 = vand.u32 4294901760, %v9859_v63  ;;  %v9961_v45 = vand.u32 4294901760, %v3036_v61  ;;  %v3211_v20 = vand.u32 4294901760, %v9914_v56 }
 0x34b   :  { %8344 = vmatpush3.msra.mxu1 %v9553_v2  ;;  %7556 = vmatprep.subr.mxu0 %v9702_v57  ;;  %v3309_v2 = vand.u32 4294901760, %v9846_v60  ;;  %v9933_v60 = vand.u32 4294901760, %v3037_v54  ;;  %v9985_v56 = vsub.f32 %v9877_v8, %v11523_v41  ;;  %v3033_v41 = vld [vmem:[%s11483_s4 + $0x98] sm:$0xff] }
 0x34c   :  { %8345 = vmatprep.subr.mxu1 %v9566_v51  ;;  %7557 = vmatpush3.msra.mxu0 %v9709_v49  ;;  %v3204_v63 = vand.u32 4294901760, %v9884_v62  ;;  %v9957_v62 = vsub.f32 %v9850_v21, %v11518_v39  ;;  %v3018_v39 = vld [vmem:[%s11483_s4 + $0x20] sm:$0xff] }
 0x34d   :  { %8346 = vmatpush3.msra.mxu1 %v9566_v51  ;;  %7558 = vmatprep.subr.mxu0 %v9716_v53  ;;  %v3316_v51 = vand.u32 4294901760, %v9873_v47  ;;  %11709 = vst [vmem:[#allocation21_spill] sm:$0xff] %v9933_v60  ;;  %v9943_v47 = vsub.f32 %v9837_v17, %v11514_v28  ;;  %v11529_v28 = vand.u32 4294901760, %v9904_v44 }
 0x34e   :  { %8347 = vmatprep.subr.mxu1 %v9575_v9  ;;  %7559 = vmatpush3.msra.mxu0 %v9723_v25 }
 0x34f   :  { %8348 = vmatpush3.msra.mxu1 %v9575_v9  ;;  %7560 = vmatprep.subr.mxu0 %v9733_v30  ;;  %v3323_v9 = vand.u32 4294901760, %v9899_v40  ;;  %v9971_v40 = vsub.f32 %v9863_v23, %v11521_v58  ;;  %v9988_v58 = vsub.f32 %v3037_v54, %v9933_v60  ;;  %v10005_v54 = vand.u32 4294901760, %v3019_v22 }
 0x350   :  { %8349 = vmatprep.subr.mxu1 %v9588_v19  ;;  %7561 = vmatpush3.msra.mxu0 %v9743_v12 }
 0x351   :  { %8350 = vmatpush3.msra.mxu1 %v9588_v19  ;;  %7562 = vmatprep.subr.mxu0 %v9753_v33  ;;  %v3330_v19 = vand.u32 4294901760, %v9929_v26  ;;  %11710 = vst [vmem:[#allocation22_spill] sm:$0xff] %v9988_v58  ;;  %v10003_v26 = vsub.f32 %v3021_v10, %v9947_v13  ;;  %v10020_v10 = vand.u32 4294901760, %v3034_v6  ;;  %v11719_v3 = vand.u32 4294901760, %v9988_v58 }
 0x352   :  { %8352 = vmatmul.mubr.f32.vlgmr.msra.gmra.mxu1 %v9345_v7  ;;  %7594 = vmatprep.subr.mxu1 %v3302_v52  ;;  %v3218_v7 = vand.u32 4294901760, %v9943_v47  ;;  %v9999_v52 = vsub.f32 %v9889_v27, %v11524_v11  ;;  %v10014_v47 = vsub.f32 %v9904_v44, %v11529_v28  ;;  %v10018_v11 = vsub.f32 %v3036_v61, %v9961_v45  ;;  %v3017_v27 = vld [vmem:[%s11483_s4 + $0x18] sm:$0xff]  ;;  %v3032_v44 = vld [vmem:[%s11483_s4 + $0x90] sm:$0xff] }
 0x353   :  { %7595 = vmatpush3.msra.mxu1 %v3190_v36  ;;  %7563 = vmatpush3.msra.mxu0 %v9763_v32  ;;  %11711 = vst [vmem:[#allocation23_spill] sm:$0xff] %v10003_v26  ;;  %v3337_v36 = vand.u32 4294901760, %v9957_v62  ;;  %v11713_v62 = vand.u32 4294901760, %v9919_v46  ;;  %v10033_v28 = vsub.f32 %v3020_v4, %v9975_v18  ;;  %v10035_v61 = vand.u32 4294901760, %v3018_v39  ;;  %v3016_v4 = vld [vmem:[%s11483_s4 + $0x10] sm:$0xff] }
 0x354   :  { %7596 = vmatprep.subr.mxu1 %v3309_v2  ;;  %7564 = vmatprep.subr.mxu0 %v9774_v0  ;;  %11712 = vst [vmem:[#allocation24_spill] sm:$0xff] %v10018_v11  ;;  %v3225_v2 = vand.u32 4294901760, %v9971_v40  ;;  %v3232_v23 = vand.u32 4294901760, %v9999_v52  ;;  %v10057_v40 = vand.u32 4294901760, %v3017_v27  ;;  %v3351_v21 = vand.u32 4294901760, %v10014_v47 }
 0x355   :  { %7597 = vmatpush3.msra.mxu1 %v3197_v31  ;;  %v10029_v8 = vsub.f32 %v9919_v46, %v11713_v62  ;;  %7565 = vmatpush3.msra.mxu0 %v9785_v15  ;;  %11714 = vst [vmem:[#allocation25_spill] sm:$0xff] %v10033_v28  ;;  %v3344_v31 = vand.u32 4294901760, %v9985_v56  ;;  %v10044_v62 = vsub.f32 %v3035_v24, %v9990_v55  ;;  %v10046_v46 = vand.u32 4294901760, %v3033_v41  ;;  %v3031_v24 = vld [vmem:[%s11483_s4 + $0x88] sm:$0xff] }
 0x356   :  { %7598 = vmatprep.subr.mxu1 %v3316_v51  ;;  %7566 = vmatprep.subr.mxu0 %v9796_v42  ;;  %v10055_v56 = vsub.f32 %v3019_v22, %v10005_v54  ;;  %v10066_v52 = vsub.f32 %v3034_v6, %v10020_v10  ;;  %v10068_v51 = vand.u32 4294901760, %v3032_v44  ;;  %v3015_v22 = vld [vmem:[%s11483_s4 + $0x8] sm:$0xff]  ;;  %v10077_v47 = vsub.f32 %v3018_v39, %v10035_v61  ;;  %v3030_v6 = vld [vmem:[%s11483_s4 + $0x80] sm:$0xff] }
 0x357   :  { %11715 = vst [vmem:[#allocation26_spill] sm:$0xff] %v10044_v62  ;;  %7599 = vmatpush3.msra.mxu1 %v3204_v63  ;;  %7567 = vmatpush3.msra.mxu0 %v9807_v38  ;;  %v3239_v17 = vand.u32 4294901760, %v10029_v8  ;;  %v10079_v63 = vand.u32 4294901760, %v3016_v4  ;;  %v10092_v39 = vand.u32 4294901760, %v3031_v24  ;;  %v10103_v8 = vsub.f32 %v3017_v27, %v10057_v40 }
 0x358   :  { %11716 = vst [vmem:[#allocation27_spill] sm:$0xff] %v10055_v56  ;;  %7600 = vmatprep.subr.mxu1 %v3323_v9  ;;  %7568 = vmatprep.subr.mxu0 %v9823_v43  ;;  %11717 = vst [vmem:[#allocation28_spill] sm:$0xff] %v10066_v52  ;;  %v10090_v9 = vsub.f32 %v3033_v41, %v10046_v46  ;;  %v10105_v41 = vand.u32 4294901760, %v3015_v22  ;;  %v11728_v27 = vand.u32 4294901760, %v10033_v28 }
 0x359   :  { %7601 = vmatpush3.msra.mxu1 %v3211_v20  ;;  %7569 = vmatpush3.msra.mxu0 %v9839_v34  ;;  %11718 = vst [vmem:[#allocation29_spill] sm:$0xff] %v10077_v47  ;;  %v3357_v20 = vsub.f32 %v9988_v58, %v11719_v3  ;;  %11721 = vst [vmem:[#allocation31_spill] sm:$0xff] %v10092_v39  ;;  %v11725_v58 = vand.u32 4294901760, %v10018_v11  ;;  %v10115_v3 = vand.u32 4294901760, %v3030_v6 }
 0x35a   :  { %7602 = vmatprep.subr.mxu1 %v3330_v19  ;;  %7570 = vmatprep.subr.mxu0 %v9852_v16  ;;  %11720 = vst [vmem:[#allocation30_spill] sm:$0xff] %v10090_v9  ;;  %v11722_v19 = vand.u32 4294901760, %v10003_v26  ;;  %11723 = vst [vmem:[#allocation32_spill] sm:$0xff] %v10103_v8 }
 0x35b   :  { %7603 = vmatpush3.msra.mxu1 %v3218_v7  ;;  %7571 = vmatpush3.msra.mxu0 %v9865_v48  ;;  %11724 = vst [vmem:[#allocation33_spill] sm:$0xff] %v10105_v41  ;;  %v3364_v16 = vsub.f32 %v10018_v11, %v11725_v58  ;;  %11727 = vst [vmem:[#allocation35_spill] sm:$0xff] %v10115_v3  ;;  %v10123_v58 = vsub.f32 %v3016_v4, %v10079_v63  ;;  %v10125_v7 = vand.u32 4294901760, %v3014_v14 }
 0x35c   :  { %v3245_v1 = vsub.f32 %v10003_v26, %v11722_v19  ;;  %7604 = vmatprep.subr.mxu1 %v3337_v36  ;;  %7572 = vmatprep.subr.mxu0 %v9933_v60  ;;  %v10113_v19 = vsub.f32 %v3032_v44, %v10068_v51  ;;  %v3252_v26 = vsub.f32 %v10033_v28, %v11728_v27  ;;  %v3358_v11 = vand.u32 4294901760, %v3357_v20 }
 0x35d   :  { %7605 = vmatpush3.msra.mxu1 %v3225_v2  ;;  %7573 = vmatpush3.msra.mxu0 %v9947_v13  ;;  %11729 = vst [vmem:[#allocation36_spill] sm:$0xff] %v10123_v58  ;;  %11730 = vst [vmem:[#allocation37_spill] sm:$0xff] %v10125_v7  ;;  %v11731_v44 = vand.u32 4294901760, %v10044_v62  ;;  %v10133_v27 = vsub.f32 %v3031_v24, %v10092_v39  ;;  %v11733_v4 = vand.u32 4294901760, %v10055_v56  ;;  %v11735_v2 = vand.u32 4294901760, %v10066_v52 }
 0x35e   :  { %11726 = vst [vmem:[#allocation34_spill] sm:$0xff] %v10113_v19  ;;  %7606 = vmatprep.subr.mxu1 %v3344_v31  ;;  %7574 = vmatprep.subr.mxu0 %v9961_v45  ;;  %v3246_v36 = vand.u32 4294901760, %v3245_v1  ;;  %v10141_v20 = vsub.f32 %v3015_v22, %v10105_v41  ;;  %v10149_v1 = vsub.f32 %v3030_v6, %v10115_v3  ;;  %v11737_v31 = vand.u32 4294901760, %v10077_v47 }
 0x35f   :  { %v3371_v60 = vsub.f32 %v10044_v62, %v11731_v44  ;;  %11732 = vst [vmem:[#allocation38_spill] sm:$0xff] %v10133_v27  ;;  %7607 = vmatpush3.msra.mxu1 %v3232_v23  ;;  %v3259_v28 = vsub.f32 %v10055_v56, %v11733_v4  ;;  %7575 = vmatpush3.msra.mxu0 %v9975_v18  ;;  %v3365_v44 = vand.u32 4294901760, %v3364_v16  ;;  %v3253_v4 = vand.u32 4294901760, %v3252_v26 }
 0x360   :  { %11734 = vst [vmem:[#allocation39_spill] sm:$0xff] %v10141_v20  ;;  %7608 = vmatprep.subr.mxu1 %v3351_v21  ;;  %v3378_v24 = vsub.f32 %v10066_v52, %v11735_v2  ;;  %7576 = vmatprep.subr.mxu0 %v9990_v55  ;;  %11736 = vst [vmem:[#allocation40_spill] sm:$0xff] %v10149_v1  ;;  %v3266_v22 = vsub.f32 %v10077_v47, %v11737_v31  ;;  %v11739_v23 = vand.u32 4294901760, %v10090_v9 }
 0x361   :  { %7609 = vmatpush3.msra.mxu1 %v3239_v17  ;;  %7577 = vmatpush3.msra.mxu0 %v10005_v54  ;;  %v10157_v16 = vsub.f32 %v3014_v14, %v10125_v7  ;;  %v3372_v2 = vand.u32 4294901760, %v3371_v60  ;;  %v11562_v17 = vand.u32 4294901760, %v10133_v27  ;;  %v3260_v26 = vand.u32 4294901760, %v3259_v28 }
 0x362   :  { %7610 = vmatprep.subr.mxu1 %v3358_v11  ;;  %v3385_v6 = vsub.f32 %v10090_v9, %v11739_v23  ;;  %7578 = vmatprep.subr.mxu0 %v10020_v10  ;;  %v11740_v31 = vand.u32 4294901760, %v10103_v8  ;;  %v3379_v14 = vand.u32 4294901760, %v3378_v24  ;;  %v11741_v11 = vand.u32 4294901760, %v10113_v19 }
 0x363   :  { %11738 = vst [vmem:[#allocation41_spill] sm:$0xff] %v10157_v16  ;;  %7611 = vmatpush3.msra.mxu1 %v3246_v36  ;;  %7579 = vmatpush3.msra.mxu0 %v10035_v61  ;;  %v11561_v23 = vand.u32 4294901760, %v10149_v1  ;;  %v3267_v28 = vand.u32 4294901760, %v3266_v22  ;;  %v11742_v36 = vand.u32 4294901760, %v10123_v58  ;;  %v11560_v47 = vand.u32 4294901760, %v10157_v16 }
 0x364   :  { %v3273_v21 = vsub.f32 %v10103_v8, %v11740_v31  ;;  %7612 = vmatprep.subr.mxu1 %v3365_v44  ;;  %v3392_v60 = vsub.f32 %v10113_v19, %v11741_v11  ;;  %7580 = vmatprep.subr.mxu0 %v10046_v46  ;;  %v3386_v44 = vand.u32 4294901760, %v3385_v6  ;;  %v3399_v24 = vsub.f32 %v10133_v27, %v11562_v17 }
 0x365   :  { %7613 = vmatpush3.msra.mxu1 %v3253_v4  ;;  %v3280_v31 = vsub.f32 %v10123_v58, %v11742_v36  ;;  %7581 = vmatpush3.msra.mxu0 %v10057_v40  ;;  %v11743_v4 = vand.u32 4294901760, %v10141_v20 }
 0x366   :  { %7614 = vmatprep.subr.mxu1 %v3372_v2  ;;  %7582 = vmatprep.subr.mxu0 %v10068_v51  ;;  %v3274_v11 = vand.u32 4294901760, %v3273_v21  ;;  %v3393_v36 = vand.u32 4294901760, %v3392_v60  ;;  %v3406_v2 = vsub.f32 %v10149_v1, %v11561_v23  ;;  %v3294_v21 = vsub.f32 %v10157_v16, %v11560_v47 }
 0x367   :  { %7615 = vmatpush3.msra.mxu1 %v3260_v26  ;;  %v3287_v22 = vsub.f32 %v10141_v20, %v11743_v4  ;;  %7583 = vmatpush3.msra.mxu0 %v10079_v63  ;;  %v3281_v6 = vand.u32 4294901760, %v3280_v31  ;;  %v3400_v26 = vand.u32 4294901760, %v3399_v24 }
 0x368   :  { %7616 = vmatprep.subr.mxu1 %v3379_v14  ;;  %7584 = vmatprep.subr.mxu0 %v10092_v39  ;;  %v3407_v60 = vand.u32 4294901760, %v3406_v2 }
 0x369   :  { %7617 = vmatpush3.msra.mxu1 %v3267_v28  ;;  %7585 = vmatpush3.msra.mxu0 %v10105_v41  ;;  %v3288_v14 = vand.u32 4294901760, %v3287_v22  ;;  %v3295_v28 = vand.u32 4294901760, %v3294_v21 }
 0x36a   :  { %7618 = vmatprep.subr.mxu1 %v3386_v44  ;;  %7586 = vmatprep.subr.mxu0 %v10115_v3 }
 0x36b   :  { %7619 = vmatpush3.msra.mxu1 %v3274_v11  ;;  %7587 = vmatpush3.msra.mxu0 %v10125_v7 }
 0x36c   :  { %7620 = vmatprep.subr.mxu1 %v3393_v36  ;;  %7632 = vmatprep.subr.mxu0 %v9731_v29  ;;  %v10199_v29 = vpop.permute.xlu1 %1576 }
 0x36d   :  { %7621 = vmatpush3.msra.mxu1 %v3281_v6  ;;  %11744 = vst [vmem:[#allocation42_spill] sm:$0xff] %v10199_v29 }
 0x36e   :  { %7622 = vmatprep.subr.mxu1 %v3400_v26 }
 0x36f   :  { %7623 = vmatpush3.msra.mxu1 %v3288_v14  ;;  %v10202_v14 = vpop.permute.xlu0 %1581 }
 0x370   :  { %7624 = vmatprep.subr.mxu1 %v3407_v60 }
 0x371   :  { %7625 = vmatpush3.msra.mxu1 %v3295_v28 }
 0x372   :  { %7670 = vmatprep.subr.mxu1 %v9702_v57 }
 0x38d   :  { %v1684_v31 = vpop.f32.mrf.mxu0 }
 0x38e   :  { %v1685_v21 = vadd.f32 %v1684_v31, %v10199_v29 }
 0x38f   :  { %v1686_v44 = vpop.f32.mrf.mxu0 }
 0x390   :  { %v1687_v28 = vadd.f32 %v1686_v44, %v10199_v29 }
 0x394   :  { %v1877_v4 = vpop.f32.mrf.mxu1 }
 0x395   :  { %v1878_v1 = vadd.f32 %v1877_v4, %v1685_v21 }
 0x396   :  { %v1879_v22 = vpop.f32.mrf.mxu1 }
 0x397   :  { %v1880_v19 = vadd.f32 %v1879_v22, %v1687_v28 }
 0x39f   :  { %v1695_v24 = vpop.f32.mrf.mxu0 }
 0x3a0   :  { %v1696_v20 = vadd.f32 %v1695_v24, %v10202_v14 }
 0x3a1   :  { %v1697_v11 = vpop.f32.mrf.mxu0 }
 0x3a2   :  { %v1698_v27 = vadd.f32 %v1697_v11, %v10202_v14  ;;  %v10207_v11 = vstv %s8609_s10 }
 0x3a4   :  { %v2001_v47 = vpop.f32.mrf.mxu0 }
 0x3a5   :  { %v2002_v8 = vadd.f32 %v2001_v47, %v1878_v1 }
 0x3a6   :  { %v2003_v36 = vpop.f32.mrf.mxu0 }
 0x3a7   :  { %v2004_v9 = vadd.f32 %v2003_v36, %v1880_v19 }
 0x3a8   :  { %v1884_v23 = vpop.f32.mrf.mxu1 }
 0x3a9   :  { %v1885_v7 = vadd.f32 %v1884_v23, %v1696_v20 }
 0x3aa   :  { %v1886_v2 = vpop.f32.mrf.mxu1 }
 0x3ab   :  { %v2009_v17 = vpop.f32.mrf.mxu0  ;;  %v1887_v31 = vadd.f32 %v1886_v2, %v1698_v27 }
 0x3ac   :  { %v2010_v29 = vadd.f32 %v2009_v17, %v1885_v7 }
 0x3ad   :  { %v2011_v26 = vpop.f32.mrf.mxu0 }
 0x3ae   :  { %v2012_v24 = vadd.f32 %v2011_v26, %v1887_v31 }
 0x3af   :  { %v2105_v6 = vpop.f32.mrf.mxu1 }
 0x3b0   :  { %v2106_v3 = vadd.f32 %v2105_v6, %v2002_v8 }
 0x3b1   :  { %v2107_v60 = vpop.f32.mrf.mxu1 }
 0x3b2   :  { %v2108_v41 = vadd.f32 %v2107_v60, %v2004_v9 }
 0x3b5   :  { %v2114_v58 = vpop.f32.mrf.mxu1 }
 0x3b6   :  { %v2115_v22 = vadd.f32 %v2114_v58, %v2010_v29 }
 0x3b7   :  { %v2116_v52 = vpop.f32.mrf.mxu1 }
 0x3b8   :  { %v2117_v20 = vadd.f32 %v2116_v52, %v2012_v24 }
 0x3bf   :  { %v2252_v16 = vpop.f32.mrf.mxu0 }
 0x3c0   :  { %v2253_v56 = vadd.f32 %v2252_v16, %v2106_v3 }
 0x3c1   :  { %v2254_v57 = vpop.f32.mrf.mxu0 }
 0x3c2   :  { %v2255_v4 = vadd.f32 %v2254_v57, %v2108_v41 }
 0x3c5   :  { %v2259_v39 = vpop.f32.mrf.mxu0 }
 0x3c6   :  { %v2260_v8 = vadd.f32 %v2259_v39, %v2115_v22 }
 0x3c7   :  { %v2261_v47 = vpop.f32.mrf.mxu0 }
 0x3c8   :  { %v2262_v3 = vadd.f32 %v2261_v47, %v2117_v20 }
 0x3c9   :  { %v2353_v44 = vpop.f32.mrf.mxu1 }
 0x3ca   :  { %v2354_v21 = vadd.f32 %v2353_v44, %v2253_v56 }
 0x3cb   :  { %v2355_v62 = vpop.f32.mrf.mxu1 }
 0x3cc   :  { %v2990_v1 = vmin.f32 %v2354_v21, 0.0  ;;  %v2356_v19 = vadd.f32 %v2355_v62, %v2255_v4  ;;  %v2984_v27 = vmax.f32 %v2354_v21, 0.0 }
 0x3ce   :  { %v2991_v23 = vmin.f32 %v2356_v19, 0.0  ;;  %v3002_v9 = vmul.f32 %v10207_v11, %v2990_v1  ;;  %v2985_v36 = vmax.f32 %v2356_v19, 0.0 }
 0x3cf   :  { %v2360_v16 = vpop.f32.mrf.mxu1 }
 0x3d0   :  { %v3003_v57 = vmul.f32 %v10207_v11, %v2991_v23  ;;  %v2361_v56 = vadd.f32 %v2360_v16, %v2260_v8  ;;  %v3008_v41 = vadd.f32 %v3002_v9, %v2984_v27 }
 0x3d1   :  { %v2362_v7 = vpop.f32.mrf.mxu1 }
 0x3d2   :  { %v2993_v17 = vmin.f32 %v2361_v56, 0.0  ;;  %v2363_v2 = vadd.f32 %v2362_v7, %v2262_v3  ;;  %v3009_v29 = vadd.f32 %v3003_v57, %v2985_v36  ;;  %v10211_v58 = vand.u32 4294901760, %v3008_v41  ;;  %v11749_v7 = vld [vmem:[#allocation15_spill] sm:$0xff] }
 0x3d3   :  { %v2987_v62 = vmax.f32 %v2361_v56, 0.0 }
 0x3d4   :  { %11745 = vst [vmem:[#allocation43_spill] sm:$0xff] %v10211_v58  ;;  %v3005_v52 = vmul.f32 %v10207_v11, %v2993_v17  ;;  %v2994_v39 = vmin.f32 %v2363_v2, 0.0  ;;  %v10214_v6 = vand.u32 4294901760, %v3009_v29  ;;  %v10217_v26 = vsub.f32 %v3008_v41, %v10211_v58  ;;  %v11748_v41 = vld [vmem:[#allocation10_spill] sm:$0xff]  ;;  %v11750_v17 = vld [vmem:[#allocation11_spill] sm:$0xff] }
 0x3d5   :  { %v2988_v28 = vmax.f32 %v2363_v2, 0.0  ;;  %v11751_v2 = vld [vmem:[#allocation12_spill] sm:$0xff] }
 0x3d6   :  { %v3011_v60 = vadd.f32 %v3005_v52, %v2987_v62  ;;  %v3006_v31 = vmul.f32 %v10207_v11, %v2994_v39  ;;  %3410 = vmatprep.mubr.f32.mxu1 %v10214_v6  ;;  %v3155_v44 = vsub.f32 %v3009_v29, %v10214_v6  ;;  %v11597_v4 = vand.u32 4294901760, %v10217_v26  ;;  %v11752_v29 = vld [vmem:[#allocation21_spill] sm:$0xff]  ;;  %v11754_v52 = vld [vmem:[#allocation14_spill] sm:$0xff]  ;;  %v11755_v39 = vld [vmem:[#allocation16_spill] sm:$0xff] }
 0x3d7   :  { %3412 = vmatmul.mubr.f32.vlgmr.msra.gmra.mxu1 %v10211_v58  ;;  %v11753_v62 = vld [vmem:[#allocation13_spill] sm:$0xff]  ;;  %v11774_v58 = vld [vmem:[#allocation8_spill] sm:$0xff] }
 0x3d8   :  { %v10224_v21 = vand.u32 4294901760, %v3011_v60  ;;  %v3012_v24 = vadd.f32 %v3006_v31, %v2988_v28  ;;  %7671 = vmatpush3.msra.mxu1 %v9709_v49  ;;  %v3156_v22 = vand.u32 4294901760, %v3155_v44  ;;  %v3163_v20 = vsub.f32 %v10217_v26, %v11597_v4  ;;  %v11757_v28 = vld [vmem:[#allocation18_spill] sm:$0xff]  ;;  %v11758_v31 = vld [vmem:[#allocation19_spill] sm:$0xff]  ;;  %v11771_v4 = vld [vmem:[#allocation37_spill] sm:$0xff] }
 0x3d9   :  { %7672 = vmatprep.subr.mxu1 %v9716_v53 }
 0x3da   :  { %11746 = vst [vmem:[#allocation44_spill] sm:$0xff] %v10224_v21  ;;  %v10229_v47 = vsub.f32 %v3011_v60, %v10224_v21  ;;  %v10231_v1 = vand.u32 4294901760, %v3012_v24  ;;  %7673 = vmatpush3.msra.mxu1 %v9723_v25  ;;  %v3157_v19 = vsub.f32 %v3155_v44, %v3156_v22  ;;  %v3164_v9 = vand.u32 4294901760, %v3163_v20  ;;  %v11756_v60 = vld [vmem:[#allocation17_spill] sm:$0xff] }
 0x3db   :  { %7674 = vmatprep.subr.mxu1 %v9733_v30  ;;  %v11763_v20 = vld [vmem:[#allocation25_spill] sm:$0xff] }
 0x3dc   :  { %11747 = vst [vmem:[#allocation45_spill] sm:$0xff] %v10231_v1  ;;  %v10239_v8 = vsub.f32 %v3012_v24, %v10231_v1  ;;  %3417 = vmatprep.mubr.f32.mxu1 %v10231_v1  ;;  %7675 = vmatpush3.msra.mxu1 %v9743_v12  ;;  %v3158_v27 = vand.u32 4294901760, %v3157_v19  ;;  %v11596_v23 = vand.u32 4294901760, %v10229_v47  ;;  %v11760_v24 = vld [vmem:[#allocation22_spill] sm:$0xff]  ;;  %v11762_v19 = vld [vmem:[#allocation24_spill] sm:$0xff]  ;;  %v11773_v1 = vand.u32 4294901760, %v10217_v26 }
 0x3dd   :  { %3419 = vmatmul.mubr.f32.gmra.mxu1 %v10224_v21  ;;  %7676 = vmatprep.subr.mxu1 %v9753_v33  ;;  %v11772_v21 = vld [vmem:[#allocation30_spill] sm:$0xff] }
 0x3de   :  { %3670 = vmatprep.mubr.f32.mxu1 %v3156_v22  ;;  %7677 = vmatpush3.msra.mxu1 %v9763_v32  ;;  %v3171_v3 = vand.u32 4294901760, %v10239_v8  ;;  %v3178_v16 = vsub.f32 %v10229_v47, %v11596_v23  ;;  %v11761_v22 = vld [vmem:[#allocation23_spill] sm:$0xff]  ;;  %v11770_v23 = vld [vmem:[#allocation29_spill] sm:$0xff] }
 0x3df   :  { %3159 = vmatprep.mubr.f32.mxu0 %v3158_v27  ;;  %7678 = vmatprep.subr.mxu1 %v9774_v0  ;;  %v11764_v27 = vld [vmem:[#allocation26_spill] sm:$0xff] }
 0x3e0   :  { %3165 = vmatmul.mubr.f32.vlgmr.msra.gmra.mxu0 %v3164_v9  ;;  %7679 = vmatpush3.msra.mxu1 %v9785_v15  ;;  %v3172_v36 = vsub.f32 %v10239_v8, %v3171_v3  ;;  %v3179_v56 = vand.u32 4294901760, %v3178_v16  ;;  %v11765_v9 = vld [vmem:[#allocation31_spill] sm:$0xff] }
 0x3e1   :  { %7633 = vmatpush3.msra.mxu0 %v9741_v50  ;;  %7680 = vmatprep.subr.mxu1 %v9796_v42  ;;  %v11766_v16 = vld [vmem:[#allocation27_spill] sm:$0xff] }
 0x3e2   :  { %7634 = vmatprep.subr.mxu0 %v9751_v59  ;;  %7681 = vmatpush3.msra.mxu1 %v9807_v38  ;;  %v3173_v57 = vand.u32 4294901760, %v3172_v36  ;;  %v11767_v36 = vld [vmem:[#allocation33_spill] sm:$0xff] }
 0x3e3   :  { %7635 = vmatpush3.msra.mxu0 %v9761_v37  ;;  %7682 = vmatprep.subr.mxu1 %v9823_v43 }
 0x3e4   :  { %3174 = vmatprep.mubr.f32.mxu0 %v3173_v57  ;;  %7636 = vmatprep.subr.mxu0 %v9772_v5  ;;  %v11768_v57 = vld [vmem:[#allocation28_spill] sm:$0xff] }
 0x3e5   :  { %3180 = vmatmul.mubr.f32.gmra.mxu0 %v3179_v56  ;;  %7683 = vmatpush3.msra.mxu1 %v9839_v34  ;;  %v11769_v56 = vld [vmem:[#allocation35_spill] sm:$0xff] }
 0x3e6   :  { %7637 = vmatpush3.msra.mxu0 %v9783_v35  ;;  %3554 = vmatprep.mubr.f32.mxu0 %v3155_v44  ;;  %v11759_v44 = vld [vmem:[#allocation20_spill] sm:$0xff] }
 0x3e7   :  { %7638 = vmatprep.subr.mxu0 %v11748_v41  ;;  %7684 = vmatprep.subr.mxu1 %v11749_v7 }
 0x3e8   :  { %7639 = vmatpush3.msra.mxu0 %v11750_v17  ;;  %7685 = vmatpush3.msra.mxu1 %v9865_v48 }
 0x3e9   :  { %7640 = vmatprep.subr.mxu0 %v11751_v2  ;;  %7686 = vmatprep.subr.mxu1 %v11752_v29 }
 0x3ea   :  { %7641 = vmatpush3.msra.mxu0 %v11753_v62  ;;  %7687 = vmatpush3.msra.mxu1 %v9947_v13 }
 0x3eb   :  { %7642 = vmatprep.subr.mxu0 %v11754_v52  ;;  %7688 = vmatprep.subr.mxu1 %v9961_v45 }
 0x3ec   :  { %7643 = vmatpush3.msra.mxu0 %v11755_v39  ;;  %7689 = vmatpush3.msra.mxu1 %v9975_v18 }
 0x3ed   :  { %7644 = vmatprep.subr.mxu0 %v11756_v60  ;;  %7690 = vmatprep.subr.mxu1 %v9990_v55 }
 0x3ee   :  { %7645 = vmatpush3.msra.mxu0 %v11757_v28  ;;  %7691 = vmatpush3.msra.mxu1 %v10005_v54 }
 0x3ef   :  { %7646 = vmatprep.subr.mxu0 %v11758_v31  ;;  %7692 = vmatprep.subr.mxu1 %v10020_v10 }
 0x3f0   :  { %7647 = vmatpush3.msra.mxu0 %v11759_v44  ;;  %7693 = vmatpush3.msra.mxu1 %v10035_v61 }
 0x3f1   :  { %7648 = vmatprep.subr.mxu0 %v11760_v24  ;;  %7694 = vmatprep.subr.mxu1 %v10046_v46 }
 0x3f2   :  { %7649 = vmatpush3.msra.mxu0 %v11761_v22  ;;  %7695 = vmatpush3.msra.mxu1 %v10057_v40 }
 0x3f3   :  { %7650 = vmatprep.subr.mxu0 %v11762_v19  ;;  %7696 = vmatprep.subr.mxu1 %v10068_v51 }
 0x3f4   :  { %7651 = vmatpush3.msra.mxu0 %v11763_v20  ;;  %7697 = vmatpush3.msra.mxu1 %v10079_v63 }
 0x3f5   :  { %7652 = vmatprep.subr.mxu0 %v11764_v27  ;;  %7698 = vmatprep.subr.mxu1 %v11765_v9  ;;  %v11775_v9 = vld [vmem:[#allocation32_spill] sm:$0xff] }
 0x3f6   :  { %7653 = vmatpush3.msra.mxu0 %v11766_v16  ;;  %7699 = vmatpush3.msra.mxu1 %v11767_v36  ;;  %v11776_v36 = vld [vmem:[#allocation34_spill] sm:$0xff] }
 0x3f7   :  { %7654 = vmatprep.subr.mxu0 %v11768_v57  ;;  %7700 = vmatprep.subr.mxu1 %v11769_v56  ;;  %v11777_v56 = vld [vmem:[#allocation36_spill] sm:$0xff] }
 0x3f8   :  { %7655 = vmatpush3.msra.mxu0 %v11770_v23  ;;  %7701 = vmatpush3.msra.mxu1 %v11771_v4  ;;  %v11778_v4 = vld [vmem:[#allocation38_spill] sm:$0xff] }
 0x3f9   :  { %7656 = vmatprep.subr.mxu0 %v11772_v21  ;;  %3674 = vmatmul.mubr.f32.vlgmr.msra.gmra.mxu1 %v11773_v1  ;;  %v11779_v21 = vand.u32 4294901760, %v10229_v47  ;;  %v8228_v1 = vpop.f32.mrf.mxu0 }
 0x3fa   :  { %7746 = vmatprep.subr.mxu1 %v11774_v58  ;;  %7657 = vmatpush3.msra.mxu0 %v11775_v9  ;;  %v11780_v58 = vld [vmem:[#allocation39_spill] sm:$0xff] }
 0x3fb   :  { %3681 = vmatprep.mubr.f32.mxu1 %v3171_v3  ;;  %7747 = vmatpush3.msra.mxu1 %v9709_v49  ;;  %v11781_v49 = vld [vmem:[#allocation40_spill] sm:$0xff]  ;;  %v8253_v3 = vpop.f32.mrf.mxu1 }
 0x3fc   :  { %7658 = vmatprep.subr.mxu0 %v11776_v36  ;;  %7748 = vmatprep.subr.mxu1 %v9716_v53  ;;  %v11782_v53 = vld [vmem:[#allocation41_spill] sm:$0xff] }
 0x3fd   :  { %7659 = vmatpush3.msra.mxu0 %v11777_v56  ;;  %7749 = vmatpush3.msra.mxu1 %v9723_v25  ;;  %v11783_v25 = vld [vmem:[#allocation9_spill] sm:$0xff] }
 0x3fe   :  { %7660 = vmatprep.subr.mxu0 %v11778_v4  ;;  %3685 = vmatmul.mubr.f32.gmra.mxu1 %v11779_v21  ;;  %v11784_v21 = vand.u32 4294901760, %v11783_v25 }
 0x3ff   :  { %7750 = vmatprep.subr.mxu1 %v9733_v30  ;;  %7661 = vmatpush3.msra.mxu0 %v11780_v58  ;;  %v2447_v30 = vpop.f32.mrf.mxu0 }
 0x400   :  { %7751 = vmatpush3.msra.mxu1 %v9743_v12  ;;  %3962 = vmatprep.mubr.f32.mxu1 %v10214_v6  ;;  %v3047_v12 = vld [vmem:[%s11483_s4 + $0x108] sm:$0x3] }
 0x401   :  { %7662 = vmatprep.subr.mxu0 %v11781_v49  ;;  %7752 = vmatprep.subr.mxu1 %v9753_v33  ;;  %v11785_v33 = vand.u32 4294901760, %v9741_v50  ;;  %v3056_v25 = vsel %vm3054_vm15, %v3047_v12, 0  ;;  %v11788_v50 = vand.u32 4294901760, %v9772_v5  ;;  %v11795_v12 = vand.u32 4294901760, %v11754_v52 }
 0x402   :  { %7663 = vmatpush3.msra.mxu0 %v11782_v53  ;;  %7753 = vmatpush3.msra.mxu1 %v9763_v32  ;;  %v8278_v32 = vpop.f32.mrf.mxu0  ;;  %v11798_v52 = vand.u32 4294901760, %v11757_v28 }
 0x403   :  { %3557 = vmatmul.mubr.f32.vlgmr.msra.gmra.mxu0 %v10217_v26  ;;  %7708 = vmatprep.subr.mxu0 %v11784_v21  ;;  %v11786_v26 = vand.u32 4294901760, %v9751_v59  ;;  %v2583_v21 = vpop.f32.mrf.mxu1  ;;  %v11789_v59 = vand.u32 4294901760, %v9783_v35  ;;  %v11792_v35 = vand.u32 4294901760, %v11750_v17 }
 0x404   :  { %7754 = vmatprep.subr.mxu1 %v9774_v0  ;;  %3563 = vmatprep.mubr.f32.mxu0 %v10239_v8  ;;  %v2458_v0 = vadd.f32 %v8228_v1, %v10202_v14  ;;  %v11787_v8 = vand.u32 4294901760, %v9761_v37  ;;  %v10346_v37 = vand.u32 4294901760, %v3056_v25 }
 0x405   :  { %7709 = vmatpush3.msra.mxu0 %v11785_v33  ;;  %7755 = vmatpush3.msra.mxu1 %v9785_v15  ;;  %v2683_v15 = vpop.f32.mrf.mxu0 }
 0x406   :  { %7710 = vmatprep.subr.mxu0 %v11786_v26  ;;  %7756 = vmatprep.subr.mxu1 %v9796_v42  ;;  %v8303_v42 = vpop.f32.mrf.mxu1  ;;  %v2590_v1 = vadd.f32 %v8253_v3, %v2458_v0  ;;  %v10365_v17 = vsub.f32 %v3056_v25, %v10346_v37  ;;  %v11801_v25 = vand.u32 4294901760, %v11760_v24 }
 0x407   :  { %7711 = vmatpush3.msra.mxu0 %v11787_v8  ;;  %7757 = vmatpush3.msra.mxu1 %v9807_v38  ;;  %v11790_v38 = vld [vmem:[#allocation42_spill] sm:$0xff]  ;;  %v11800_v8 = vand.u32 4294901760, %v11759_v44 }
 0x408   :  { %3566 = vmatmul.mubr.f32.gmra.mxu0 %v10229_v47  ;;  %7712 = vmatprep.subr.mxu0 %v11788_v50  ;;  %v2448_v14 = vadd.f32 %v2447_v30, %v11790_v38  ;;  %v11791_v47 = vand.u32 4294901760, %v11748_v41  ;;  %v11793_v30 = vand.u32 4294901760, %v11751_v2  ;;  %v2774_v41 = vpop.f32.mrf.mxu1 }
 0x409   :  { %7758 = vmatprep.subr.mxu1 %v9823_v43  ;;  %7713 = vmatpush3.msra.mxu0 %v11789_v59  ;;  %v8328_v5 = vpop.f32.mrf.mxu0  ;;  %v3046_v43 = vld [vmem:[%s11483_s4 + $0x100] sm:$0xff] }
 0x40a   :  { %3851 = vmatprep.mubr.f32.mxu0 %v10214_v6  ;;  %7759 = vmatpush3.msra.mxu1 %v9839_v34  ;;  %v2584_v34 = vadd.f32 %v2583_v21, %v2448_v14  ;;  %v2691_v6 = vadd.f32 %v8278_v32, %v2590_v1  ;;  %v10370_v2 = vand.u32 4294901760, %v3046_v43  ;;  %v11797_v32 = vand.u32 4294901760, %v11756_v60 }
 0x40b   :  { %7714 = vmatprep.subr.mxu0 %v11791_v47  ;;  %7760 = vmatprep.subr.mxu1 %v11749_v7  ;;  %v11794_v7 = vand.u32 4294901760, %v11753_v62  ;;  %v2886_v33 = vpop.f32.mrf.mxu0  ;;  %v11809_v14 = vand.u32 4294901760, %v11768_v57  ;;  %v11811_v47 = vand.u32 4294901760, %v11770_v23 }
 0x40c   :  { %7715 = vmatpush3.msra.mxu0 %v11792_v35  ;;  %7761 = vmatpush3.msra.mxu1 %v9865_v48  ;;  %v2684_v48 = vadd.f32 %v2683_v15, %v2584_v34  ;;  %v2783_v3 = vadd.f32 %v8303_v42, %v2691_v6  ;;  %v10388_v60 = vsub.f32 %v3046_v43, %v10370_v2  ;;  %v11805_v15 = vand.u32 4294901760, %v11764_v27  ;;  %v11806_v42 = vld [vmem:[#allocation31_spill] sm:$0xff]  ;;  %v11813_v35 = vld [vmem:[#allocation30_spill] sm:$0xff] }
 0x40d   :  { %7716 = vmatprep.subr.mxu0 %v11793_v30  ;;  %7762 = vmatprep.subr.mxu1 %v11752_v29  ;;  %v11796_v29 = vand.u32 4294901760, %v11755_v39  ;;  %v11814_v43 = vand.u32 4294901760, %v11813_v35  ;;  %v11815_v34 = vld [vmem:[#allocation43_spill] sm:$0xff]  ;;  %v11816_v6 = vand.u32 4294901760, %v11775_v9  ;;  %v11817_v30 = vld [vmem:[#allocation45_spill] sm:$0xff]  ;;  %v11822_v9 = vand.u32 4294901760, %v11780_v58 }
 0x40e   :  { %7717 = vmatpush3.msra.mxu0 %v11794_v7  ;;  %7763 = vmatpush3.msra.mxu1 %v9947_v13  ;;  %v2775_v62 = vadd.f32 %v2774_v41, %v2684_v48  ;;  %v2893_v13 = vadd.f32 %v8328_v5, %v2783_v3  ;;  %v10406_v24 = vand.u32 4294901760, %v10388_v60  ;;  %v11818_v41 = vand.u32 4294901760, %v11776_v36 }
 0x40f   :  { %7718 = vmatprep.subr.mxu0 %v11795_v12  ;;  %7764 = vmatprep.subr.mxu1 %v9961_v45  ;;  %v10382_v45 = vand.u32 4294901760, %v10365_v17  ;;  %v11819_v3 = vand.u32 4294901760, %v11777_v56  ;;  %v11820_v12 = vand.u32 4294901760, %v11778_v4  ;;  %v11823_v36 = vand.u32 4294901760, %v11781_v49 }
 0x410   :  { %7719 = vmatpush3.msra.mxu0 %v11796_v29  ;;  %7765 = vmatpush3.msra.mxu1 %v9975_v18  ;;  %v2887_v39 = vadd.f32 %v2886_v33, %v2775_v62  ;;  %v11799_v18 = vand.u32 4294901760, %v11758_v31  ;;  %v11802_v31 = vand.u32 4294901760, %v11761_v22  ;;  %v11821_v33 = vld [vmem:[#allocation44_spill] sm:$0xff]  ;;  %v11824_v62 = vand.u32 4294901760, %v11782_v53 }
 0x411   :  { %7720 = vmatprep.subr.mxu0 %v11797_v32  ;;  %7766 = vmatprep.subr.mxu1 %v9990_v55 }
 0x412   :  { %v8353_v26 = vpop.f32.mrf.mxu1  ;;  %7721 = vmatpush3.msra.mxu0 %v11798_v52  ;;  %7767 = vmatpush3.msra.mxu1 %v10005_v54 }
 0x413   :  { %v2981_v0 = vadd.f32 %v8353_v26, %v2893_v13  ;;  %7722 = vmatprep.subr.mxu0 %v11799_v18  ;;  %7768 = vmatprep.subr.mxu1 %v10020_v10  ;;  %v4095_v10 = vsub.f32 %v10365_v17, %v10382_v45 }
 0x414   :  { %v2974_v55 = vpop.f32.mrf.mxu1  ;;  %7723 = vmatpush3.msra.mxu0 %v11800_v8  ;;  %7769 = vmatpush3.msra.mxu1 %v10035_v61  ;;  %v11803_v61 = vand.u32 4294901760, %v11762_v19  ;;  %v11807_v19 = vand.u32 4294901760, %v11766_v16  ;;  %v11812_v16 = vld [vmem:[#allocation37_spill] sm:$0xff] }
 0x415   :  { %v2995_v54 = vmin.f32 %v2981_v0, 0.0  ;;  %v2975_v28 = vadd.f32 %v2974_v55, %v2887_v39  ;;  %7724 = vmatprep.subr.mxu0 %v11801_v25  ;;  %7770 = vmatprep.subr.mxu1 %v10046_v46  ;;  %v2989_v21 = vmax.f32 %v2981_v0, 0.0  ;;  %v11804_v46 = vand.u32 4294901760, %v11763_v20 }
 0x416   :  { %7725 = vmatpush3.msra.mxu0 %v11802_v31  ;;  %7771 = vmatpush3.msra.mxu1 %v10057_v40  ;;  %v4096_v1 = vand.u32 4294901760, %v4095_v10 }
 0x417   :  { %v3007_v44 = vmul.f32 %v10207_v11, %v2995_v54  ;;  %v2992_v50 = vmin.f32 %v2975_v28, 0.0  ;;  %7726 = vmatprep.subr.mxu0 %v11803_v61  ;;  %7772 = vmatprep.subr.mxu1 %v10068_v51  ;;  %v2986_v22 = vmax.f32 %v2975_v28, 0.0  ;;  %v11808_v51 = vld [vmem:[#allocation33_spill] sm:$0xff] }
 0x418   :  { %7727 = vmatpush3.msra.mxu0 %v11804_v46  ;;  %7773 = vmatpush3.msra.mxu1 %v10079_v63  ;;  %v11810_v63 = vld [vmem:[#allocation35_spill] sm:$0xff] }
 0x419   :  { %v3013_v40 = vadd.f32 %v3007_v44, %v2989_v21  ;;  %v3004_v59 = vmul.f32 %v10207_v11, %v2992_v50  ;;  %7728 = vmatprep.subr.mxu0 %v11805_v15  ;;  %7774 = vmatprep.subr.mxu1 %v11806_v42  ;;  %v4102_v11 = vsub.f32 %v10388_v60, %v10406_v24 }
 0x41a   :  { %7729 = vmatpush3.msra.mxu0 %v11807_v19  ;;  %7775 = vmatpush3.msra.mxu1 %v11808_v51 }
 0x41b   :  { %v3052_v38 = vsel %vm1338_vm9, %v3013_v40, 0  ;;  %v3010_v20 = vadd.f32 %v3004_v59, %v2986_v22  ;;  %7730 = vmatprep.subr.mxu0 %v11809_v14  ;;  %7776 = vmatprep.subr.mxu1 %v11810_v63  ;;  %v4103_v23 = vand.u32 4294901760, %v4102_v11 }
 0x41c   :  { %v4053_v27 = vand.u32 4294901760, %v3052_v38  ;;  %7731 = vmatpush3.msra.mxu0 %v11811_v47  ;;  %7777 = vmatpush3.msra.mxu1 %v11812_v16 }
 0x41d   :  { %v3049_v5 = vsel %vm1338_vm9, %v3010_v20, 0  ;;  %7732 = vmatprep.subr.mxu0 %v11814_v43  ;;  %3964 = vmatmul.mubr.f32.vlgmr.msra.gmra.mxu1 %v11815_v34 }
 0x41e   :  { %v4043_v57 = vand.u32 4294901760, %v3049_v5  ;;  %7733 = vmatpush3.msra.mxu0 %v11816_v6  ;;  %3969 = vmatprep.mubr.f32.mxu1 %v11817_v30  ;;  %v4054_v7 = vsub.f32 %v3052_v38, %v4053_v27 }
 0x41f   :  { %7734 = vmatprep.subr.mxu0 %v11818_v41  ;;  %8361 = vmatprep.subr.mxu1 %v4096_v1 }
 0x420   :  { %v4044_v48 = vsub.f32 %v3049_v5, %v4043_v57  ;;  %7735 = vmatpush3.msra.mxu0 %v11819_v3  ;;  %8362 = vmatpush3.msra.mxu1 %v4096_v1  ;;  %v4055_v56 = vand.u32 4294901760, %v4054_v7 }
 0x421   :  { %7736 = vmatprep.subr.mxu0 %v11820_v12  ;;  %3971 = vmatmul.mubr.f32.gmra.mxu1 %v11821_v33 }
 0x422   :  { %7737 = vmatpush3.msra.mxu0 %v11822_v9  ;;  %8365 = vmatprep.mubr.f32.mxu1 %v4043_v57  ;;  %v4045_v29 = vand.u32 4294901760, %v4044_v48  ;;  %v4056_v58 = vsub.f32 %v4054_v7, %v4055_v56 }
 0x423   :  { %7738 = vmatprep.subr.mxu0 %v11823_v36  ;;  %8363 = vmatprep.subr.mxu1 %v4103_v23 }
 0x424   :  { %7739 = vmatpush3.msra.mxu0 %v11824_v62  ;;  %8364 = vmatpush3.msra.mxu1 %v4103_v23  ;;  %v4046_v4 = vsub.f32 %v4044_v48, %v4045_v29  ;;  %v4057_v53 = vand.u32 4294901760, %v4056_v58 }
 0x425   :  { %3853 = vmatmul.mubr.f32.vlgmr.msra.gmra.mxu0 %v11815_v34  ;;  %8354 = vmatprep.subr.mxu0 %v10346_v37 }
 0x426   :  { %8366 = vmatmul.mubr.f32.vlgmr.msra.gmra.mxu1 %v4053_v27  ;;  %8375 = vmatprep.subr.mxu1 %v10346_v37  ;;  %v4047_v49 = vand.u32 4294901760, %v4046_v4 }
 0x427   :  { %3858 = vmatprep.mubr.f32.mxu0 %v11817_v30  ;;  %8355 = vmatpush3.msra.mxu0 %v10346_v37 }
 0x428   :  { %8376 = vmatpush3.msra.mxu1 %v10346_v37  ;;  %8379 = vmatprep.mubr.f32.mxu1 %v4045_v29 }
 0x429   :  { %8377 = vmatprep.subr.mxu1 %v10370_v2  ;;  %3860 = vmatmul.mubr.f32.gmra.mxu0 %v11821_v33 }
 0x42a   :  { %8378 = vmatpush3.msra.mxu1 %v10370_v2  ;;  %8356 = vmatprep.subr.mxu0 %v10370_v2 }
 0x42b   :  { %8380 = vmatmul.mubr.f32.vlgmr.msra.gmra.mxu1 %v4055_v56  ;;  %8389 = vmatprep.subr.mxu1 %v10346_v37 }
 0x42c   :  { %8357 = vmatpush3.msra.mxu0 %v10370_v2  ;;  %8358 = vmatprep.mubr.f32.mxu0 %v4047_v49 }
 0x42d   :  { %8390 = vmatpush3.msra.mxu1 %v10346_v37  ;;  %8393 = vmatprep.mubr.f32.mxu1 %v4043_v57 }
 0x42e   :  { %8391 = vmatprep.subr.mxu1 %v10370_v2  ;;  %8359 = vmatmul.mubr.f32.vlgmr.msra.gmra.mxu0 %v4057_v53 }
 0x42f   :  { %8392 = vmatpush3.msra.mxu1 %v10370_v2  ;;  %8368 = vmatprep.subr.mxu0 %v10365_v17 }
 0x430   :  { %8394 = vmatmul.mubr.f32.vlgmr.msra.gmra.mxu1 %v4053_v27  ;;  %8369 = vmatpush3.msra.mxu0 %v10365_v17 }
 0x431   :  { %8372 = vmatprep.mubr.f32.mxu0 %v4044_v48  ;;  %8370 = vmatprep.subr.mxu0 %v10388_v60 }
 0x432   :  { %8371 = vmatpush3.msra.mxu0 %v10388_v60 }
 0x433   :  { %8373 = vmatmul.mubr.f32.vlgmr.msra.gmra.mxu0 %v4054_v7  ;;  %8382 = vmatprep.subr.mxu0 %v10382_v45 }
 0x434   :  { %8383 = vmatpush3.msra.mxu0 %v10382_v45  ;;  %8386 = vmatprep.mubr.f32.mxu0 %v4043_v57 }
 0x435   :  { %8384 = vmatprep.subr.mxu0 %v10406_v24 }
 0x436   :  { %8385 = vmatpush3.msra.mxu0 %v10406_v24 }
 0x437   :  { %8387 = vmatmul.mubr.f32.vlgmr.msra.gmra.mxu0 %v4053_v27 }
 0x497   :  { %v7626_v37 = vpop.f32.mrf.mxu1 }
 0x499   :  { %v7627_v2 = vpop.f32.mrf.mxu1 }
 0x49a   :  { %v7628_v10 = vadd.f32 %v7627_v2, %v7626_v37 }
 0x49d   :  { %v7629_v17 = vpop.f32.mrf.mxu1 }
 0x49f   :  { %v7630_v26 = vpop.f32.mrf.mxu1 }
 0x4a0   :  { %v7588_v13 = vpop.f32.mrf.mxu0  ;;  %v7631_v40 = vadd.f32 %v7630_v26, %v7629_v17 }
 0x4a2   :  { %v7589_v32 = vpop.f32.mrf.mxu0 }
 0x4a3   :  { %v7590_v25 = vadd.f32 %v7589_v32, %v7588_v13 }
 0x4a5   :  { %v7591_v52 = vpop.f32.mrf.mxu0  ;;  %v3414_v24 = vadd.f32 %v7628_v10, %v7590_v25 }
 0x4a7   :  { %v7592_v0 = vpop.f32.mrf.mxu0 }
 0x4a8   :  { %v7593_v61 = vadd.f32 %v7592_v0, %v7591_v52  ;;  %v4678_v0 = vld [vmem:[%s11482_s1 + $0x18] sm:$0xff] }
 0x4aa   :  { %v3421_v42 = vadd.f32 %v7631_v40, %v7593_v61 }
 0x4b9   :  { %v7702_v39 = vpop.f32.mrf.mxu1 }
 0x4bb   :  { %v7703_v18 = vpop.f32.mrf.mxu1 }
 0x4bc   :  { %v7704_v19 = vadd.f32 %v7703_v18, %v7702_v39  ;;  %v10503_v18 = vand.u32 4294901760, %v4678_v0 }
 0x4be   :  { %v7705_v55 = vpop.f32.mrf.mxu1  ;;  %11825 = vst [vmem:[#allocation10_spill] sm:$0xff] %v10503_v18  ;;  %5076 = vmatprep.mubr.f32.mxu1 %v10503_v18 }
 0x4c0   :  { %v7706_v45 = vpop.f32.mrf.mxu1 }
 0x4c1   :  { %v7707_v11 = vadd.f32 %v7706_v45, %v7705_v55 }
 0x4c3   :  { %v7664_v60 = vpop.f32.mrf.mxu0 }
 0x4c5   :  { %v7665_v8 = vpop.f32.mrf.mxu0 }
 0x4c6   :  { %v7666_v21 = vadd.f32 %v7665_v8, %v7664_v60  ;;  %v10508_v60 = vsub.f32 %v4678_v0, %v10503_v18 }
 0x4c8   :  { %v7667_v54 = vpop.f32.mrf.mxu0  ;;  %v3559_v59 = vadd.f32 %v7666_v21, %v3414_v24  ;;  %11826 = vst [vmem:[#allocation15_spill] sm:$0xff] %v10508_v60  ;;  %v11606_v55 = vand.u32 4294901760, %v10508_v60 }
 0x4ca   :  { %v7668_v44 = vpop.f32.mrf.mxu0  ;;  %v3676_v63 = vadd.f32 %v7704_v19, %v3559_v59  ;;  %v4823_v8 = vsub.f32 %v10508_v60, %v11606_v55 }
 0x4cb   :  { %v7669_v22 = vadd.f32 %v7668_v44, %v7667_v54 }
 0x4cc   :  { %v4824_v45 = vand.u32 4294901760, %v4823_v8 }
 0x4cd   :  { %v3568_v20 = vadd.f32 %v7669_v22, %v3421_v42 }
 0x4ce   :  { %4825 = vmatprep.mubr.f32.mxu0 %v4824_v45 }
 0x4cf   :  { %v3687_v5 = vadd.f32 %v7707_v11, %v3568_v20 }
 0x4dd   :  { %v7778_v28 = vpop.f32.mrf.mxu1 }
 0x4df   :  { %v7779_v31 = vpop.f32.mrf.mxu1 }
 0x4e0   :  { %v7780_v43 = vadd.f32 %v7779_v31, %v7778_v28 }
 0x4e1   :  { %v7781_v50 = vpop.f32.mrf.mxu1 }
 0x4e3   :  { %v7782_v46 = vpop.f32.mrf.mxu1 }
 0x4e4   :  { %v7783_v34 = vadd.f32 %v7782_v46, %v7781_v50 }
 0x4e5   :  { %v7740_v15 = vpop.f32.mrf.mxu0 }
 0x4e6   :  { %v8367_v51 = vpop.f32.mrf.mxu1 }
 0x4e7   :  { %v7741_v38 = vpop.f32.mrf.mxu0 }
 0x4e8   :  { %v7742_v14 = vadd.f32 %v7741_v38, %v7740_v15  ;;  %v4140_v47 = vpop.f32.mrf.mxu1 }
 0x4e9   :  { %v7743_v1 = vpop.f32.mrf.mxu0 }
 0x4ea   :  { %v3855_v27 = vadd.f32 %v7742_v14, %v3676_v63  ;;  %v4677_v63 = vld [vmem:[%s11482_s1 + $0x10] sm:$0xff] }
 0x4eb   :  { %v7744_v16 = vpop.f32.mrf.mxu0  ;;  %v8381_v30 = vpop.f32.mrf.mxu1 }
 0x4ec   :  { %v7745_v35 = vadd.f32 %v7744_v16, %v7743_v1  ;;  %v3966_v41 = vadd.f32 %v7780_v43, %v3855_v27 }
 0x4ed   :  { %v4304_v12 = vpop.f32.mrf.mxu1 }
 0x4ee   :  { %v3862_v57 = vadd.f32 %v7745_v35, %v3687_v5  ;;  %v8360_v6 = vpop.f32.mrf.mxu0 }
 0x4f0   :  { %v3973_v23 = vadd.f32 %v7783_v34, %v3862_v57  ;;  %v4049_v7 = vpop.f32.mrf.mxu0  ;;  %v8395_v4 = vpop.f32.mrf.mxu1  ;;  %v10552_v34 = vand.u32 4294901760, %v4677_v63 }
 0x4f1   :  { %v4050_v48 = vadd.f32 %v4049_v7, %v3966_v41 }
 0x4f2   :  { %v4060_v3 = vadd.f32 %v8360_v6, %v3973_v23  ;;  %v4468_v17 = vpop.f32.mrf.mxu1  ;;  %11827 = vst [vmem:[#allocation11_spill] sm:$0xff] %v10552_v34  ;;  %v4681_v23 = vld [vmem:[%s11482_s1 + $0x48] sm:$0xff] }
 0x4f3   :  { %v8374_v33 = vpop.f32.mrf.mxu0  ;;  %v4141_v9 = vadd.f32 %v4140_v47, %v4050_v48 }
 0x4f4   :  { %v4147_v29 = vadd.f32 %v8367_v51, %v4060_v3 }
 0x4f5   :  { %v4222_v36 = vpop.f32.mrf.mxu0 }
 0x4f6   :  { %v4230_v62 = vadd.f32 %v8374_v33, %v4147_v29  ;;  %v4223_v56 = vadd.f32 %v4222_v36, %v4141_v9 }
 0x4f7   :  { %v8388_v58 = vpop.f32.mrf.mxu0 }
 0x4f8   :  { %v4313_v49 = vadd.f32 %v8381_v30, %v4230_v62  ;;  %v4305_v53 = vadd.f32 %v4304_v12, %v4223_v56  ;;  %v10578_v56 = vsub.f32 %v4677_v63, %v10552_v34 }
 0x4f9   :  { %v4389_v37 = vpop.f32.mrf.mxu0 }
 0x4fa   :  { %v4396_v2 = vadd.f32 %v8388_v58, %v4313_v49  ;;  %v4390_v13 = vadd.f32 %v4389_v37, %v4305_v53  ;;  %v10588_v49 = vand.u32 4294901760, %v4681_v23 }
 0x4fc   :  { %v4475_v32 = vadd.f32 %v8395_v4, %v4396_v2  ;;  %v4469_v26 = vadd.f32 %v4468_v17, %v4390_v13  ;;  %11830 = vst [vmem:[#allocation13_spill] sm:$0xff] %v10588_v49 }
 0x4fe   :  { %4479 = vst.msk [vmem:[#allocation4 + $0x8] sm:$0xff] %vm1584_vm3, %v4475_v32  ;;  %4478 = vst.msk [vmem:[#allocation4] sm:$0xff] %vm1584_vm3, %v4469_v26 }
 0x505   :  { %v4481_v52 = vld [vmem:[#allocation4 + $0x8] sm:$0xff]  ;;  %v4480_v39 = vld [vmem:[#allocation4] sm:$0xff] }
 0x506   :  { %4484 = vst.msk [vmem:[#allocation7 + $0x8] sm:$0xff] %vm4482_vm1, %v4481_v52  ;;  %4483 = vst.msk [vmem:[#allocation7] sm:$0xff] %vm4482_vm1, %v4480_v39  ;;  %4657 = vrot.lane.b32.xlu0 %v4480_v39, %s8667_s16  ;;  %4561 = vrot.lane.b32.xlu1 %v4480_v39, %s8676_s25 }
 0x50a   :  { %4645 = vrot.lane.b32.xlu0 %v4480_v39, %s8669_s18  ;;  %4549 = vrot.lane.b32.xlu1 %v4480_v39, %s8673_s22 }
 0x50d   :  { %v4684_v35 = vld [vmem:[#allocation7 + $0x8] sm:$0xff]  ;;  %v10571_v29 = vld [vmem:[#allocation7] sm:$0xff] }
 0x50e   :  { %4633 = vrot.lane.b32.xlu0 %v4480_v39, %s8665_s14  ;;  %4537 = vrot.lane.b32.xlu1 %v4480_v39, %s8675_s24  ;;  %v10560_v41 = vand.u32 4294901760, %v4684_v35  ;;  %v10599_v17 = vand.u32 4294901760, %v10571_v29 }
 0x510   :  { %v10596_v13 = vsub.f32 %v4684_v35, %v10560_v41 }
 0x512   :  { %4621 = vrot.lane.b32.xlu0 %v4480_v39, %s8668_s17  ;;  %4525 = vrot.lane.b32.xlu1 %v4480_v39, %s8671_s20  ;;  %11831 = vst [vmem:[#allocation14_spill] sm:$0xff] %v10596_v13 }
 0x516   :  { %4609 = vrot.lane.b32.xlu0 %v4480_v39, %s8663_s12  ;;  %4513 = vrot.lane.b32.xlu1 %v4480_v39, %s8674_s23 }
 0x51a   :  { %4597 = vrot.lane.b32.xlu0 %v4480_v39, %s8666_s15  ;;  %4501 = vrot.lane.b32.xlu1 %v4480_v39, %s8670_s19 }
 0x51e   :  { %4585 = vrot.lane.b32.xlu0 %v4480_v39, %s8662_s11  ;;  %4659 = vrot.lane.b32.xlu1 %v4481_v52, %s8667_s16 }
 0x522   :  { %4647 = vrot.lane.b32.xlu0 %v4481_v52, %s8669_s18  ;;  %4563 = vrot.lane.b32.xlu1 %v4481_v52, %s8676_s25 }
 0x526   :  { %4635 = vrot.lane.b32.xlu0 %v4481_v52, %s8665_s14  ;;  %4551 = vrot.lane.b32.xlu1 %v4481_v52, %s8673_s22 }
 0x52a   :  { %4623 = vrot.lane.b32.xlu0 %v4481_v52, %s8668_s17  ;;  %4539 = vrot.lane.b32.xlu1 %v4481_v52, %s8675_s24 }
 0x52e   :  { %4611 = vrot.lane.b32.xlu0 %v4481_v52, %s8663_s12  ;;  %4527 = vrot.lane.b32.xlu1 %v4481_v52, %s8671_s20 }
 0x532   :  { %4599 = vrot.lane.b32.xlu0 %v4481_v52, %s8666_s15  ;;  %4515 = vrot.lane.b32.xlu1 %v4481_v52, %s8674_s23 }
 0x536   :  { %4587 = vrot.lane.b32.xlu0 %v4481_v52, %s8662_s11  ;;  %4503 = vrot.lane.b32.xlu1 %v4481_v52, %s8670_s19 }
 0x53a   :  { %4575 = vrot.lane.b32.xlu0 %v4481_v52, %s8664_s13  ;;  %4491 = vrot.lane.b32.xlu1 %v4481_v52, %s8672_s21 }
 0x53e   :  { %4671 = vrot.lane.b32.xlu0 %v4481_v52, %s8658_s30  ;;  %4489 = vrot.lane.b32.xlu1 %v4480_v39, %s8672_s21 }
 0x542   :  { %4573 = vrot.lane.b32.xlu1 %v4480_v39, %s8664_s13 }
 0x546   :  { %4669 = vrot.lane.b32.xlu1 %v4480_v39, %s8658_s30 }
 0x578   :  { %v4658_v54 = vpop.permute.xlu0 %4657  ;;  %v4562_v28 = vpop.permute.xlu1 %4561 }
 0x579   :  { %4663 = vst.msk [vmem:[#allocation7 + $0xf0] sm:$0xff] %vm4482_vm1, %v4658_v54  ;;  %4567 = vst.msk [vmem:[#allocation7 + $0x70] sm:$0xff] %vm4482_vm1, %v4562_v28 }
 0x57c   :  { %v4646_v25 = vpop.permute.xlu0 %4645  ;;  %v4550_v31 = vpop.permute.xlu1 %4549 }
 0x57d   :  { %4651 = vst.msk [vmem:[#allocation7 + $0xe0] sm:$0xff] %vm4482_vm1, %v4646_v25  ;;  %4555 = vst.msk [vmem:[#allocation7 + $0x60] sm:$0xff] %vm4482_vm1, %v4550_v31 }
 0x580   :  { %v4634_v10 = vpop.permute.xlu0 %4633  ;;  %v4538_v21 = vpop.permute.xlu1 %4537  ;;  %v4713_v46 = vld [vmem:[#allocation7 + $0xf0] sm:$0xff] }
 0x581   :  { %4639 = vst.msk [vmem:[#allocation7 + $0xd0] sm:$0xff] %vm4482_vm1, %v4634_v10  ;;  %4543 = vst.msk [vmem:[#allocation7 + $0x50] sm:$0xff] %vm4482_vm1, %v4538_v21  ;;  %v4697_v59 = vld [vmem:[#allocation7 + $0x70] sm:$0xff]  ;;  %v10531_v15 = vand.u32 4294901760, %v4713_v46 }
 0x582   :  { %v10533_v51 = vand.u32 4294901760, %v4697_v59 }
 0x583   :  { %v10538_v14 = vsub.f32 %v4713_v46, %v10531_v15 }
 0x584   :  { %v4622_v44 = vpop.permute.xlu0 %4621  ;;  %v4526_v50 = vpop.permute.xlu1 %4525  ;;  %v4711_v38 = vld [vmem:[#allocation7 + $0xe0] sm:$0xff]  ;;  %v10546_v16 = vsub.f32 %v4697_v59, %v10533_v51 }
 0x585   :  { %4627 = vst.msk [vmem:[#allocation7 + $0xc0] sm:$0xff] %vm4482_vm1, %v4622_v44  ;;  %4531 = vst.msk [vmem:[#allocation7 + $0x40] sm:$0xff] %vm4482_vm1, %v4526_v50  ;;  %v4695_v20 = vld [vmem:[#allocation7 + $0x60] sm:$0xff]  ;;  %v10543_v1 = vand.u32 4294901760, %v4711_v38  ;;  %v11609_v6 = vand.u32 4294901760, %v10538_v14 }
 0x586   :  { %v10548_v5 = vand.u32 4294901760, %v4695_v20  ;;  %v11608_v9 = vand.u32 4294901760, %v10546_v16 }
 0x587   :  { %v10558_v30 = vsub.f32 %v4711_v38, %v10543_v1  ;;  %v10583_v4 = vsub.f32 %v10538_v14, %v11609_v6 }
 0x588   :  { %v4610_v61 = vpop.permute.xlu0 %4609  ;;  %v4514_v24 = vpop.permute.xlu1 %4513  ;;  %v4709_v11 = vld [vmem:[#allocation7 + $0xd0] sm:$0xff]  ;;  %v10566_v12 = vsub.f32 %v4695_v20, %v10548_v5  ;;  %v10607_v8 = vsub.f32 %v10546_v16, %v11608_v9 }
 0x589   :  { %4615 = vst.msk [vmem:[#allocation7 + $0xb0] sm:$0xff] %vm4482_vm1, %v4610_v61  ;;  %4519 = vst.msk [vmem:[#allocation7 + $0x30] sm:$0xff] %vm4482_vm1, %v4514_v24  ;;  %v4693_v43 = vld [vmem:[#allocation7 + $0x50] sm:$0xff]  ;;  %v10554_v57 = vand.u32 4294901760, %v4709_v11  ;;  %v11607_v37 = vand.u32 4294901760, %v10558_v30  ;;  %v4975_v21 = vand.u32 4294901760, %v10583_v4  ;;  %v10625_v61 = vsub.f32 %v4681_v23, %v10588_v49 }
 0x58a   :  { %v10568_v33 = vand.u32 4294901760, %v4693_v43  ;;  %v11605_v54 = vand.u32 4294901760, %v10566_v12  ;;  %v11838_v4 = vand.u32 4294901760, %v10607_v8 }
 0x58b   :  { %11828 = vst [vmem:[#allocation12_spill] sm:$0xff] %v10554_v57  ;;  %v10586_v58 = vsub.f32 %v4709_v11, %v10554_v57 }
 0x58c   :  { %v4598_v40 = vpop.permute.xlu0 %4597  ;;  %v4502_v22 = vpop.permute.xlu1 %4501  ;;  %11829 = vst [vmem:[#allocation21_spill] sm:$0xff] %v10568_v33  ;;  %v4707_v62 = vld [vmem:[#allocation7 + $0xc0] sm:$0xff]  ;;  %v10602_v0 = vsub.f32 %v4693_v43, %v10568_v33  ;;  %v10647_v11 = vsub.f32 %v10566_v12, %v11605_v54 }
 0x58d   :  { %4603 = vst.msk [vmem:[#allocation7 + $0xa0] sm:$0xff] %vm4482_vm1, %v4598_v40  ;;  %4507 = vst.msk [vmem:[#allocation7 + $0x20] sm:$0xff] %vm4482_vm1, %v4502_v22  ;;  %v4691_v2 = vld [vmem:[#allocation7 + $0x40] sm:$0xff]  ;;  %v10609_v45 = vand.u32 4294901760, %v4707_v62  ;;  %v11604_v50 = vand.u32 4294901760, %v10586_v58  ;;  %v10640_v22 = vsub.f32 %v10558_v30, %v11607_v37 }
 0x58e   :  { %v10621_v44 = vand.u32 4294901760, %v4691_v2 }
 0x58f   :  { %11832 = vst [vmem:[#allocation16_spill] sm:$0xff] %v10609_v45 }
 0x590   :  { %v4586_v42 = vpop.permute.xlu0 %4585  ;;  %v4660_v19 = vpop.permute.xlu1 %4659  ;;  %11833 = vst [vmem:[#allocation17_spill] sm:$0xff] %v10621_v44  ;;  %v4689_v59 = vld [vmem:[#allocation7 + $0x30] sm:$0xff] }
 0x591   :  { %4591 = vst.msk [vmem:[#allocation7 + $0x90] sm:$0xff] %vm4482_vm1, %v4586_v42  ;;  %4664 = vst.msk [vmem:[#allocation7 + $0xf8] sm:$0xff] %vm4482_vm1, %v4660_v19 }
 0x594   :  { %v4648_v27 = vpop.permute.xlu0 %4647  ;;  %v4564_v47 = vpop.permute.xlu1 %4563 }
 0x595   :  { %4652 = vst.msk [vmem:[#allocation7 + $0xe8] sm:$0xff] %vm4482_vm1, %v4648_v27  ;;  %4568 = vst.msk [vmem:[#allocation7 + $0x78] sm:$0xff] %vm4482_vm1, %v4564_v47  ;;  %v11613_v27 = vand.u32 4294901760, %v10602_v0  ;;  %v10651_v47 = vsub.f32 %v4707_v62, %v10609_v45  ;;  %v10664_v62 = vsub.f32 %v4691_v2, %v10621_v44  ;;  %v4703_v2 = vld [vmem:[#allocation7 + $0xa0] sm:$0xff] }
 0x597   :  { %v11843_v49 = vand.u32 4294901760, %v10664_v62 }
 0x598   :  { %v4636_v7 = vpop.permute.xlu0 %4635  ;;  %v4552_v48 = vpop.permute.xlu1 %4551  ;;  %v4714_v3 = vld [vmem:[#allocation7 + $0xf8] sm:$0xff]  ;;  %v4701_v60 = vld [vmem:[#allocation7 + $0x90] sm:$0xff] }
 0x599   :  { %4640 = vst.msk [vmem:[#allocation7 + $0xd8] sm:$0xff] %vm4482_vm1, %v4636_v7  ;;  %4556 = vst.msk [vmem:[#allocation7 + $0x68] sm:$0xff] %vm4482_vm1, %v4552_v48  ;;  %v10575_v36 = vand.u32 4294901760, %v4714_v3  ;;  %v4705_v48 = vld [vmem:[#allocation7 + $0xb0] sm:$0xff]  ;;  %v10755_v8 = vsub.f32 %v10664_v62, %v11843_v49  ;;  %v11844_v49 = vand.u32 4294901760, %v10640_v22  ;;  %v11846_v22 = vand.u32 4294901760, %v10647_v11 }
 0x59a   :  { %v10689_v55 = vand.u32 4294901760, %v4705_v48 }
 0x59b   :  { %7808 = vmatprep.subr.mxu0 %v10575_v36  ;;  %v10592_v53 = vsub.f32 %v4714_v3, %v10575_v36 }
 0x59c   :  { %v4624_v32 = vpop.permute.xlu0 %4623  ;;  %v4540_v26 = vpop.permute.xlu1 %4539  ;;  %v4698_v52 = vld [vmem:[#allocation7 + $0x78] sm:$0xff]  ;;  %v4712_v39 = vld [vmem:[#allocation7 + $0xe8] sm:$0xff]  ;;  %v10734_v18 = vsub.f32 %v4705_v48, %v10689_v55 }
 0x59d   :  { %4628 = vst.msk [vmem:[#allocation7 + $0xc8] sm:$0xff] %vm4482_vm1, %v4624_v32  ;;  %4544 = vst.msk [vmem:[#allocation7 + $0x58] sm:$0xff] %vm4482_vm1, %v4540_v26  ;;  %v10614_v28 = vand.u32 4294901760, %v4698_v52  ;;  %v10616_v25 = vand.u32 4294901760, %v4712_v39  ;;  %v11612_v31 = vand.u32 4294901760, %v10592_v53  ;;  %v10669_v32 = vsub.f32 %v10586_v58, %v11604_v50 }
 0x59e   :  { %v10671_v26 = vand.u32 4294901760, %v4689_v59 }
 0x59f   :  { %7809 = vmatpush3.msra.mxu0 %v10614_v28  ;;  %v10629_v24 = vsub.f32 %v4698_v52, %v10614_v28  ;;  %v4967_v46 = vsub.f32 %v10592_v53, %v11612_v31  ;;  %v10635_v40 = vsub.f32 %v4712_v39, %v10616_v25 }
 0x5a0   :  { %v4612_v42 = vpop.permute.xlu0 %4611  ;;  %7810 = vmatprep.subr.mxu0 %v10531_v15  ;;  %v4528_v19 = vpop.permute.xlu1 %4527  ;;  %v4696_v38 = vld [vmem:[#allocation7 + $0x68] sm:$0xff]  ;;  %v4710_v20 = vld [vmem:[#allocation7 + $0xd8] sm:$0xff]  ;;  %11834 = vst [vmem:[#allocation18_spill] sm:$0xff] %v10671_v26  ;;  %v10703_v31 = vsub.f32 %v4689_v59, %v10671_v26  ;;  %v11837_v59 = vand.u32 4294901760, %v10651_v47 }
 0x5a1   :  { %4616 = vst.msk [vmem:[#allocation7 + $0xb8] sm:$0xff] %vm4482_vm1, %v4612_v42  ;;  %4532 = vst.msk [vmem:[#allocation7 + $0x48] sm:$0xff] %vm4482_vm1, %v4528_v19  ;;  %7811 = vmatpush3.msra.mxu0 %v10533_v51  ;;  %v10656_v35 = vand.u32 4294901760, %v4696_v38  ;;  %v4968_v43 = vand.u32 4294901760, %v4967_v46  ;;  %v10658_v23 = vand.u32 4294901760, %v4710_v20  ;;  %v11610_v7 = vand.u32 4294901760, %v10629_v24 }
 0x5a2   :  { %7812 = vmatprep.subr.mxu0 %v10616_v25  ;;  %v11611_v3 = vand.u32 4294901760, %v10635_v40 }
 0x5a3   :  { %7813 = vmatpush3.msra.mxu0 %v10656_v35  ;;  %v10675_v52 = vsub.f32 %v4696_v38, %v10656_v35  ;;  %7846 = vmatprep.subr.mxu1 %v4968_v43  ;;  %v4855_v39 = vsub.f32 %v10629_v24, %v11610_v7  ;;  %v10682_v46 = vsub.f32 %v4710_v20, %v10658_v23 }
 0x5a4   :  { %v4600_v42 = vpop.permute.xlu0 %4599  ;;  %7814 = vmatprep.subr.mxu0 %v10543_v1  ;;  %v4516_v19 = vpop.permute.xlu1 %4515  ;;  %v4694_v50 = vld [vmem:[#allocation7 + $0x58] sm:$0xff]  ;;  %v4708_v54 = vld [vmem:[#allocation7 + $0xc8] sm:$0xff]  ;;  %v4981_v38 = vsub.f32 %v10635_v40, %v11611_v3 }
 0x5a5   :  { %4604 = vst.msk [vmem:[#allocation7 + $0xa8] sm:$0xff] %vm4482_vm1, %v4600_v42  ;;  %4520 = vst.msk [vmem:[#allocation7 + $0x38] sm:$0xff] %vm4482_vm1, %v4516_v19  ;;  %7815 = vmatpush3.msra.mxu0 %v10548_v5  ;;  %v10695_v20 = vand.u32 4294901760, %v4694_v50  ;;  %v4856_v9 = vand.u32 4294901760, %v4855_v39  ;;  %v10697_v6 = vand.u32 4294901760, %v4708_v54  ;;  %v11614_v7 = vand.u32 4294901760, %v10675_v52 }
 0x5a6   :  { %7816 = vmatprep.subr.mxu0 %v10658_v23  ;;  %v11617_v3 = vand.u32 4294901760, %v10682_v46  ;;  %v10708_v42 = vsub.f32 %v10602_v0, %v11613_v27  ;;  %v4687_v27 = vld [vmem:[#allocation7 + $0x20] sm:$0xff]  ;;  %v4982_v19 = vand.u32 4294901760, %v4981_v38 }
 0x5a7   :  { %11835 = vst [vmem:[#allocation19_spill] sm:$0xff] %v10695_v20  ;;  %11836 = vst [vmem:[#allocation20_spill] sm:$0xff] %v10697_v6  ;;  %7817 = vmatpush3.msra.mxu0 %v10695_v20  ;;  %v10713_v39 = vsub.f32 %v4694_v50, %v10695_v20  ;;  %7847 = vmatpush3.msra.mxu1 %v4856_v9  ;;  %v4869_v10 = vsub.f32 %v10675_v52, %v11614_v7 }
 0x5a8   :  { %v10720_v43 = vsub.f32 %v4708_v54, %v10697_v6  ;;  %v4588_v63 = vpop.permute.xlu0 %4587  ;;  %7818 = vmatprep.subr.mxu0 %v10554_v57  ;;  %7848 = vmatprep.subr.mxu1 %v4975_v21  ;;  %v4504_v50 = vpop.permute.xlu1 %4503  ;;  %v4692_v9 = vld [vmem:[#allocation7 + $0x48] sm:$0xff]  ;;  %v4706_v37 = vld [vmem:[#allocation7 + $0xb8] sm:$0xff]  ;;  %v4995_v7 = vsub.f32 %v10682_v46, %v11617_v3  ;;  %v10731_v54 = vsub.f32 %v10651_v47, %v11837_v59 }
 0x5a9   :  { %4592 = vst.msk [vmem:[#allocation7 + $0x98] sm:$0xff] %vm4482_vm1, %v4588_v63  ;;  %4508 = vst.msk [vmem:[#allocation7 + $0x28] sm:$0xff] %vm4482_vm1, %v4504_v50  ;;  %7819 = vmatpush3.msra.mxu0 %v10568_v33  ;;  %7849 = vmatpush3.msra.mxu1 %v11838_v4  ;;  %v10741_v21 = vand.u32 4294901760, %v4692_v9  ;;  %v4870_v38 = vand.u32 4294901760, %v4869_v10  ;;  %v10743_v3 = vand.u32 4294901760, %v4706_v37  ;;  %v11630_v59 = vand.u32 4294901760, %v10713_v39 }
 0x5aa   :  { %7820 = vmatprep.subr.mxu0 %v10697_v6  ;;  %7850 = vmatprep.subr.mxu1 %v4982_v19  ;;  %v10748_v63 = vand.u32 4294901760, %v4703_v2  ;;  %v10750_v50 = vand.u32 4294901760, %v4687_v27  ;;  %v4891_v4 = vand.u32 4294901760, %v10708_v42  ;;  %v11845_v57 = vand.u32 4294901760, %v10720_v43 }
 0x5ab   :  { %11839 = vst [vmem:[#allocation22_spill] sm:$0xff] %v10741_v21  ;;  %11840 = vst [vmem:[#allocation23_spill] sm:$0xff] %v10743_v3  ;;  %7821 = vmatpush3.msra.mxu0 %v10741_v21  ;;  %v10759_v10 = vsub.f32 %v4692_v9, %v10741_v21  ;;  %7851 = vmatpush3.msra.mxu1 %v4870_v38  ;;  %v4883_v19 = vsub.f32 %v10713_v39, %v11630_v59  ;;  %v4996_v9 = vand.u32 4294901760, %v4995_v7 }
 0x5ac   :  { %11841 = vst [vmem:[#allocation24_spill] sm:$0xff] %v10748_v63  ;;  %11842 = vst [vmem:[#allocation25_spill] sm:$0xff] %v10750_v50  ;;  %v10766_v48 = vsub.f32 %v4706_v37, %v10743_v3  ;;  %v4576_v6 = vpop.permute.xlu0 %4575  ;;  %7822 = vmatprep.subr.mxu0 %v10609_v45  ;;  %7852 = vmatprep.subr.mxu1 %v11844_v49  ;;  %v4492_v33 = vpop.permute.xlu1 %4491  ;;  %v4690_v21 = vld [vmem:[#allocation7 + $0x38] sm:$0xff]  ;;  %v4704_v38 = vld [vmem:[#allocation7 + $0xa8] sm:$0xff]  ;;  %v5009_v59 = vsub.f32 %v10720_v43, %v11845_v57 }
 0x5ad   :  { %4580 = vst.msk [vmem:[#allocation7 + $0x88] sm:$0xff] %vm4482_vm1, %v4576_v6  ;;  %4496 = vst.msk [vmem:[#allocation7 + $0x18] sm:$0xff] %vm4482_vm1, %v4492_v33  ;;  %7823 = vmatpush3.msra.mxu0 %v10621_v44  ;;  %7853 = vmatpush3.msra.mxu1 %v11846_v22  ;;  %v10781_v7 = vand.u32 4294901760, %v4690_v21  ;;  %v4884_v49 = vand.u32 4294901760, %v4883_v19  ;;  %v10783_v45 = vand.u32 4294901760, %v4704_v38  ;;  %v11639_v57 = vand.u32 4294901760, %v10759_v10 }
 0x5ae   :  { %7824 = vmatprep.subr.mxu0 %v10743_v3  ;;  %7854 = vmatprep.subr.mxu1 %v4996_v9  ;;  %v10788_v37 = vsub.f32 %v4687_v27, %v10750_v50  ;;  %v10791_v33 = vand.u32 4294901760, %v4701_v60  ;;  %v10794_v11 = vsub.f32 %v4703_v2, %v10748_v63  ;;  %v5017_v27 = vand.u32 4294901760, %v10731_v54 }
 0x5af   :  { %11847 = vst [vmem:[#allocation26_spill] sm:$0xff] %v10781_v7  ;;  %11848 = vst [vmem:[#allocation27_spill] sm:$0xff] %v10783_v45  ;;  %7825 = vmatpush3.msra.mxu0 %v10781_v7  ;;  %v10798_v19 = vsub.f32 %v4690_v21, %v10781_v7  ;;  %7855 = vmatpush3.msra.mxu1 %v4884_v49  ;;  %v4897_v9 = vsub.f32 %v10759_v10, %v11639_v57  ;;  %v11850_v2 = vand.u32 4294901760, %v10669_v32 }
 0x5b0   :  { %11849 = vst [vmem:[#allocation28_spill] sm:$0xff] %v10791_v33  ;;  %v10805_v22 = vsub.f32 %v4704_v38, %v10783_v45  ;;  %v4672_v42 = vpop.permute.xlu0 %4671  ;;  %7826 = vmatprep.subr.mxu0 %v10689_v55  ;;  %v4490_v6 = vpop.permute.xlu1 %4489  ;;  %v5010_v3 = vand.u32 4294901760, %v5009_v59  ;;  %v4688_v21 = vld [vmem:[#allocation7 + $0x28] sm:$0xff]  ;;  %v4702_v7 = vld [vmem:[#allocation7 + $0x98] sm:$0xff]  ;;  %v11851_v49 = vand.u32 4294901760, %v10766_v48  ;;  %v11852_v57 = vand.u32 4294901760, %v10734_v18 }
 0x5b1   :  { %7856 = vmatprep.subr.mxu1 %v11850_v2  ;;  %v11853_v38 = vand.u32 4294901760, %v10703_v31  ;;  %4676 = vst.msk [vmem:[#allocation7 + $0x108] sm:$0xff] %vm4482_vm1, %v4672_v42  ;;  %4495 = vst.msk [vmem:[#allocation7 + $0x10] sm:$0xff] %vm4482_vm1, %v4490_v6  ;;  %7827 = vmatpush3.msra.mxu0 %v10671_v26  ;;  %v10822_v32 = vand.u32 4294901760, %v4688_v21  ;;  %v4898_v59 = vand.u32 4294901760, %v4897_v9  ;;  %v10824_v2 = vand.u32 4294901760, %v4702_v7 }
 0x5b2   :  { %v5023_v44 = vsub.f32 %v10766_v48, %v11851_v49  ;;  %v5030_v54 = vsub.f32 %v10734_v18, %v11852_v57  ;;  %7857 = vmatpush3.msra.mxu1 %v4891_v4  ;;  %v11646_v49 = vand.u32 4294901760, %v10798_v19  ;;  %7828 = vmatprep.subr.mxu0 %v10783_v45  ;;  %v10832_v6 = vsub.f32 %v4701_v60, %v10791_v33 }
 0x5b3   :  { %v4918_v20 = vsub.f32 %v10703_v31, %v11853_v38  ;;  %11854 = vst [vmem:[#allocation29_spill] sm:$0xff] %v10822_v32  ;;  %11855 = vst [vmem:[#allocation8_spill] sm:$0xff] %v10824_v2  ;;  %7858 = vmatprep.subr.mxu1 %v5010_v3  ;;  %7829 = vmatpush3.msra.mxu0 %v10822_v32  ;;  %v10836_v4 = vsub.f32 %v4688_v21, %v10822_v32  ;;  %v4905_v9 = vand.u32 4294901760, %v10755_v8 }
 0x5b4   :  { %7859 = vmatpush3.msra.mxu1 %v4898_v59  ;;  %v4911_v3 = vsub.f32 %v10798_v19, %v11646_v49  ;;  %v10843_v57 = vsub.f32 %v4702_v7, %v10824_v2  ;;  %7830 = vmatprep.subr.mxu0 %v10748_v63  ;;  %v4574_v60 = vpop.permute.xlu1 %4573  ;;  %v5024_v42 = vand.u32 4294901760, %v5023_v44  ;;  %v4686_v38 = vld [vmem:[#allocation7 + $0x18] sm:$0xff]  ;;  %v5031_v45 = vand.u32 4294901760, %v5030_v54  ;;  %v4700_v32 = vld [vmem:[#allocation7 + $0x88] sm:$0xff] }
 0x5b5   :  { %7860 = vmatprep.subr.mxu1 %v5017_v27  ;;  %v11856_v21 = vand.u32 4294901760, %v10805_v22  ;;  %4579 = vst.msk [vmem:[#allocation7 + $0x80] sm:$0xff] %vm4482_vm1, %v4574_v60  ;;  %7831 = vmatpush3.msra.mxu0 %v10750_v50  ;;  %v10852_v7 = vand.u32 4294901760, %v4686_v38  ;;  %v10855_v44 = vand.u32 4294901760, %v4700_v32  ;;  %v11859_v54 = vand.u32 4294901760, %v10794_v11 }
 0x5b6   :  { %7861 = vmatpush3.msra.mxu1 %v4905_v9  ;;  %v4912_v49 = vand.u32 4294901760, %v4911_v3  ;;  %7832 = vmatprep.subr.mxu0 %v10824_v2  ;;  %v11860_v8 = vand.u32 4294901760, %v10788_v37  ;;  %v4919_v27 = vand.u32 4294901760, %v4918_v20  ;;  %v11862_v63 = vand.u32 4294901760, %v10843_v57 }
 0x5b7   :  { %v5037_v59 = vsub.f32 %v10805_v22, %v11856_v21  ;;  %11857 = vst [vmem:[#allocation32_spill] sm:$0xff] %v10852_v7  ;;  %11858 = vst [vmem:[#allocation34_spill] sm:$0xff] %v10855_v44  ;;  %7862 = vmatprep.subr.mxu1 %v5024_v42  ;;  %v5044_v21 = vsub.f32 %v10794_v11, %v11859_v54  ;;  %7833 = vmatpush3.msra.mxu0 %v10852_v7  ;;  %v11861_v42 = vand.u32 4294901760, %v10836_v4 }
 0x5b8   :  { %v4932_v60 = vsub.f32 %v10788_v37, %v11860_v8  ;;  %v10868_v3 = vsub.f32 %v4686_v38, %v10852_v7  ;;  %7863 = vmatpush3.msra.mxu1 %v4912_v49  ;;  %v10874_v54 = vsub.f32 %v4700_v32, %v10855_v44  ;;  %7834 = vmatprep.subr.mxu0 %v10791_v33  ;;  %v4670_v8 = vpop.permute.xlu1 %4669  ;;  %v4685_v50 = vld [vmem:[#allocation7 + $0x10] sm:$0xff] }
 0x5b9   :  { %v4925_v2 = vsub.f32 %v10836_v4, %v11861_v42  ;;  %7864 = vmatprep.subr.mxu1 %v5031_v45  ;;  %v5038_v9 = vand.u32 4294901760, %v5037_v59  ;;  %v5051_v38 = vsub.f32 %v10843_v57, %v11862_v63  ;;  %v10882_v20 = vsub.f32 %v10571_v29, %v10599_v17  ;;  %4675 = vst.msk [vmem:[#allocation7 + $0x100] sm:$0xff] %vm4482_vm1, %v4670_v8 }
 0x5ba   :  { %7865 = vmatpush3.msra.mxu1 %v4919_v27  ;;  %v10885_v49 = vand.u32 4294901760, %v4685_v50  ;;  %v11865_v45 = vand.u32 4294901760, %v10578_v56  ;;  %v5045_v33 = vand.u32 4294901760, %v5044_v21  ;;  %v11866_v63 = vand.u32 4294901760, %v10832_v6 }
 0x5bb   :  { %11863 = vst [vmem:[#allocation36_spill] sm:$0xff] %v10882_v20  ;;  %v4926_v32 = vand.u32 4294901760, %v4925_v2  ;;  %7866 = vmatprep.subr.mxu1 %v5038_v9  ;;  %v11867_v8 = vand.u32 4294901760, %v10625_v61  ;;  %v4933_v42 = vand.u32 4294901760, %v4932_v60  ;;  %v11869_v9 = vand.u32 4294901760, %v10868_v3 }
 0x5bc   :  { %11864 = vst [vmem:[#allocation38_spill] sm:$0xff] %v10885_v49  ;;  %v4829_v59 = vsub.f32 %v10578_v56, %v11865_v45  ;;  %v5058_v7 = vsub.f32 %v10832_v6, %v11866_v63  ;;  %7835 = vmatpush3.msra.mxu0 %v10885_v49  ;;  %v10900_v2 = vsub.f32 %v4685_v50, %v10885_v49  ;;  %v5052_v63 = vand.u32 4294901760, %v5051_v38  ;;  %v4699_v29 = vld [vmem:[#allocation7 + $0x80] sm:$0xff] }
 0x5bd   :  { %v4838_v27 = vsub.f32 %v10625_v61, %v11867_v8  ;;  %7867 = vmatpush3.msra.mxu1 %v4926_v32  ;;  %v4939_v21 = vsub.f32 %v10868_v3, %v11869_v9  ;;  %7836 = vmatprep.subr.mxu0 %v10855_v44  ;;  %v10908_v8 = vand.u32 4294901760, %v4699_v29  ;;  %v11870_v9 = vand.u32 4294901760, %v10874_v54 }
 0x5be   :  { %11868 = vst [vmem:[#allocation39_spill] sm:$0xff] %v10900_v2  ;;  %7868 = vmatprep.subr.mxu1 %v5045_v33  ;;  %7837 = vmatpush3.msra.mxu0 %v10560_v41  ;;  %v4830_v49 = vand.u32 4294901760, %v4829_v59  ;;  %v11663_v60 = vand.u32 4294901760, %v10900_v2  ;;  %v5059_v32 = vand.u32 4294901760, %v5058_v7  ;;  %v11661_v44 = vand.u32 4294901760, %v10882_v20 }
 0x5bf   :  { %7869 = vmatpush3.msra.mxu1 %v4933_v42  ;;  %v4940_v50 = vand.u32 4294901760, %v4939_v21  ;;  %v5065_v45 = vsub.f32 %v10874_v54, %v11870_v9  ;;  %v4839_v33 = vand.u32 4294901760, %v4838_v27  ;;  %7838 = vmatprep.subr.mxu0 %v10908_v8  ;;  %v11871_v42 = vand.u32 4294901760, %v10596_v13  ;;  %v4680_v9 = vld [vmem:[%s11482_s1 + $0x40] sm:$0xff] }
 0x5c0   :  { %7870 = vmatprep.subr.mxu1 %v5052_v63  ;;  %v4946_v38 = vsub.f32 %v10900_v2, %v11663_v60  ;;  %v10923_v7 = vsub.f32 %v4699_v29, %v10908_v8  ;;  %7839 = vmatpush3.msra.mxu0 %v10599_v17  ;;  %v11882_v60 = vld [vmem:[#allocation27_spill] sm:$0xff] }
 0x5c1   :  { %7871 = vmatpush3.msra.mxu1 %v4940_v50  ;;  %v4953_v59 = vsub.f32 %v10596_v13, %v11871_v42  ;;  %7884 = vmatprep.subr.mxu0 %v10592_v53  ;;  %v5066_v63 = vand.u32 4294901760, %v5065_v45  ;;  %v4960_v50 = vsub.f32 %v10882_v20, %v11661_v44  ;;  %v11880_v44 = vld [vmem:[#allocation23_spill] sm:$0xff] }
 0x5c2   :  { %11872 = vst [vmem:[#allocation40_spill] sm:$0xff] %v10923_v7  ;;  %7872 = vmatprep.subr.mxu1 %v5059_v32  ;;  %4831 = vmatmul.mubr.f32.vlgmr.msra.gmra.mxu0 %v4830_v49  ;;  %v4947_v27 = vand.u32 4294901760, %v4946_v38  ;;  %v11662_v21 = vand.u32 4294901760, %v10923_v7 }
 0x5c3   :  { %7885 = vmatpush3.msra.mxu0 %v10629_v24  ;;  %4840 = vmatprep.mubr.f32.mxu0 %v4839_v33  ;;  %v4954_v29 = vand.u32 4294901760, %v4953_v59  ;;  %v4961_v45 = vand.u32 4294901760, %v4960_v50  ;;  %v10946_v33 = vand.u32 4294901760, %v4680_v9  ;;  %v11873_v59 = vld [vmem:[#allocation19_spill] sm:$0xff] }
 0x5c4   :  { %7873 = vmatpush3.msra.mxu1 %v4947_v27  ;;  %7886 = vmatprep.subr.mxu0 %v10538_v14  ;;  %v5072_v32 = vsub.f32 %v10923_v7, %v11662_v21  ;;  %v11874_v27 = vld [vmem:[#allocation12_spill] sm:$0xff]  ;;  %v11881_v21 = vld [vmem:[#allocation26_spill] sm:$0xff] }
 0x5c5   :  { %7874 = vmatprep.subr.mxu1 %v5066_v63  ;;  %7887 = vmatpush3.msra.mxu0 %v10546_v16  ;;  %v10957_v38 = vsub.f32 %v4680_v9, %v10946_v33  ;;  %v11875_v63 = vld [vmem:[#allocation21_spill] sm:$0xff] }
 0x5c6   :  { %7875 = vmatpush3.msra.mxu1 %v4954_v29  ;;  %7888 = vmatprep.subr.mxu0 %v10635_v40  ;;  %v5073_v49 = vand.u32 4294901760, %v5072_v32  ;;  %v11876_v29 = vld [vmem:[#allocation20_spill] sm:$0xff]  ;;  %v11877_v32 = vld [vmem:[#allocation22_spill] sm:$0xff] }
 0x5c7   :  { %7889 = vmatpush3.msra.mxu0 %v10675_v52  ;;  %v11664_v42 = vand.u32 4294901760, %v10957_v38 }
 0x5c8   :  { %7876 = vmatprep.subr.mxu1 %v5073_v49  ;;  %7890 = vmatprep.subr.mxu0 %v10558_v30  ;;  %v11878_v49 = vld [vmem:[#allocation16_spill] sm:$0xff] }
 0x5c9   :  { %7877 = vmatpush3.msra.mxu1 %v4961_v45  ;;  %7891 = vmatpush3.msra.mxu0 %v10566_v12  ;;  %v4844_v50 = vsub.f32 %v10957_v38, %v11664_v42  ;;  %v11879_v45 = vld [vmem:[#allocation17_spill] sm:$0xff]  ;;  %v11884_v42 = vld [vmem:[#allocation24_spill] sm:$0xff] }
 0x5ca   :  { %5078 = vmatmul.mubr.f32.vlgmr.msra.gmra.mxu1 %v10552_v34  ;;  %7892 = vmatprep.subr.mxu0 %v10682_v46  ;;  %v11885_v34 = vld [vmem:[#allocation15_spill] sm:$0xff] }
 0x5cb   :  { %7922 = vmatprep.subr.mxu1 %v10575_v36  ;;  %7893 = vmatpush3.msra.mxu0 %v10713_v39  ;;  %v4845_v9 = vand.u32 4294901760, %v4844_v50  ;;  %v11883_v50 = vld [vmem:[#allocation29_spill] sm:$0xff] }
 0x5cc   :  { %7923 = vmatpush3.msra.mxu1 %v10614_v28  ;;  %7894 = vmatprep.subr.mxu0 %v10586_v58 }
 0x5cd   :  { %7924 = vmatprep.subr.mxu1 %v10531_v15  ;;  %7895 = vmatpush3.msra.mxu0 %v10602_v0 }
 0x5ce   :  { %7925 = vmatpush3.msra.mxu1 %v10533_v51  ;;  %7896 = vmatprep.subr.mxu0 %v10720_v43 }
 0x5cf   :  { %7926 = vmatprep.subr.mxu1 %v10616_v25  ;;  %7897 = vmatpush3.msra.mxu0 %v10759_v10 }
 0x5d0   :  { %7927 = vmatpush3.msra.mxu1 %v10656_v35  ;;  %7898 = vmatprep.subr.mxu0 %v10651_v47 }
 0x5d1   :  { %7928 = vmatprep.subr.mxu1 %v10543_v1  ;;  %7899 = vmatpush3.msra.mxu0 %v10664_v62 }
 0x5d2   :  { %7929 = vmatpush3.msra.mxu1 %v10548_v5  ;;  %7900 = vmatprep.subr.mxu0 %v10766_v48 }
 0x5d3   :  { %7930 = vmatprep.subr.mxu1 %v10658_v23  ;;  %7901 = vmatpush3.msra.mxu0 %v10798_v19 }
 0x5d4   :  { %7931 = vmatpush3.msra.mxu1 %v11873_v59  ;;  %7902 = vmatprep.subr.mxu0 %v10734_v18 }
 0x5d5   :  { %7932 = vmatprep.subr.mxu1 %v11874_v27  ;;  %7903 = vmatpush3.msra.mxu0 %v10703_v31 }
 0x5d6   :  { %7933 = vmatpush3.msra.mxu1 %v11875_v63  ;;  %7904 = vmatprep.subr.mxu0 %v10805_v22 }
 0x5d7   :  { %7934 = vmatprep.subr.mxu1 %v11876_v29  ;;  %7905 = vmatpush3.msra.mxu0 %v10836_v4 }
 0x5d8   :  { %7935 = vmatpush3.msra.mxu1 %v11877_v32  ;;  %7906 = vmatprep.subr.mxu0 %v10794_v11 }
 0x5d9   :  { %7936 = vmatprep.subr.mxu1 %v11878_v49  ;;  %7907 = vmatpush3.msra.mxu0 %v10788_v37 }
 0x5da   :  { %7937 = vmatpush3.msra.mxu1 %v11879_v45  ;;  %7908 = vmatprep.subr.mxu0 %v10843_v57 }
 0x5db   :  { %7938 = vmatprep.subr.mxu1 %v11880_v44  ;;  %7909 = vmatpush3.msra.mxu0 %v10868_v3 }
 0x5dc   :  { %7939 = vmatpush3.msra.mxu1 %v11881_v21  ;;  %7910 = vmatprep.subr.mxu0 %v10832_v6 }
 0x5dd   :  { %7940 = vmatprep.subr.mxu1 %v10689_v55  ;;  %7911 = vmatpush3.msra.mxu0 %v10900_v2  ;;  %v11886_v2 = vld [vmem:[#allocation25_spill] sm:$0xff] }
 0x5de   :  { %7941 = vmatpush3.msra.mxu1 %v10671_v26  ;;  %4846 = vmatmul.mubr.f32.gmra.mxu0 %v4845_v9  ;;  %v11887_v26 = vld [vmem:[#allocation13_spill] sm:$0xff]  ;;  %v11888_v9 = vld [vmem:[#allocation8_spill] sm:$0xff] }
 0x5df   :  { %7912 = vmatprep.subr.mxu0 %v10874_v54  ;;  %7942 = vmatprep.subr.mxu1 %v11882_v60 }
 0x5e0   :  { %7913 = vmatpush3.msra.mxu0 %v10596_v13  ;;  %7943 = vmatpush3.msra.mxu1 %v11883_v50  ;;  %v11889_v13 = vand.u32 4294901760, %v10592_v53  ;;  %v11896_v53 = vld [vmem:[#allocation34_spill] sm:$0xff] }
 0x5e1   :  { %7914 = vmatprep.subr.mxu0 %v10923_v7  ;;  %7944 = vmatprep.subr.mxu1 %v11884_v42  ;;  %v11890_v7 = vld [vmem:[#allocation32_spill] sm:$0xff]  ;;  %v11891_v42 = vand.u32 4294901760, %v10629_v24  ;;  %v11898_v24 = vand.u32 4294901760, %v10675_v52  ;;  %v11904_v52 = vand.u32 4294901760, %v10713_v39  ;;  %v11920_v39 = vand.u32 4294901760, %v10788_v37 }
 0x5e2   :  { %7915 = vmatpush3.msra.mxu0 %v10882_v20  ;;  %5220 = vmatprep.mubr.f32.mxu0 %v11885_v34  ;;  %v11892_v20 = vld [vmem:[#allocation28_spill] sm:$0xff]  ;;  %v11923_v37 = vand.u32 4294901760, %v10832_v6 }
 0x5e3   :  { %7945 = vmatpush3.msra.mxu1 %v11886_v2  ;;  %5083 = vmatprep.mubr.f32.mxu1 %v11887_v26  ;;  %v11893_v2 = vand.u32 4294901760, %v10538_v14  ;;  %v11894_v26 = vld [vmem:[#allocation38_spill] sm:$0xff]  ;;  %v11899_v14 = vand.u32 4294901760, %v10558_v30  ;;  %v11905_v30 = vand.u32 4294901760, %v10586_v58  ;;  %v11910_v58 = vand.u32 4294901760, %v10759_v10 }
 0x5e4   :  { %5223 = vmatmul.mubr.f32.vlgmr.msra.gmra.mxu0 %v10578_v56  ;;  %7946 = vmatprep.subr.mxu1 %v11888_v9  ;;  %v11895_v9 = vand.u32 4294901760, %v10546_v16  ;;  %v11900_v16 = vand.u32 4294901760, %v11885_v34  ;;  %v11906_v34 = vand.u32 4294901760, %v10625_v61  ;;  %v4715_v10 = vld [vmem:[#allocation7 + $0x100] sm:$0xff] }
 0x5e5   :  { %7960 = vmatprep.subr.mxu0 %v11889_v13  ;;  %5085 = vmatmul.mubr.f32.gmra.mxu1 %v10946_v33  ;;  %v11897_v13 = vand.u32 4294901760, %v10635_v40  ;;  %v11902_v40 = vand.u32 4294901760, %v10578_v56  ;;  %v11909_v56 = vand.u32 4294901760, %v10957_v38 }
 0x5e6   :  { %7947 = vmatpush3.msra.mxu1 %v11890_v7  ;;  %7961 = vmatpush3.msra.mxu0 %v11891_v42  ;;  %v11903_v42 = vand.u32 4294901760, %v10682_v46  ;;  %v11918_v46 = vand.u32 4294901760, %v10836_v4  ;;  %v11924_v4 = vld [vmem:[#allocation39_spill] sm:$0xff] }
 0x5e7   :  { %7948 = vmatprep.subr.mxu1 %v11892_v20  ;;  %7962 = vmatprep.subr.mxu0 %v11893_v2  ;;  %v11901_v2 = vand.u32 4294901760, %v10566_v12  ;;  %v11907_v12 = vand.u32 4294901760, %v10602_v0  ;;  %v11912_v0 = vand.u32 4294901760, %v10664_v62 }
 0x5e8   :  { %5229 = vmatprep.mubr.f32.mxu0 %v10625_v61  ;;  %7949 = vmatpush3.msra.mxu1 %v11894_v26 }
 0x5e9   :  { %7963 = vmatpush3.msra.mxu0 %v11895_v9  ;;  %7950 = vmatprep.subr.mxu1 %v11896_v53 }
 0x5ea   :  { %5232 = vmatmul.mubr.f32.gmra.mxu0 %v10957_v38  ;;  %7964 = vmatprep.subr.mxu0 %v11897_v13  ;;  %v11926_v38 = vld [vmem:[#allocation18_spill] sm:$0xff]  ;;  %v11936_v13 = vld [vmem:[#allocation25_spill] sm:$0xff] }
 0x5eb   :  { %7951 = vmatpush3.msra.mxu1 %v10560_v41  ;;  %7965 = vmatpush3.msra.mxu0 %v11898_v24  ;;  %v11937_v24 = vld [vmem:[#allocation11_spill] sm:$0xff] }
 0x5ec   :  { %7952 = vmatprep.subr.mxu1 %v10908_v8  ;;  %7966 = vmatprep.subr.mxu0 %v11899_v14  ;;  %v11938_v14 = vld [vmem:[#allocation8_spill] sm:$0xff] }
 0x5ed   :  { %7953 = vmatpush3.msra.mxu1 %v10599_v17  ;;  %5336 = vmatprep.mubr.f32.mxu1 %v11900_v16 }
 0x5ee   :  { %7967 = vmatpush3.msra.mxu0 %v11901_v2  ;;  %5340 = vmatmul.mubr.f32.vlgmr.msra.gmra.mxu1 %v11902_v40 }
 0x5ef   :  { %7968 = vmatprep.subr.mxu0 %v11903_v42  ;;  %7998 = vmatprep.subr.mxu1 %v10575_v36  ;;  %v11908_v36 = vand.u32 4294901760, %v10720_v43  ;;  %v11939_v42 = vld [vmem:[#allocation13_spill] sm:$0xff] }
 0x5f0   :  { %7969 = vmatpush3.msra.mxu0 %v11904_v52  ;;  %7999 = vmatpush3.msra.mxu1 %v10614_v28  ;;  %v11913_v28 = vand.u32 4294901760, %v10766_v48  ;;  %v11921_v48 = vand.u32 4294901760, %v10843_v57 }
 0x5f1   :  { %7970 = vmatprep.subr.mxu0 %v11905_v30  ;;  %8000 = vmatprep.subr.mxu1 %v10531_v15  ;;  %v11911_v15 = vand.u32 4294901760, %v10651_v47  ;;  %v11915_v47 = vand.u32 4294901760, %v10734_v18  ;;  %v11919_v18 = vand.u32 4294901760, %v10794_v11  ;;  %v11922_v11 = vand.u32 4294901760, %v10868_v3 }
 0x5f2   :  { %5347 = vmatprep.mubr.f32.mxu1 %v11906_v34  ;;  %7971 = vmatpush3.msra.mxu0 %v11907_v12  ;;  %v11927_v3 = vand.u32 4294901760, %v10874_v54  ;;  %v11933_v54 = vld [vmem:[#allocation36_spill] sm:$0xff] }
 0x5f3   :  { %8001 = vmatpush3.msra.mxu1 %v10533_v51  ;;  %7972 = vmatprep.subr.mxu0 %v11908_v36  ;;  %v4679_v51 = vld [vmem:[%s11482_s1 + $0x20] sm:$0xff] }
 0x5f4   :  { %5351 = vmatmul.mubr.f32.gmra.mxu1 %v11909_v56  ;;  %8002 = vmatprep.subr.mxu1 %v10616_v25  ;;  %v4682_v25 = vld [vmem:[%s11482_s1 + $0x50] sm:$0xff]  ;;  %v4719_v61 = vsel %vm4717_vm4, %v4679_v51, 0  ;;  %v29_v56 = vld [vmem:[%s11481_s2 + $0x2] sm:$0x1]  ;;  %v8653_v51 = vld [vmem:[%s11481_s2 + $0x8] sm:$0xff] }
 0x5f5   :  { %7973 = vmatpush3.msra.mxu0 %v11910_v58  ;;  %8003 = vmatpush3.msra.mxu1 %v10656_v35  ;;  %v4722_v35 = vsel %vm4717_vm4, %v4682_v25, 0  ;;  %v11087_v62 = vand.u32 4294901760, %v4719_v61  ;;  %v8680_v58 = vmov 2  }
 0x5f6   :  { %7974 = vmatprep.subr.mxu0 %v11911_v15  ;;  %8004 = vmatprep.subr.mxu1 %v10543_v1  ;;  %v11914_v1 = vand.u32 4294901760, %v10798_v19  ;;  %v11095_v43 = vand.u32 4294901760, %v4722_v35  ;;  %v8652_v15 = vld [vmem:[%s11481_s2] sm:$0xff] }
 0x5f7   :  { %7975 = vmatpush3.msra.mxu0 %v11912_v0  ;;  %8005 = vmatpush3.msra.mxu1 %v10548_v5  ;;  %v11916_v5 = vand.u32 4294901760, %v10703_v31  ;;  %v4716_v31 = vld [vmem:[#allocation7 + $0x108] sm:$0xff]  ;;  %v11104_v19 = vsub.f32 %v4719_v61, %v11087_v62 }
 0x5f8   :  { %7976 = vmatprep.subr.mxu0 %v11913_v28  ;;  %8006 = vmatprep.subr.mxu1 %v10658_v23  ;;  %v11917_v23 = vand.u32 4294901760, %v10805_v22  ;;  %v11109_v22 = vand.u32 4294901760, %v4716_v31  ;;  %v11115_v57 = vsub.f32 %v4722_v35, %v11095_v43 }
 0x5f9   :  { %7977 = vmatpush3.msra.mxu0 %v11914_v1  ;;  %8007 = vmatpush3.msra.mxu1 %v11873_v59  ;;  %v11120_v59 = vand.u32 4294901760, %v4715_v10  ;;  %v5711_v6 = vand.u32 4294901760, %v11104_v19 }
 0x5fa   :  { %7978 = vmatprep.subr.mxu0 %v11915_v47  ;;  %8008 = vmatprep.subr.mxu1 %v11874_v27 }
 0x5fb   :  { %7979 = vmatpush3.msra.mxu0 %v11916_v5  ;;  %8009 = vmatpush3.msra.mxu1 %v11875_v63  ;;  %v11930_v63 = vld [vmem:[#allocation40_spill] sm:$0xff]  ;;  %v5766_v9 = vsub.f32 %v4715_v10, %v11120_v59 }
 0x5fc   :  { %7980 = vmatprep.subr.mxu0 %v11917_v23  ;;  %8010 = vmatprep.subr.mxu1 %v11876_v29  ;;  %v11931_v29 = vand.u32 4294901760, %v11930_v63 }
 0x5fd   :  { %7981 = vmatpush3.msra.mxu0 %v11918_v46  ;;  %8011 = vmatpush3.msra.mxu1 %v11877_v32  ;;  %v11932_v32 = vld [vmem:[#allocation24_spill] sm:$0xff]  ;;  %v5767_v40 = vand.u32 4294901760, %v5766_v9 }
 0x5fe   :  { %7982 = vmatprep.subr.mxu0 %v11919_v18  ;;  %8012 = vmatprep.subr.mxu1 %v11878_v49  ;;  %v5721_v49 = vand.u32 4294901760, %v11115_v57 }
 0x5ff   :  { %7983 = vmatpush3.msra.mxu0 %v11920_v39  ;;  %8013 = vmatpush3.msra.mxu1 %v11879_v45  ;;  %v11934_v45 = vand.u32 4294901760, %v11933_v54 }
 0x600   :  { %7984 = vmatprep.subr.mxu0 %v11921_v48  ;;  %8014 = vmatprep.subr.mxu1 %v11880_v44  ;;  %v11925_v44 = vand.u32 4294901760, %v11924_v4  ;;  %v5722_v2 = vsub.f32 %v11115_v57, %v5721_v49 }
 0x601   :  { %7985 = vmatpush3.msra.mxu0 %v11922_v11  ;;  %8015 = vmatpush3.msra.mxu1 %v11881_v21  ;;  %v11928_v21 = vld [vmem:[#allocation14_spill] sm:$0xff] }
 0x602   :  { %7986 = vmatprep.subr.mxu0 %v11923_v37  ;;  %8016 = vmatprep.subr.mxu1 %v10689_v55  ;;  %v11929_v27 = vand.u32 4294901760, %v11928_v21  ;;  %v5759_v55 = vsub.f32 %v4716_v31, %v11109_v22 }
 0x603   :  { %7987 = vmatpush3.msra.mxu0 %v11925_v44  ;;  %8017 = vmatpush3.msra.mxu1 %v11926_v38 }
 0x604   :  { %7988 = vmatprep.subr.mxu0 %v11927_v3  ;;  %8018 = vmatprep.subr.mxu1 %v11882_v60  ;;  %v11935_v60 = vld [vmem:[#allocation10_spill] sm:$0xff]  ;;  %v5760_v16 = vand.u32 4294901760, %v5759_v55 }
 0x605   :  { %7989 = vmatpush3.msra.mxu0 %v11929_v27  ;;  %8019 = vmatpush3.msra.mxu1 %v11883_v50  ;;  %v5712_v50 = vsub.f32 %v11104_v19, %v5711_v6 }
 0x606   :  { %7990 = vmatprep.subr.mxu0 %v11931_v29  ;;  %8020 = vmatprep.subr.mxu1 %v11932_v32  ;;  %v5761_v30 = vsub.f32 %v5759_v55, %v5760_v16 }
 0x607   :  { %7991 = vmatpush3.msra.mxu0 %v11934_v45  ;;  %5517 = vmatprep.mubr.f32.mxu0 %v11935_v60  ;;  %v5713_v52 = vand.u32 4294901760, %v5712_v50  ;;  %v6145_v50 = vld [vmem:[%s11482_s1 + $0x58] sm:$0xff] }
 0x608   :  { %8021 = vmatpush3.msra.mxu1 %v11936_v13  ;;  %5519 = vmatmul.mubr.f32.vlgmr.msra.gmra.mxu0 %v11937_v24 }
 0x609   :  { %8022 = vmatprep.subr.mxu1 %v11938_v14  ;;  %8396 = vmatprep.subr.mxu0 %v11109_v22 }
 0x60a   :  { %8023 = vmatpush3.msra.mxu1 %v11890_v7  ;;  %8397 = vmatpush3.msra.mxu0 %v11109_v22  ;;  %v5723_v7 = vand.u32 4294901760, %v5722_v2 }
 0x60b   :  { %8024 = vmatprep.subr.mxu1 %v11892_v20  ;;  %8398 = vmatprep.subr.mxu0 %v11120_v59  ;;  %v5768_v20 = vsub.f32 %v5766_v9, %v5767_v40 }
 0x60c   :  { %5524 = vmatprep.mubr.f32.mxu0 %v11939_v42  ;;  %8025 = vmatpush3.msra.mxu1 %v11894_v26  ;;  %v5762_v26 = vand.u32 4294901760, %v5761_v30  ;;  %v6158_v30 = vsel %vm4717_vm4, %v6145_v50, 0 }
 0x60d   :  { %8399 = vmatpush3.msra.mxu0 %v11120_v59  ;;  %8026 = vmatprep.subr.mxu1 %v11896_v53  ;;  %v5769_v53 = vand.u32 4294901760, %v5768_v20 }
 0x60e   :  { %5526 = vmatmul.mubr.f32.gmra.mxu0 %v10946_v33  ;;  %8410 = vmatprep.subr.mxu0 %v5759_v55 }
 0x60f   :  { %8027 = vmatpush3.msra.mxu1 %v10560_v41  ;;  %5628 = vmatprep.mubr.f32.mxu1 %v11935_v60  ;;  %v6144_v41 = vld [vmem:[%s11482_s1 + $0x28] sm:$0xff] }
 0x610   :  { %8028 = vmatprep.subr.mxu1 %v10908_v8  ;;  %8400 = vmatprep.mubr.f32.mxu0 %v5713_v52 }
 0x611   :  { %8029 = vmatpush3.msra.mxu1 %v10599_v17  ;;  %v6155_v17 = vsel %vm4717_vm4, %v6144_v41, 0  ;;  %6667 = vrot.lane.b32.xlu0 %v29_v56, %s8674_s23 }
 0x612   :  { %5630 = vmatmul.mubr.f32.vlgmr.msra.gmra.mxu1 %v11937_v24  ;;  %8401 = vmatmul.mubr.f32.vlgmr.msra.gmra.mxu0 %v5723_v7  ;;  %v11180_v8 = vand.u32 4294901760, %v6155_v17 }
 0x613   :  { %8403 = vmatprep.subr.mxu1 %v5762_v26  ;;  %8411 = vmatpush3.msra.mxu0 %v5759_v55 }
 0x614   :  { %8404 = vmatpush3.msra.mxu1 %v5762_v26  ;;  %8412 = vmatprep.subr.mxu0 %v5766_v9 }
 0x615   :  { %8405 = vmatprep.subr.mxu1 %v5769_v53  ;;  %8413 = vmatpush3.msra.mxu0 %v5766_v9 }
 0x616   :  { %5635 = vmatprep.mubr.f32.mxu1 %v11939_v42  ;;  %8406 = vmatpush3.msra.mxu1 %v5769_v53 }
 0x617   :  { %8414 = vmatprep.mubr.f32.mxu0 %v11104_v19  ;;  %8424 = vmatprep.subr.mxu0 %v5760_v16 }
 0x618   :  { %5637 = vmatmul.mubr.f32.gmra.mxu1 %v10946_v33  ;;  %8415 = vmatmul.mubr.f32.vlgmr.msra.gmra.mxu0 %v11115_v57  ;;  %v11183_v33 = vsub.f32 %v6155_v17, %v11180_v8  ;;  %v11204_v17 = vand.u32 4294901760, %v6158_v30 }
 0x619   :  { %8417 = vmatprep.subr.mxu1 %v11109_v22  ;;  %8425 = vmatpush3.msra.mxu0 %v5760_v16 }
 0x61a   :  { %8426 = vmatprep.subr.mxu0 %v5767_v40  ;;  %8407 = vmatprep.mubr.f32.mxu1 %v11087_v62  ;;  %v6229_v34 = vand.u32 4294901760, %v11183_v33 }
 0x61b   :  { %8427 = vmatpush3.msra.mxu0 %v5767_v40  ;;  %8428 = vmatprep.mubr.f32.mxu0 %v11087_v62 }
 0x61c   :  { %8408 = vmatmul.mubr.f32.vlgmr.msra.gmra.mxu1 %v11095_v43  ;;  %8429 = vmatmul.mubr.f32.vlgmr.msra.gmra.mxu0 %v11095_v43  ;;  %v6230_v12 = vsub.f32 %v11183_v33, %v6229_v34 }
 0x61d   :  { %8418 = vmatpush3.msra.mxu1 %v11109_v22  ;;  %8421 = vmatprep.mubr.f32.mxu1 %v5711_v6 }
 0x61e   :  { %8419 = vmatprep.subr.mxu1 %v11120_v59  ;;  %v6231_v36 = vand.u32 4294901760, %v6230_v12  ;;  %8642 = vset.pattern.permute.xlu1 %v8680_v58 }
 0x61f   :  { %8420 = vmatpush3.msra.mxu1 %v11120_v59  ;;  %8643 = vset.pattern.permute.xlu0 %v8680_v58 }
 0x620   :  { %8431 = vmatprep.subr.mxu1 %v11109_v22  ;;  %8422 = vmatmul.mubr.f32.vlgmr.msra.gmra.mxu1 %v5721_v49 }
 0x621   :  { %8432 = vmatpush3.msra.mxu1 %v11109_v22  ;;  %8435 = vmatprep.mubr.f32.mxu1 %v11087_v62 }
 0x622   :  { %8433 = vmatprep.subr.mxu1 %v11120_v59  ;;  %8442 = vmatprep.mubr.f32.mxu0 %v6231_v36 }
 0x623   :  { %8434 = vmatpush3.msra.mxu1 %v11120_v59  ;;  %6147 = vperm.xlu1 %8642, %v8652_v15  }
 0x624   :  { %8436 = vmatmul.mubr.f32.vlgmr.msra.gmra.mxu1 %v11095_v43  ;;  %6151 = vperm.xlu0 %8643, %v8653_v51  }
 0x625   :  { %8449 = vmatprep.mubr.f32.mxu1 %v11180_v8 }
 0x682   :  { %v7840_v0 = vpop.f32.mrf.mxu0 }
 0x684   :  { %v7841_v28 = vpop.f32.mrf.mxu0 }
 0x685   :  { %v7842_v22 = vadd.f32 %v7841_v28, %v7840_v0  ;;  %v6238_v28 = vsub.f32 %v6158_v30, %v11204_v17 }
 0x68a   :  { %v7878_v61 = vpop.f32.mrf.mxu1 }
 0x68c   :  { %v7879_v5 = vpop.f32.mrf.mxu1 }
 0x68d   :  { %v7880_v19 = vadd.f32 %v7879_v5, %v7878_v61 }
 0x68f   :  { %v5080_v59 = vadd.f32 %v7880_v19, %v7842_v22 }
 0x69e   :  { %v7843_v25 = vpop.f32.mrf.mxu0 }
 0x6a0   :  { %v7844_v1 = vpop.f32.mrf.mxu0 }
 0x6a1   :  { %v7845_v37 = vadd.f32 %v7844_v1, %v7843_v25 }
 0x6a4   :  { %v7916_v47 = vpop.f32.mrf.mxu0 }
 0x6a5   :  { %v7881_v35 = vpop.f32.mrf.mxu1 }
 0x6a6   :  { %v7917_v23 = vpop.f32.mrf.mxu0 }
 0x6a7   :  { %v7882_v62 = vpop.f32.mrf.mxu1  ;;  %v7918_v57 = vadd.f32 %v7917_v23, %v7916_v47 }
 0x6a8   :  { %v7883_v4 = vadd.f32 %v7882_v62, %v7881_v35  ;;  %v6239_v62 = vand.u32 4294901760, %v6238_v28 }
 0x6a9   :  { %v5225_v27 = vadd.f32 %v7918_v57, %v5080_v59 }
 0x6aa   :  { %v7919_v46 = vpop.f32.mrf.mxu0  ;;  %v5087_v55 = vadd.f32 %v7883_v4, %v7845_v37 }
 0x6ac   :  { %v7920_v31 = vpop.f32.mrf.mxu0 }
 0x6ad   :  { %v7921_v63 = vadd.f32 %v7920_v31, %v7919_v46 }
 0x6ae   :  { %v7954_v18 = vpop.f32.mrf.mxu1 }
 0x6af   :  { %v5234_v9 = vadd.f32 %v7921_v63, %v5087_v55 }
 0x6b0   :  { %v7955_v43 = vpop.f32.mrf.mxu1 }
 0x6b1   :  { %v7956_v3 = vadd.f32 %v7955_v43, %v7954_v18 }
 0x6b3   :  { %v5342_v49 = vadd.f32 %v7956_v3, %v5225_v27  ;;  %v6668_v3 = vpop.permute.xlu0 %6667 }
 0x6b4   :  { %v7957_v10 = vpop.f32.mrf.mxu1  ;;  %8610 = vpush %v6668_v3 }
 0x6b6   :  { %v7958_v44 = vpop.f32.mrf.mxu1 }
 0x6b7   :  { %v7959_v54 = vadd.f32 %v7958_v44, %v7957_v10 }
 0x6b9   :  { %v5353_v2 = vadd.f32 %v7959_v54, %v5234_v9  ;;  %v6680_v9 = vld [vmem:[%s11484_s5 + $0x20] sm:$0xff] }
 0x6c8   :  { %v7992_v39 = vpop.f32.mrf.mxu0 }
 0x6ca   :  { %v7993_v48 = vpop.f32.mrf.mxu0 }
 0x6cb   :  { %v7994_v29 = vadd.f32 %v7993_v48, %v7992_v39  ;;  %v6240_v48 = vsub.f32 %v6238_v28, %v6239_v62 }
 0x6cd   :  { %v5521_v13 = vadd.f32 %v7994_v29, %v5342_v49  ;;  %v6241_v22 = vand.u32 4294901760, %v6240_v48 }
 0x6ce   :  { %v7995_v11 = vpop.f32.mrf.mxu0 }
 0x6d0   :  { %v7996_v38 = vpop.f32.mrf.mxu0 }
 0x6d1   :  { %v7997_v24 = vadd.f32 %v7996_v38, %v7995_v11 }
 0x6d2   :  { %v8030_v6 = vpop.f32.mrf.mxu1  ;;  %v8402_v21 = vpop.f32.mrf.mxu0 }
 0x6d3   :  { %v5528_v7 = vadd.f32 %v7997_v24, %v5353_v2  ;;  %v6679_v2 = vld [vmem:[%s11484_s5 + $0x18] sm:$0xff] }
 0x6d4   :  { %v8031_v32 = vpop.f32.mrf.mxu1  ;;  %v5715_v60 = vpop.f32.mrf.mxu0  ;;  %v11281_v30 = vand.u32 4294901760, %v6679_v2 }
 0x6d5   :  { %v8032_v45 = vadd.f32 %v8031_v32, %v8030_v6  ;;  %v6683_v6 = vld [vmem:[%s11484_s5 + $0x38] sm:$0xff]  ;;  %v6681_v32 = vld [vmem:[%s11484_s5 + $0x28] sm:$0xff] }
 0x6d6   :  { %v11226_v27 = vand.u32 4294901760, %v6683_v6 }
 0x6d7   :  { %v5632_v40 = vadd.f32 %v8032_v45, %v5521_v13 }
 0x6d8   :  { %v8033_v14 = vpop.f32.mrf.mxu1  ;;  %v8416_v16 = vpop.f32.mrf.mxu0  ;;  %v11237_v63 = vsub.f32 %v6683_v6, %v11226_v27 }
 0x6d9   :  { %v5716_v41 = vadd.f32 %v5715_v60, %v5632_v40  ;;  %v11254_v60 = vand.u32 4294901760, %v6681_v32 }
 0x6da   :  { %v8034_v42 = vpop.f32.mrf.mxu1  ;;  %v5888_v52 = vpop.f32.mrf.mxu0  ;;  %v11249_v54 = vand.u32 4294901760, %v11237_v63 }
 0x6db   :  { %v8035_v20 = vadd.f32 %v8034_v42, %v8033_v14  ;;  %v11267_v14 = vsub.f32 %v6681_v32, %v11254_v60 }
 0x6dc   :  { %v8409_v26 = vpop.f32.mrf.mxu1  ;;  %v8430_v36 = vpop.f32.mrf.mxu0  ;;  %v6810_v24 = vsub.f32 %v11237_v63, %v11249_v54 }
 0x6dd   :  { %v5639_v53 = vadd.f32 %v8035_v20, %v5528_v7  ;;  %v6678_v20 = vld [vmem:[%s11484_s5 + $0x10] sm:$0xff] }
 0x6de   :  { %v5806_v12 = vpop.f32.mrf.mxu1  ;;  %v6055_v1 = vpop.f32.mrf.mxu0  ;;  %v6811_v40 = vand.u32 4294901760, %v6810_v24 }
 0x6df   :  { %v5726_v56 = vadd.f32 %v8402_v21, %v5639_v53  ;;  %v5807_v58 = vadd.f32 %v5806_v12, %v5716_v41  ;;  %v11293_v41 = vsub.f32 %v6679_v2, %v11281_v30 }
 0x6e0   :  { %v8423_v15 = vpop.f32.mrf.mxu1 }
 0x6e1   :  { %v5813_v51 = vadd.f32 %v8409_v26, %v5726_v56  ;;  %v5889_v0 = vadd.f32 %v5888_v52, %v5807_v58  ;;  %v11279_v52 = vand.u32 4294901760, %v11267_v14  ;;  %v11306_v58 = vand.u32 4294901760, %v11293_v41 }
 0x6e2   :  { %v5970_v25 = vpop.f32.mrf.mxu1 }
 0x6e3   :  { %v5896_v61 = vadd.f32 %v8416_v16, %v5813_v51  ;;  %v5971_v47 = vadd.f32 %v5970_v25, %v5889_v0  ;;  %v11270_v16 = vand.u32 4294901760, %v6680_v9  ;;  %v6824_v53 = vsub.f32 %v11267_v14, %v11279_v52 }
 0x6e4   :  { %v8437_v5 = vpop.f32.mrf.mxu1  ;;  %v6838_v25 = vsub.f32 %v11293_v41, %v11306_v58 }
 0x6e5   :  { %v5979_v35 = vadd.f32 %v8423_v15, %v5896_v61  ;;  %v6056_v23 = vadd.f32 %v6055_v1, %v5971_v47  ;;  %v11284_v7 = vsub.f32 %v6680_v9, %v11270_v16  ;;  %v6825_v56 = vand.u32 4294901760, %v6824_v53 }
 0x6e6   :  { %v6134_v46 = vpop.f32.mrf.mxu1 }
 0x6e7   :  { %v6062_v18 = vadd.f32 %v8430_v36, %v5979_v35  ;;  %v6135_v31 = vadd.f32 %v6134_v46, %v6056_v23  ;;  %v11299_v12 = vand.u32 4294901760, %v11284_v7  ;;  %v6677_v36 = vld [vmem:[%s11484_s5 + $0x8] sm:$0xff]  ;;  %v6839_v35 = vand.u32 4294901760, %v6838_v25 }
 0x6e8   :  { %v11311_v51 = vand.u32 4294901760, %v6677_v36 }
 0x6e9   :  { %v6141_v43 = vadd.f32 %v8437_v5, %v6062_v18  ;;  %v6192_v39 = vand.u32 4294901760, %v6135_v31  ;;  %v6831_v0 = vsub.f32 %v11284_v7, %v11299_v12 }
 0x6ea   :  { %v11326_v61 = vsub.f32 %v6677_v36, %v11311_v51 }
 0x6eb   :  { %v6189_v10 = vand.u32 4294901760, %v6141_v43  ;;  %v6284_v19 = vsub.f32 %v6135_v31, %v6192_v39  ;;  %v6832_v5 = vand.u32 4294901760, %v6831_v0 }
 0x6ed   :  { %v6277_v11 = vsub.f32 %v6141_v43, %v6189_v10  ;;  %8438 = vmatprep.subr.mxu0 %v6189_v10  ;;  %v6285_v37 = vand.u32 4294901760, %v6284_v19 }
 0x6ee   :  { %8439 = vmatpush3.msra.mxu0 %v6189_v10 }
 0x6ef   :  { %8440 = vmatprep.subr.mxu0 %v6192_v39  ;;  %v6278_v57 = vand.u32 4294901760, %v6277_v11  ;;  %v6286_v44 = vsub.f32 %v6284_v19, %v6285_v37 }
 0x6f0   :  { %8441 = vmatpush3.msra.mxu0 %v6192_v39 }
 0x6f1   :  { %8452 = vmatprep.subr.mxu0 %v6277_v11  ;;  %8443 = vmatmul.mubr.f32.vlgmr.msra.gmra.mxu0 %v6241_v22  ;;  %v6279_v4 = vsub.f32 %v6277_v11, %v6278_v57  ;;  %v6287_v59 = vand.u32 4294901760, %v6286_v44 }
 0x6f2   :  { %8453 = vmatpush3.msra.mxu0 %v6277_v11  ;;  %8456 = vmatprep.mubr.f32.mxu0 %v11183_v33  ;;  %v6684_v33 = vld [vmem:[%s11484_s5 + $0x40] sm:$0xff]  ;;  %v6152_v11 = vpop.permute.xlu0 %6151 }
 0x6f3   :  { %8454 = vmatprep.subr.mxu0 %v6284_v19  ;;  %v6280_v38 = vand.u32 4294901760, %v6279_v4  ;;  %v6148_v4 = vpop.permute.xlu1 %6147 }
 0x6f4   :  { %8455 = vmatpush3.msra.mxu0 %v6284_v19 }
 0x6f5   :  { %8445 = vmatprep.subr.mxu1 %v6280_v38  ;;  %8466 = vmatprep.subr.mxu0 %v6278_v57 }
 0x6f6   :  { %8446 = vmatpush3.msra.mxu1 %v6280_v38  ;;  %8457 = vmatmul.mubr.f32.vlgmr.msra.gmra.mxu0 %v6238_v28  ;;  %v6676_v28 = vld [vmem:[%s11484_s5] sm:$0xff] }
 0x6f7   :  { %8467 = vmatpush3.msra.mxu0 %v6278_v57  ;;  %8447 = vmatprep.subr.mxu1 %v6287_v59  ;;  %v11328_v47 = vand.u32 4294901760, %v6676_v28 }
 0x6f8   :  { %8468 = vmatprep.subr.mxu0 %v6285_v37  ;;  %8448 = vmatpush3.msra.mxu1 %v6287_v59 }
 0x6f9   :  { %8469 = vmatpush3.msra.mxu0 %v6285_v37  ;;  %8450 = vmatmul.mubr.f32.vlgmr.msra.gmra.mxu1 %v11204_v17  ;;  %v11339_v46 = vsub.f32 %v6676_v28, %v11328_v47 }
 0x6fa   :  { %8459 = vmatprep.subr.mxu1 %v6189_v10  ;;  %8463 = vmatprep.mubr.f32.mxu1 %v6229_v34  ;;  %v11218_v34 = vand.u32 4294901760, %v6684_v33 }
 0x6fb   :  { %8460 = vmatpush3.msra.mxu1 %v6189_v10  ;;  %8470 = vmatprep.mubr.f32.mxu0 %v11180_v8  ;;  %v11346_v43 = vand.u32 4294901760, %v11339_v46 }
 0x6fc   :  { %8461 = vmatprep.subr.mxu1 %v6192_v39  ;;  %8471 = vmatmul.mubr.f32.vlgmr.msra.gmra.mxu0 %v11204_v17  ;;  %v11224_v21 = vsub.f32 %v6684_v33, %v11218_v34 }
 0x6fd   :  { %8462 = vmatpush3.msra.mxu1 %v6192_v39  ;;  %8480 = vmatprep.subr.mxu0 %v11218_v34  ;;  %v6859_v48 = vsub.f32 %v11339_v46, %v11346_v43 }
 0x6fe   :  { %8464 = vmatmul.mubr.f32.vlgmr.msra.gmra.mxu1 %v6239_v62  ;;  %8473 = vmatprep.subr.mxu1 %v6189_v10  ;;  %v11234_v55 = vand.u32 4294901760, %v11224_v21  ;;  %v11335_v62 = vand.u32 4294901760, %v11326_v61 }
 0x6ff   :  { %8474 = vmatpush3.msra.mxu1 %v6189_v10  ;;  %8477 = vmatprep.mubr.f32.mxu1 %v11180_v8  ;;  %v6682_v8 = vld [vmem:[%s11484_s5 + $0x30] sm:$0xff]  ;;  %v6860_v10 = vand.u32 4294901760, %v6859_v48  ;;  %s8611_s5 = spop %8610 }
 0x700   :  { %8475 = vmatprep.subr.mxu1 %v6192_v39  ;;  %8481 = vmatpush3.msra.mxu0 %v11218_v34  ;;  %v11239_v29 = vand.u32 4294901760, %v6682_v8  ;;  %v6803_v49 = vsub.f32 %v11224_v21, %v11234_v55  ;;  %v6852_v31 = vsub.f32 %v11326_v61, %v11335_v62 }
 0x701   :  { %8476 = vmatpush3.msra.mxu1 %v6192_v39  ;;  %8482 = vmatprep.subr.mxu0 %v11226_v27 }
 0x702   :  { %8478 = vmatmul.mubr.f32.vlgmr.msra.gmra.mxu1 %v11204_v17  ;;  %8483 = vmatpush3.msra.mxu0 %v11226_v27  ;;  %v11252_v45 = vsub.f32 %v6682_v8, %v11239_v29  ;;  %v6804_v13 = vand.u32 4294901760, %v6803_v49  ;;  %v11295_v17 = vand.u32 4294901760, %v6678_v20  ;;  %v6853_v39 = vand.u32 4294901760, %v6852_v31 }
 0x703   :  { %8484 = vmatprep.subr.mxu0 %v11239_v29 }
 0x704   :  { %8485 = vmatpush3.msra.mxu0 %v11239_v29  ;;  %v11264_v50 = vand.u32 4294901760, %v11252_v45  ;;  %8501 = vmatprep.subr.mxu1 %v6804_v13  ;;  %v11309_v15 = vsub.f32 %v6678_v20, %v11295_v17 }
 0x705   :  { %8486 = vmatprep.subr.mxu0 %v11254_v60  ;;  %8502 = vmatpush3.msra.mxu1 %v6804_v13 }
 0x706   :  { %8487 = vmatpush3.msra.mxu0 %v11254_v60  ;;  %v6817_v42 = vsub.f32 %v11252_v45, %v11264_v50  ;;  %8503 = vmatprep.subr.mxu1 %v6811_v40  ;;  %v11323_v1 = vand.u32 4294901760, %v11309_v15 }
 0x707   :  { %8488 = vmatprep.subr.mxu0 %v11270_v16  ;;  %8504 = vmatpush3.msra.mxu1 %v6811_v40 }
 0x708   :  { %v6818_v26 = vand.u32 4294901760, %v6817_v42  ;;  %8489 = vmatpush3.msra.mxu0 %v11270_v16  ;;  %v6845_v23 = vsub.f32 %v11309_v15, %v11323_v1 }
 0x709   :  { %8490 = vmatprep.subr.mxu0 %v11281_v30 }
 0x70a   :  { %8505 = vmatprep.subr.mxu1 %v6818_v26  ;;  %8491 = vmatpush3.msra.mxu0 %v11281_v30  ;;  %v6846_v18 = vand.u32 4294901760, %v6845_v23 }
 0x70b   :  { %8506 = vmatpush3.msra.mxu1 %v6818_v26  ;;  %8492 = vmatprep.subr.mxu0 %v11295_v17 }
 0x70c   :  { %8507 = vmatprep.subr.mxu1 %v6825_v56  ;;  %8493 = vmatpush3.msra.mxu0 %v11295_v17 }
 0x70d   :  { %8508 = vmatpush3.msra.mxu1 %v6825_v56  ;;  %8494 = vmatprep.subr.mxu0 %v11311_v51  ;;  %v6670_v56 = vstv %s8611_s5 }
 0x70e   :  { %8495 = vmatpush3.msra.mxu0 %v11311_v51  ;;  %8509 = vmatprep.subr.mxu1 %v6832_v5 }
 0x70f   :  { %8496 = vmatprep.subr.mxu0 %v11328_v47  ;;  %8510 = vmatpush3.msra.mxu1 %v6832_v5 }
 0x710   :  { %8497 = vmatpush3.msra.mxu0 %v11328_v47  ;;  %8511 = vmatprep.subr.mxu1 %v6839_v35 }
 0x711   :  { %8522 = vmatprep.subr.mxu0 %v11224_v21  ;;  %8512 = vmatpush3.msra.mxu1 %v6839_v35 }
 0x712   :  { %8513 = vmatprep.subr.mxu1 %v6846_v18 }
 0x713   :  { %8514 = vmatpush3.msra.mxu1 %v6846_v18 }
 0x714   :  { %8515 = vmatprep.subr.mxu1 %v6853_v39 }
 0x715   :  { %8516 = vmatpush3.msra.mxu1 %v6853_v39 }
 0x716   :  { %8517 = vmatprep.subr.mxu1 %v6860_v10 }
 0x717   :  { %8518 = vmatpush3.msra.mxu1 %v6860_v10 }
 0x718   :  { %8543 = vmatprep.subr.mxu1 %v11218_v34 }
 0x7b1   :  { %v8444_v19 = vpop.f32.mrf.mxu0 }
 0x7b2   :  { %v6244_v37 = vadd.f32 %v8444_v19, %v6152_v11 }
 0x7b3   :  { %v6233_v22 = vpop.f32.mrf.mxu0 }
 0x7b4   :  { %v6234_v38 = vadd.f32 %v6233_v22, %v6148_v4 }
 0x7b6   :  { %v8458_v57 = vpop.f32.mrf.mxu0 }
 0x7b8   :  { %v6406_v3 = vpop.f32.mrf.mxu0 }
 0x7b9   :  { %v8451_v44 = vpop.f32.mrf.mxu1 }
 0x7ba   :  { %v6331_v59 = vadd.f32 %v8451_v44, %v6244_v37 }
 0x7bb   :  { %v6324_v33 = vpop.f32.mrf.mxu1 }
 0x7bc   :  { %v6414_v6 = vadd.f32 %v8458_v57, %v6331_v59  ;;  %v6325_v8 = vadd.f32 %v6324_v33, %v6234_v38  ;;  %v8472_v9 = vpop.f32.mrf.mxu0  ;;  %v7289_v33 = vld [vmem:[%s11485_s3 + $0x10] sm:$0xff] }
 0x7be   :  { %v6407_v32 = vadd.f32 %v6406_v3, %v6325_v8  ;;  %v8465_v49 = vpop.f32.mrf.mxu1  ;;  %v6573_v42 = vpop.f32.mrf.mxu0 }
 0x7bf   :  { %v6497_v13 = vadd.f32 %v8465_v49, %v6414_v6  ;;  %v7288_v49 = vld [vmem:[%s11485_s3 + $0x8] sm:$0xff] }
 0x7c0   :  { %v6488_v24 = vpop.f32.mrf.mxu1 }
 0x7c1   :  { %v6580_v2 = vadd.f32 %v8472_v9, %v6497_v13  ;;  %v6489_v40 = vadd.f32 %v6488_v24, %v6407_v32 }
 0x7c2   :  { %v8479_v20 = vpop.f32.mrf.mxu1 }
 0x7c3   :  { %v6574_v26 = vadd.f32 %v6573_v42, %v6489_v40  ;;  %v6659_v53 = vadd.f32 %v8479_v20, %v6580_v2 }
 0x7c4   :  { %v6652_v36 = vpop.f32.mrf.mxu1 }
 0x7c5   :  { %v6665_v0 = vmin.f32 %v6659_v53, 0.0  ;;  %v6653_v28 = vadd.f32 %v6652_v36, %v6574_v26  ;;  %v6663_v25 = vmax.f32 %v6659_v53, 0.0 }
 0x7c7   :  { %v6664_v5 = vmin.f32 %v6653_v28, 0.0  ;;  %v6673_v35 = vmul.f32 %v6670_v56, %v6665_v0  ;;  %v6662_v23 = vmax.f32 %v6653_v28, 0.0 }
 0x7c9   :  { %v6672_v18 = vmul.f32 %v6670_v56, %v6664_v5  ;;  %v6675_v31 = vadd.f32 %v6673_v35, %v6663_v25  ;;  %v11940_v25 = vlaneseq }
 0x7cb   :  { %v6674_v39 = vadd.f32 %v6672_v18, %v6662_v23  ;;  %v6689_v48 = vsel %vm4482_vm1, %v6675_v31, 0  ;;  %v7313_v5 = vand.u32 127, %v11940_v25  ;;  %v7315_v23 = vshrl.u32 %v11940_v25, 7 }
 0x7cc   :  { %v11353_v10 = vand.u32 4294901760, %v6689_v48 }
 0x7cd   :  { %v6686_v19 = vsel %vm4482_vm1, %v6674_v39, 0  ;;  %v7318_v18 = vadd.s32 4294967288, %v7313_v5 }
 0x7ce   :  { %v6765_v11 = vand.u32 4294901760, %v6686_v19  ;;  %v6776_v22 = vsub.f32 %v6689_v48, %v11353_v10  ;;  %v7316_v48 = vsub.s32 %v7313_v5, %v7315_v23 }
 0x7cf   :  { %v7321_v39 = vsub.s32 %v7318_v18, %v7315_v23 }
 0x7d0   :  { %v6766_v37 = vsub.f32 %v6686_v19, %v6765_v11  ;;  %8519 = vmatprep.mubr.f32.mxu1 %v6765_v11  ;;  %v6777_v57 = vand.u32 4294901760, %v6776_v22 }
 0x7d1   :  { %8520 = vmatmul.mubr.f32.vlgmr.msra.gmra.mxu1 %v11353_v10 }
 0x7d2   :  { %8544 = vmatpush3.msra.mxu1 %v11218_v34  ;;  %v6767_v4 = vand.u32 4294901760, %v6766_v37  ;;  %v6778_v44 = vsub.f32 %v6776_v22, %v6777_v57 }
 0x7d3   :  { %8545 = vmatprep.subr.mxu1 %v11226_v27 }
 0x7d4   :  { %8546 = vmatpush3.msra.mxu1 %v11226_v27  ;;  %8561 = vmatprep.mubr.f32.mxu1 %v6767_v4  ;;  %v6768_v38 = vsub.f32 %v6766_v37, %v6767_v4  ;;  %v6779_v3 = vand.u32 4294901760, %v6778_v44 }
 0x7d5   :  { %8547 = vmatprep.subr.mxu1 %v11239_v29 }
 0x7d6   :  { %8548 = vmatpush3.msra.mxu1 %v11239_v29  ;;  %v6769_v59 = vand.u32 4294901760, %v6768_v38 }
 0x7d7   :  { %8549 = vmatprep.subr.mxu1 %v11254_v60 }
 0x7d8   :  { %8550 = vmatpush3.msra.mxu1 %v11254_v60  ;;  %8498 = vmatprep.mubr.f32.mxu0 %v6769_v59 }
 0x7d9   :  { %8551 = vmatprep.subr.mxu1 %v11270_v16  ;;  %8499 = vmatmul.mubr.f32.vlgmr.msra.gmra.mxu0 %v6779_v3 }
 0x7da   :  { %8523 = vmatpush3.msra.mxu0 %v11224_v21  ;;  %8552 = vmatpush3.msra.mxu1 %v11270_v16 }
 0x7db   :  { %8524 = vmatprep.subr.mxu0 %v11237_v63  ;;  %8540 = vmatprep.mubr.f32.mxu0 %v6766_v37 }
 0x7dc   :  { %8553 = vmatprep.subr.mxu1 %v11281_v30  ;;  %8525 = vmatpush3.msra.mxu0 %v11237_v63 }
 0x7dd   :  { %8554 = vmatpush3.msra.mxu1 %v11281_v30  ;;  %8526 = vmatprep.subr.mxu0 %v11252_v45 }
 0x7de   :  { %8555 = vmatprep.subr.mxu1 %v11295_v17  ;;  %8527 = vmatpush3.msra.mxu0 %v11252_v45 }
 0x7df   :  { %8556 = vmatpush3.msra.mxu1 %v11295_v17  ;;  %8528 = vmatprep.subr.mxu0 %v11267_v14 }
 0x7e0   :  { %8557 = vmatprep.subr.mxu1 %v11311_v51  ;;  %8529 = vmatpush3.msra.mxu0 %v11267_v14 }
 0x7e1   :  { %8558 = vmatpush3.msra.mxu1 %v11311_v51  ;;  %8530 = vmatprep.subr.mxu0 %v11284_v7 }
 0x7e2   :  { %8559 = vmatprep.subr.mxu1 %v11328_v47  ;;  %8531 = vmatpush3.msra.mxu0 %v11284_v7 }
 0x7e3   :  { %8560 = vmatpush3.msra.mxu1 %v11328_v47  ;;  %8532 = vmatprep.subr.mxu0 %v11293_v41 }
 0x7e4   :  { %8562 = vmatmul.mubr.f32.vlgmr.msra.gmra.mxu1 %v6777_v57  ;;  %8585 = vmatprep.subr.mxu1 %v11218_v34 }
 0x7e5   :  { %8533 = vmatpush3.msra.mxu0 %v11293_v41  ;;  %8586 = vmatpush3.msra.mxu1 %v11218_v34 }
 0x7e6   :  { %8603 = vmatprep.mubr.f32.mxu1 %v6765_v11  ;;  %8534 = vmatprep.subr.mxu0 %v11309_v15 }
 0x7e7   :  { %8587 = vmatprep.subr.mxu1 %v11226_v27  ;;  %8535 = vmatpush3.msra.mxu0 %v11309_v15 }
 0x7e8   :  { %8588 = vmatpush3.msra.mxu1 %v11226_v27  ;;  %8536 = vmatprep.subr.mxu0 %v11326_v61 }
 0x7e9   :  { %8589 = vmatprep.subr.mxu1 %v11239_v29  ;;  %8537 = vmatpush3.msra.mxu0 %v11326_v61  ;;  %v7287_v61 = vld [vmem:[%s11485_s3] sm:$0xff] }
 0x7ea   :  { %8590 = vmatpush3.msra.mxu1 %v11239_v29  ;;  %8538 = vmatprep.subr.mxu0 %v11339_v46 }
 0x7eb   :  { %8591 = vmatprep.subr.mxu1 %v11254_v60  ;;  %8539 = vmatpush3.msra.mxu0 %v11339_v46 }
 0x7ec   :  { %8592 = vmatpush3.msra.mxu1 %v11254_v60  ;;  %8541 = vmatmul.mubr.f32.vlgmr.msra.gmra.mxu0 %v6776_v22 }
 0x7ed   :  { %8564 = vmatprep.subr.mxu0 %v11234_v55  ;;  %8593 = vmatprep.subr.mxu1 %v11270_v16 }
 0x7ee   :  { %8565 = vmatpush3.msra.mxu0 %v11234_v55  ;;  %8582 = vmatprep.mubr.f32.mxu0 %v6765_v11 }
 0x7ef   :  { %8594 = vmatpush3.msra.mxu1 %v11270_v16  ;;  %8566 = vmatprep.subr.mxu0 %v11249_v54 }
 0x7f0   :  { %8595 = vmatprep.subr.mxu1 %v11281_v30  ;;  %8567 = vmatpush3.msra.mxu0 %v11249_v54 }
 0x7f1   :  { %8596 = vmatpush3.msra.mxu1 %v11281_v30  ;;  %8568 = vmatprep.subr.mxu0 %v11264_v50 }
 0x7f2   :  { %8597 = vmatprep.subr.mxu1 %v11295_v17  ;;  %8569 = vmatpush3.msra.mxu0 %v11264_v50 }
 0x7f3   :  { %8598 = vmatpush3.msra.mxu1 %v11295_v17  ;;  %8570 = vmatprep.subr.mxu0 %v11279_v52 }
 0x7f4   :  { %8599 = vmatprep.subr.mxu1 %v11311_v51  ;;  %8571 = vmatpush3.msra.mxu0 %v11279_v52 }
 0x7f5   :  { %8600 = vmatpush3.msra.mxu1 %v11311_v51  ;;  %8572 = vmatprep.subr.mxu0 %v11299_v12 }
 0x7f6   :  { %8601 = vmatprep.subr.mxu1 %v11328_v47  ;;  %8573 = vmatpush3.msra.mxu0 %v11299_v12 }
 0x7f7   :  { %8602 = vmatpush3.msra.mxu1 %v11328_v47  ;;  %8574 = vmatprep.subr.mxu0 %v11306_v58 }
 0x7f8   :  { %8604 = vmatmul.mubr.f32.vlgmr.msra.gmra.mxu1 %v11353_v10  ;;  %8575 = vmatpush3.msra.mxu0 %v11306_v58  ;;  %v7290_v58 = vld [vmem:[%s11485_s3 + $0x18] sm:$0xff] }
 0x7f9   :  { %8576 = vmatprep.subr.mxu0 %v11323_v1 }
 0x7fa   :  { %8577 = vmatpush3.msra.mxu0 %v11323_v1 }
 0x7fb   :  { %8578 = vmatprep.subr.mxu0 %v11335_v62 }
 0x7fc   :  { %8579 = vmatpush3.msra.mxu0 %v11335_v62 }
 0x7fd   :  { %8580 = vmatprep.subr.mxu0 %v11346_v43 }
 0x7fe   :  { %8581 = vmatpush3.msra.mxu0 %v11346_v43 }
 0x7ff   :  { %8583 = vmatmul.mubr.f32.vlgmr.msra.gmra.mxu0 %v11353_v10 }
 0x891   :  { %v8521_v21 = vpop.f32.mrf.mxu1 }
 0x893   :  { %v6897_v63 = vpop.f32.mrf.mxu1 }
 0x899   :  { %v8500_v34 = vpop.f32.mrf.mxu0 }
 0x89a   :  { %v6904_v29 = vadd.f32 %v8521_v21, %v8500_v34 }
 0x89b   :  { %v6771_v27 = vpop.f32.mrf.mxu0 }
 0x89c   :  { %v6898_v60 = vadd.f32 %v6897_v63, %v6771_v27 }
 0x8a4   :  { %v8563_v54 = vpop.f32.mrf.mxu1 }
 0x8a6   :  { %v7082_v16 = vpop.f32.mrf.mxu1 }
 0x8ac   :  { %v8542_v55 = vpop.f32.mrf.mxu0 }
 0x8ad   :  { %v7001_v50 = vadd.f32 %v8542_v55, %v6904_v29 }
 0x8ae   :  { %v6993_v45 = vpop.f32.mrf.mxu0 }
 0x8af   :  { %v6994_v14 = vadd.f32 %v6993_v45, %v6898_v60  ;;  %v7091_v52 = vadd.f32 %v8563_v54, %v7001_v50 }
 0x8b1   :  { %v7083_v17 = vadd.f32 %v7082_v16, %v6994_v14  ;;  %v30_v14 = vld [vmem:[%s11481_s2] sm:$0x3] }
 0x8b8   :  { %v8605_v30 = vpop.f32.mrf.mxu1 }
 0x8ba   :  { %v7274_v1 = vpop.f32.mrf.mxu1 }
 0x8bf   :  { %v8584_v7 = vpop.f32.mrf.mxu0 }
 0x8c0   :  { %v7195_v41 = vadd.f32 %v8584_v7, %v7091_v52 }
 0x8c1   :  { %v7188_v12 = vpop.f32.mrf.mxu0 }
 0x8c2   :  { %v7281_v15 = vadd.f32 %v8605_v30, %v7195_v41  ;;  %v7189_v51 = vadd.f32 %v7188_v12, %v7083_v17 }
 0x8c4   :  { %7286 = vst.msk [vmem:[%s11486_s6 + $0x8] sm:$0xff] %vm7284_vm10, %v7281_v15  ;;  %v7275_v47 = vadd.f32 %v7274_v1, %v7189_v51  ;;  %v7294_v62 = vmul.f32 %v7290_v58, %v7281_v15  ;;  %v7292_v9 = vmul.f32 %v7288_v49, %v7281_v15 }
 0x8c6   :  { %7285 = vst.msk [vmem:[%s11486_s6] sm:$0xff] %vm7284_vm10, %v7275_v47  ;;  %7364 = vrot.lane.b32.xlu1 %v7275_v47, %s8671_s20  ;;  %v7305_v46 = vsel %vm7295_vm11, %v7294_v62, 0.0  ;;  %v7291_v43 = vmul.f32 %v7287_v61, %v7275_v47  ;;  %v7293_v8 = vmul.f32 %v7289_v33, %v7275_v47  ;;  %v7299_v13 = vsel %vm7295_vm11, %v7292_v9, 0.0 }
 0x8c7   :  { %7306 = vadd.xlane.f32.xlu0 %v7305_v46 }
 0x8c8   :  { %v7296_v6 = vsel %vm7295_vm11, %v7291_v43, 0.0  ;;  %v7302_v32 = vsel %vm7295_vm11, %v7293_v8, 0.0 }
 0x8ca   :  { %7366 = vrot.lane.b32.xlu1 %v7281_v15, %s8671_s20 }
 0x8cb   :  { %7297 = vadd.xlane.f32.xlu0 %v7296_v6 }
 0x8cf   :  { %7303 = vadd.xlane.f32.xlu0 %v7302_v32 }
 0x8ee   :  { %7300 = vadd.xlane.f32.xlu1 %v7299_v13 }
 0x938   :  { %v7365_v24 = vpop.permute.xlu1 %7364 }
 0x939   :  { %v7370_v2 = vmul.f32 %v7365_v24, %v7287_v61  ;;  %v7372_v40 = vmul.f32 %v7365_v24, %v7289_v33 }
 0x93b   :  { %v7374_v42 = vsel %vm7295_vm11, %v7370_v2, 0.0  ;;  %v7380_v36 = vsel %vm7295_vm11, %v7372_v40, 0.0 }
 0x93c   :  { %7375 = vadd.xlane.f32.xlu1 %v7374_v42  ;;  %v7367_v20 = vpop.permute.xlu1 %7366 }
 0x93d   :  { %v7371_v26 = vmul.f32 %v7367_v20, %v7288_v49  ;;  %v7373_v53 = vmul.f32 %v7367_v20, %v7290_v58 }
 0x93f   :  { %v7377_v56 = vsel %vm7295_vm11, %v7371_v26, 0.0  ;;  %v7383_v0 = vsel %vm7295_vm11, %v7373_v53, 0.0 }
 0x940   :  { %7381 = vadd.xlane.f32.xlu1 %v7380_v36  ;;  %7378 = vadd.xlane.f32.xlu0 %v7377_v56 }
 0x944   :  { %7384 = vadd.xlane.f32.xlu0 %v7383_v0 }
 0x950   :  { %v7307_v28 = vpop.xlane.xlu0 %7306 }
 0x951   :  { %v7332_v11 = vrot.slane %v7307_v28, %v7321_v39 }
 0x954   :  { %v7298_v35 = vpop.xlane.xlu0 %7297 }
 0x955   :  { %v7317_v22 = vrot.slane %v7298_v35, %v7316_v48 }
 0x958   :  { %v7304_v31 = vpop.xlane.xlu0 %7303 }
 0x959   :  { %v7328_v10 = vrot.slane %v7304_v31, %v7316_v48 }
 0x95b   :  { %v7333_v4 = vsel %vm7323_vm12, %v7332_v11, %v7328_v10 }
 0x977   :  { %v7301_v19 = vpop.xlane.xlu1 %7300 }
 0x978   :  { %v7322_v37 = vrot.slane %v7301_v19, %v7321_v39 }
 0x97a   :  { %v7324_v57 = vsel %vm7323_vm12, %v7322_v37, %v7317_v22 }
 0x97b   :  { %v7335_v44 = vsel %vm7334_vm14, %v7333_v4, %v7324_v57 }
 0x97c   :  { %v7338_v38 = vsel %vm7337_vm0, %v7335_v44, 0.0 }
 0x97d   :  { %7339 = vadd.xlane.f32.xlu1 %v7338_v38 }
 0x9c5   :  { %v7376_v59 = vpop.xlane.xlu1 %7375 }
 0x9c6   :  { %v7393_v55 = vrot.slane %v7376_v59, %v7316_v48 }
 0x9c9   :  { %v7379_v3 = vpop.xlane.xlu0 %7378  ;;  %v7382_v34 = vpop.xlane.xlu1 %7381 }
 0x9ca   :  { %v7397_v21 = vrot.slane %v7379_v3, %v7321_v39  ;;  %v7402_v63 = vrot.slane %v7382_v34, %v7316_v48 }
 0x9cc   :  { %v7398_v54 = vsel %vm7323_vm12, %v7397_v21, %v7393_v55 }
 0x9cd   :  { %v7385_v27 = vpop.xlane.xlu0 %7384 }
 0x9ce   :  { %v7406_v29 = vrot.slane %v7385_v27, %v7321_v39 }
 0x9d0   :  { %v7407_v45 = vsel %vm7323_vm12, %v7406_v29, %v7402_v63 }
 0x9d1   :  { %v7408_v60 = vsel %vm7334_vm14, %v7407_v45, %v7398_v54 }
 0x9d2   :  { %v7410_v50 = vsel %vm7337_vm0, %v7408_v60, 0.0 }
 0x9d3   :  { %7411 = vadd.xlane.f32.xlu0 %v7410_v50 }
 0xa06   :  { %v7340_v16 = vpop.xlane.xlu1 %7339 }
 0xa07   :  { %v7341_v52 = vadd.f32 %v7340_v16, %v30_v14 }
 0xa09   :  { %v7343_v30 = vsel %vm7342_vm2, %v7341_v52, -inf }
 0xa0a   :  { %v7344_v7 = vrot.slane %v7343_v30, 4 }
 0xa0c   :  { %v7345_v41 = vmax.f32 %v7343_v30, %v7344_v7 }
 0xa0e   :  { %v7346_v17 = vrot.slane %v7345_v41, 2 }
 0xa10   :  { %v7347_v12 = vmax.f32 %v7345_v41, %v7346_v17 }
 0xa12   :  { %v7348_v58 = vrot.slane %v7347_v12, 1 }
 0xa14   :  { %v7349_v15 = vmax.f32 %v7347_v12, %v7348_v58 }
 0xa16   :  { %v7350_v51 = vsub.f32 %v7341_v52, %v7349_v15 }
 0xa18   :  { %v7351_v1 = vmul.f32 1.442695, %v7350_v51 }
 0xa1a   :  { %8644 = vpow2.f32 %v7351_v1 }
 0xa27   :  { %v8645_v61 = vpop.eup %8644 }
 0xa28   :  { %v7353_v47 = vsel %vm7342_vm2, %v8645_v61, 0.0 }
 0xa29   :  { %v7354_v62 = vrot.slane %v7353_v47, 4 }
 0xa2b   :  { %v7355_v46 = vadd.f32 %v7354_v62, %v7353_v47 }
 0xa2d   :  { %v7356_v43 = vrot.slane %v7355_v46, 2 }
 0xa2f   :  { %v7357_v33 = vadd.f32 %v7356_v43, %v7355_v46 }
 0xa31   :  { %v7358_v6 = vrot.slane %v7357_v33, 1 }
 0xa33   :  { %v7359_v8 = vadd.f32 %v7358_v6, %v7357_v33 }
 0xa35   :  { %8646 = vrcp.f32 %v7359_v8 }
 0xa42   :  { %v8647_v32 = vpop.eup %8646 }
 0xa43   :  { %v7361_v49 = vmul.f32 %v8647_v32, %v8645_v61 }
 0xa45   :  { %7434 = vrot.lane.b32.xlu1 %v7361_v49, %s8671_s20 }
 0xa5c   :  { %v7412_v9 = vpop.xlane.xlu0 %7411 }
 0xa5d   :  { %v7413_v13 = vadd.f32 %v7412_v9, %v30_v14 }
 0xa5f   :  { %v7414_v24 = vsel %vm7342_vm2, %v7413_v13, -inf }
 0xa60   :  { %v7415_v2 = vrot.slane %v7414_v24, 4 }
 0xa62   :  { %v7416_v40 = vmax.f32 %v7414_v24, %v7415_v2 }
 0xa64   :  { %v7417_v42 = vrot.slane %v7416_v40, 2 }
 0xa66   :  { %v7418_v20 = vmax.f32 %v7416_v40, %v7417_v42 }
 0xa68   :  { %v7419_v26 = vrot.slane %v7418_v20, 1 }
 0xa6a   :  { %v7420_v53 = vmax.f32 %v7418_v20, %v7419_v26 }
 0xa6c   :  { %v7421_v36 = vsub.f32 %v7413_v13, %v7420_v53 }
 0xa6e   :  { %v7422_v56 = vmul.f32 1.442695, %v7421_v36 }
 0xa70   :  { %8648 = vpow2.f32 %v7422_v56 }
 0xa7d   :  { %v8649_v0 = vpop.eup %8648 }
 0xa7e   :  { %v7424_v28 = vsel %vm7342_vm2, %v8649_v0, 0.0 }
 0xa7f   :  { %v7425_v25 = vrot.slane %v7424_v28, 4 }
 0xa81   :  { %v7426_v5 = vadd.f32 %v7425_v25, %v7424_v28 }
 0xa83   :  { %v7427_v35 = vrot.slane %v7426_v5, 2 }
 0xa85   :  { %v7428_v23 = vadd.f32 %v7427_v35, %v7426_v5 }
 0xa87   :  { %v7429_v18 = vrot.slane %v7428_v23, 1 }
 0xa89   :  { %v7430_v31 = vadd.f32 %v7429_v18, %v7428_v23 }
 0xa8b   :  { %8650 = vrcp.f32 %v7430_v31 }
 0xa98   :  { %v8651_v39 = vpop.eup %8650 }
 0xa99   :  { %v7432_v48 = vmul.f32 %v8651_v39, %v8649_v0 }
 0xa9b   :  { %7438 = vrot.lane.b32.xlu0 %v7432_v48, %s8674_s23 }
 0xab7   :  { %v7435_v10 = vpop.permute.xlu1 %7434 }
 0xb0d   :  { %v7439_v19 = vpop.permute.xlu0 %7438 }
 0xb0e   :  { %v7442_v11 = vsel %vm7441_vm6, %v7435_v10, %v7439_v19 }
 0xb0f   :  { %7444 = vst.msk [vmem:[%s11487_s7] sm:$0x3] %vm7443_vm5, %v7442_v11 }

</bundles_post_ra>
